<compile_context>
chip_gen: v7x
topology: tpu7x:2x2x1
jax: 0.10.0
libtpu: 0.0.40
codegen_flags: <defaults>
</compile_context>

<pallas_src>
import math
from functools import partial

import jax
import jax.numpy as jnp
import numpy as np
from jax import lax
from jax.experimental import pallas as pl
from jax.experimental.pallas import tpu as pltpu


def dien_kernel(T, Hp,
                target_ref, hist_ref,
                gw_ih_ref, gw_hh_ref, gb_x_ref, gb_hn_ref,
                wq_ref, bq_ref, wkT_ref, bk_ref,
                aw_x_ref, aw_hzr_ref, aw_hn_ref, ab_ref,
                out_ref,
                xa_ref, gru_out_ref):
    Bb = target_ref.shape[0]            # batch rows in this grid block
    E = hist_ref.shape[2]
    Hp2, Hp3 = 2 * Hp, 3 * Hp
    scale = jnp.float32(1.0 / math.sqrt(E))
    f32, bf16 = jnp.float32, jnp.bfloat16
    unroll = True if T <= 16 else 4     # full unroll only for short sequences

    # ---- 1. bulk GRU x-side projection (one matmul, bias folded in) ----------
    # hist arrives time-major (T, Bb, E); collapsing leading dims is cheap.
    x_tm = hist_ref[...].reshape(T * Bb, E)
    xa_ref[:, :Hp3] = (jnp.dot(x_tm, gw_ih_ref[...],
                               preferred_element_type=f32) + gb_x_ref[...])

    # Hoisted recurrent weights (bf16 MXU inputs) / bias broadcast (done once).
    w_hh = gw_hh_ref[...].astype(bf16)                 # (Hp, 3Hp), gates r|z|n
    b_hn = jnp.broadcast_to(gb_hn_ref[...], (Bb, Hp))  # (Bb, Hp)

    # ---- 2. interest extractor: GRU recurrence, h carried in registers -------
    def gru_step(t, h):
        base = pl.multiple_of(t * Bb, Bb)
        xp_t = xa_ref[pl.ds(base, Bb), :Hp3]           # (Bb, 3Hp) lane-aligned
        hp = jnp.dot(h.astype(bf16), w_hh, preferred_element_type=f32)
        r = jax.nn.sigmoid(xp_t[:, :Hp] + hp[:, :Hp])
        z = jax.nn.sigmoid(xp_t[:, Hp:Hp2] + hp[:, Hp:Hp2])
        n = jnp.tanh(xp_t[:, Hp2:] + r * (hp[:, Hp2:] + b_hn))
        h_new = (1.0 - z) * n + z * h                  # padded cols stay 0
        gru_out_ref[pl.ds(base, Bb), :] = h_new
        return h_new

    h0 = jnp.zeros((Bb, Hp), f32)
    lax.fori_loop(0, T, gru_step, h0, unroll=unroll)

    # ---- 3. bulk projections between the two recurrences ---------------------
    g2d = gru_out_ref[...]                             # (T*Bb, Hp) time-major
    # AUGRU x-side projection (gates z|r|n), bias folded; overwrites dead xp.
    xa_ref[:, :Hp3] = (jnp.dot(g2d, aw_x_ref[...],
                               preferred_element_type=f32) + ab_ref[...])
    # Attention scores via the refactor  q.(g@wk + bk) = g.(wk@q) + q.bk :
    query = (jnp.dot(target_ref[...], wq_ref[...],
                     preferred_element_type=f32) + bq_ref[...])      # (Bb, Hp)
    v = jnp.dot(query, wkT_ref[...], preferred_element_type=f32)     # (Bb, Hp)
    const = jnp.sum(query * bk_ref[...], axis=-1, keepdims=True)     # (Bb, 1)
    g3 = g2d.reshape(T, Bb, Hp)
    sc = jnp.sum(g3 * v[None], axis=-1, keepdims=True) + const[None]  # (T,Bb,1)
    # Store the score lane-dense (broadcast over the 128 lanes it occupies
    # anyway) as the 4th block of the xa scratch -> no per-step broadcast.
    xa_ref[:, Hp3:] = jnp.broadcast_to(sc * scale,
                                       (T, Bb, Hp)).reshape(T * Bb, Hp)

    # Hoisted AUGRU recurrent weights (bf16 MXU inputs).
    w_hzr = aw_hzr_ref[...].astype(bf16)               # (Hp, 2Hp), gates z|r
    w_hn = aw_hn_ref[...].astype(bf16)                 # (Hp, Hp)

    # ---- 4. interest evolving: AUGRUCell recurrence, h in registers ----------
    def augru_step(t, h):
        base = pl.multiple_of(t * Bb, Bb)
        row = xa_ref[pl.ds(base, Bb), :]               # (Bb, 4Hp): z|r|n|score
        hzr = jnp.dot(h.astype(bf16), w_hzr, preferred_element_type=f32)
        z = jax.nn.sigmoid(row[:, :Hp] + hzr[:, :Hp])
        r = jax.nn.sigmoid(row[:, Hp:Hp2] + hzr[:, Hp:])
        h_tilde = jnp.tanh(row[:, Hp2:Hp3] +
                           jnp.dot((r * h).astype(bf16), w_hn,
                                   preferred_element_type=f32))
        zs = z * row[:, Hp3:]                          # z * attn_score
        return (1.0 - zs) * h + zs * h_tilde           # padded cols stay 0

    h_aug0 = gru_out_ref[pl.ds(0, Bb), :]              # init with gru_out[:,0,:]
    out_ref[...] = lax.fori_loop(0, T, augru_step, h_aug0, unroll=unroll)


def dien_forward(target, hist, params, *, block_b=None):
    """target: (B, E), hist: (B, T, E) -> (B, H)."""
    B, T, E = hist.shape
    H = params["wq"].shape[1]
    Hp = ((H + 127) // 128) * 128                      # lane-padded hidden dim
    Hp3, Hp4 = 3 * Hp, 4 * Hp

    if block_b is None:
        # keep >= 2 batch blocks when B allows (so v7x's two TensorCores both
        # get work) while bounding the (T*block_b, *) VMEM scratches.  For
        # v5e/v6e a larger explicit block_b can be passed to amortize the
        # per-step latency further.
        block_b = B
        for cand in (64, 32, 16, 8):
            if B > cand and B % cand == 0:
                block_b = cand
                break
    assert B % block_b == 0, "batch must divide into batch blocks"
    assert block_b % 8 == 0 or block_b == B, "batch block should be a multiple of 8"

    # One-time host-side weight packing: pad each gate block to Hp lanes so the
    # per-step slices in the kernel are 128-lane-group aligned.  Padding is
    # zeros, which keeps the padded hidden columns exactly 0 in the recurrence.
    def padc(w):    # pad columns H -> Hp
        return jnp.pad(w, ((0, 0), (0, Hp - w.shape[1])))

    def padrc(w):   # pad rows and columns H -> Hp
        return jnp.pad(w, ((0, Hp - w.shape[0]), (0, Hp - w.shape[1])))

    gw_ih, gw_hh = params["gw_ih"], params["gw_hh"]
    gb_ih, gb_hh = params["gb_ih"], params["gb_hh"]
    gw_ih_p = jnp.concatenate([padc(gw_ih[g]) for g in range(3)], axis=1)   # (E,3Hp)
    gw_hh_p = jnp.concatenate([padrc(gw_hh[g]) for g in range(3)], axis=1)  # (Hp,3Hp)
    gb_x_p = jnp.concatenate([padc(gb_ih[0] + gb_hh[0]),
                              padc(gb_ih[1] + gb_hh[1]),
                              padc(gb_ih[2])], axis=1)                      # (1,3Hp)
    gb_hn_p = padc(gb_hh[2])                                                # (1,Hp)

    wq_p = padc(params["wq"])                                               # (E,Hp)
    bq_p = padc(params["bq"])                                               # (1,Hp)
    wk_t = padrc(params["wk"]).T                                            # (Hp,Hp)
    bk_p = padc(params["bk"])                                               # (1,Hp)

    aw_x_p = jnp.concatenate([padrc(params["aw_x"][g]) for g in range(3)], axis=1)
    aw_hzr = jnp.concatenate([padrc(params["aw_h"][0]),
                              padrc(params["aw_h"][1])], axis=1)            # (Hp,2Hp)
    aw_hn = padrc(params["aw_h"][2])                                        # (Hp,Hp)
    ab_p = jnp.concatenate([padc(params["ab"][g]) for g in range(3)], axis=1)

    weights = (gw_ih_p, gw_hh_p, gb_x_p, gb_hn_p,
               wq_p, bq_p, wk_t, bk_p,
               aw_x_p, aw_hzr, aw_hn, ab_p)

    # Single host-side transpose (fused by XLA into the input feed) so the
    # kernel never does a per-t masked relayout of hist.
    hist_tm = jnp.transpose(hist, (1, 0, 2))                                # (T,B,E)

    def full_spec(x):
        return pl.BlockSpec(x.shape, lambda i: (0,) * x.ndim)

    # Explicit VMEM budget (review: set vmem_limit_bytes; default scoped limit
    # can be too small for larger block_b on v5e/v6e).
    scratch_bytes = 4 * block_b * T * (Hp4 + Hp)
    weight_bytes = 4 * sum(int(np.prod(w.shape)) for w in weights)
    io_bytes = 4 * (T * block_b * E + block_b * E + block_b * Hp)
    vmem_need = scratch_bytes + 2 * (io_bytes + weight_bytes) + (4 << 20)
    vmem_limit = int(min(max(vmem_need, 32 << 20), 100 << 20))

    kernel = pl.pallas_call(
        partial(dien_kernel, T, Hp),
        out_shape=jax.ShapeDtypeStruct((B, Hp), jnp.float32),
        grid=(B // block_b,),
        in_specs=[pl.BlockSpec((block_b, E), lambda i: (i, 0)),
                  pl.BlockSpec((T, block_b, E), lambda i: (0, i, 0))]
                 + [full_spec(w) for w in weights],
        out_specs=pl.BlockSpec((block_b, Hp), lambda i: (i, 0)),
        scratch_shapes=[
            pltpu.VMEM((block_b * T, Hp4), jnp.float32),  # xp -> axp|score (aliased)
            pltpu.VMEM((block_b * T, Hp), jnp.float32),   # GRU hidden sequence
        ],
        compiler_params=pltpu.CompilerParams(
            dimension_semantics=("parallel",),
            vmem_limit_bytes=vmem_limit),
    )
    out = kernel(target, hist_tm, *weights)
    return out[:, :H]


def init_params(key, E, H):
    ks = jax.random.split(key, 11)
    s = 0.1
    return {
        # nn.GRU weights, pre-transposed & stacked per gate in (r, z, n) order
        "gw_ih": s * jax.random.normal(ks[0], (3, E, H), jnp.float32),
        "gw_hh": s * jax.random.normal(ks[1], (3, H, H), jnp.float32),
        "gb_ih": s * jax.random.normal(ks[2], (3, 1, H), jnp.float32),
        "gb_hh": s * jax.random.normal(ks[3], (3, 1, H), jnp.float32),
        # AttentionLayer W_q / W_k
        "wq": s * jax.random.normal(ks[4], (E, H), jnp.float32),
        "bq": s * jax.random.normal(ks[5], (1, H), jnp.float32),
        "wk": s * jax.random.normal(ks[6], (H, H), jnp.float32),
        "bk": s * jax.random.normal(ks[7], (1, H), jnp.float32),
        # AUGRUCell: Linear(cat([x, h])) split into x-part / h-part, order (z, r, n)
        "aw_x": s * jax.random.normal(ks[8], (3, H, H), jnp.float32),
        "aw_h": s * jax.random.normal(ks[9], (3, H, H), jnp.float32),
        "ab": s * jax.random.normal(ks[10], (3, 1, H), jnp.float32),
    }
    # TODO(synk): AuxiliaryNet is defined in the PyTorch __init__ but never used
    # in forward; it is intentionally not instantiated here.


def dien_reference(target, hist, p):
    """Pure-JAX f32 reference mirroring the PyTorch forward pass (incl. AUGRUCell)."""
    B, T, E = hist.shape
    H = p["wq"].shape[1]
    h = jnp.zeros((B, H), jnp.float32)
    outs = []
    for t in range(T):
        x = hist[:, t, :]
        r = jax.nn.sigmoid(x @ p["gw_ih"][0] + p["gb_ih"][0] + h @ p["gw_hh"][0] + p["gb_hh"][0])
        z = jax.nn.sigmoid(x @ p["gw_ih"][1] + p["gb_ih"][1] + h @ p["gw_hh"][1] + p["gb_hh"][1])
        n = jnp.tanh(x @ p["gw_ih"][2] + p["gb_ih"][2] + r * (h @ p["gw_hh"][2] + p["gb_hh"][2]))
        h = (1.0 - z) * n + z * h
        outs.append(h)
    gru_out = jnp.stack(outs, axis=1)                       # (B, T, H)
    query = target @ p["wq"] + p["bq"]
    keys = gru_out @ p["wk"] + p["bk"]
    scores = jnp.einsum("bh,bth->bt", query, keys) / math.sqrt(E)
    h = gru_out[:, 0, :]
    for t in range(T):
        x = gru_out[:, t, :]
        z = jax.nn.sigmoid(x @ p["aw_x"][0] + h @ p["aw_h"][0] + p["ab"][0])
        r = jax.nn.sigmoid(x @ p["aw_x"][1] + h @ p["aw_h"][1] + p["ab"][1])
        h_tilde = jnp.tanh(x @ p["aw_x"][2] + (r * h) @ p["aw_h"][2] + p["ab"][2])
        z = z * scores[:, t:t + 1]
        h = (1.0 - z) * h + z * h_tilde
    return h


if __name__ == "__main__":
    B, T, E, H = 8, 8, 32, 32
    key = jax.random.PRNGKey(0)
    k_t, k_h, k_p = jax.random.split(key, 3)

    target_item_embd = jax.random.normal(k_t, (B, E), jnp.float32)
    hist_item_embd = jax.random.normal(k_h, (B, T, E), jnp.float32)
    params = init_params(k_p, E, H)

    out = dien_forward(target_item_embd, hist_item_embd, params)
    out = jax.block_until_ready(out)

    ref = jax.block_until_ready(dien_reference(target_item_embd, hist_item_embd, params))
    assert out.shape == (B, H)
    # Tolerance accounts for the bf16 MXU inputs on the recurrent matmuls
    # (elementwise math and accumulation remain f32).
    diff = np.max(np.abs(np.asarray(out) - np.asarray(ref)))
    assert np.allclose(np.asarray(out), np.asarray(ref), rtol=1e-2, atol=1e-2), diff

    print("KERNEL_OK")
</pallas_src>

<mosaic_0001>
module attributes {stable_mosaic.version = 11 : i64} {
  func.func @dien_kernel(%arg0: i32, %arg1: memref<8x32xf32, #tpu.memory_space<vmem>>, %arg2: memref<8x8x32xf32, #tpu.memory_space<vmem>>, %arg3: memref<32x384xf32, #tpu.memory_space<vmem>>, %arg4: memref<128x384xf32, #tpu.memory_space<vmem>>, %arg5: memref<1x384xf32, #tpu.memory_space<vmem>>, %arg6: memref<1x128xf32, #tpu.memory_space<vmem>>, %arg7: memref<32x128xf32, #tpu.memory_space<vmem>>, %arg8: memref<1x128xf32, #tpu.memory_space<vmem>>, %arg9: memref<128x128xf32, #tpu.memory_space<vmem>>, %arg10: memref<1x128xf32, #tpu.memory_space<vmem>>, %arg11: memref<128x384xf32, #tpu.memory_space<vmem>>, %arg12: memref<128x256xf32, #tpu.memory_space<vmem>>, %arg13: memref<128x128xf32, #tpu.memory_space<vmem>>, %arg14: memref<1x384xf32, #tpu.memory_space<vmem>>, %arg15: memref<8x128xf32, #tpu.memory_space<vmem>>, %arg16: memref<64x512xf32, #tpu.memory_space<vmem>>, %arg17: memref<64x128xf32, #tpu.memory_space<vmem>>) attributes {dimension_semantics = [#tpu.dimension_semantics<parallel>], iteration_bounds = array<i64: 1>, scalar_prefetch = 0 : i64, scratch_operands = 2 : i64, tpu.core_type = #tpu.core_type<tc>, window_params = [{transform_indices = @transform_0, window_bounds = array<i64: 8, 32>}, {transform_indices = @transform_1, window_bounds = array<i64: 8, 8, 32>}, {pipeline_mode = #tpu.pipeline_mode<synchronous>, transform_indices = @transform_2, window_bounds = array<i64: 32, 384>}, {pipeline_mode = #tpu.pipeline_mode<synchronous>, transform_indices = @transform_3, window_bounds = array<i64: 128, 384>}, {pipeline_mode = #tpu.pipeline_mode<synchronous>, transform_indices = @transform_4, window_bounds = array<i64: 1, 384>}, {pipeline_mode = #tpu.pipeline_mode<synchronous>, transform_indices = @transform_5, window_bounds = array<i64: 1, 128>}, {pipeline_mode = #tpu.pipeline_mode<synchronous>, transform_indices = @transform_6, window_bounds = array<i64: 32, 128>}, {pipeline_mode = #tpu.pipeline_mode<synchronous>, transform_indices = @transform_7, window_bounds = array<i64: 1, 128>}, {pipeline_mode = #tpu.pipeline_mode<synchronous>, transform_indices = @transform_8, window_bounds = array<i64: 128, 128>}, {pipeline_mode = #tpu.pipeline_mode<synchronous>, transform_indices = @transform_9, window_bounds = array<i64: 1, 128>}, {pipeline_mode = #tpu.pipeline_mode<synchronous>, transform_indices = @transform_10, window_bounds = array<i64: 128, 384>}, {pipeline_mode = #tpu.pipeline_mode<synchronous>, transform_indices = @transform_11, window_bounds = array<i64: 128, 256>}, {pipeline_mode = #tpu.pipeline_mode<synchronous>, transform_indices = @transform_12, window_bounds = array<i64: 128, 128>}, {pipeline_mode = #tpu.pipeline_mode<synchronous>, transform_indices = @transform_13, window_bounds = array<i64: 1, 384>}, {transform_indices = @transform_14, window_bounds = array<i64: 8, 128>}]} {
    %c0 = arith.constant 0 : index
    %c0_0 = arith.constant 0 : index
    %c0_1 = arith.constant 0 : index
    %0 = vector.load %arg2[%c0, %c0_0, %c0_1] : memref<8x8x32xf32, #tpu.memory_space<vmem>>, vector<8x8x32xf32>
    %1 = vector.shape_cast %0 : vector<8x8x32xf32> to vector<64x32xf32>
    %c0_2 = arith.constant 0 : index
    %c0_3 = arith.constant 0 : index
    %2 = vector.load %arg3[%c0_2, %c0_3] : memref<32x384xf32, #tpu.memory_space<vmem>>, vector<32x384xf32>
    %cst = arith.constant dense<0.000000e+00> : vector<64x384xf32>
    %3 = tpu.matmul %1, %2, %cst {dimension_numbers = #tpu.dot_dimension_numbers<[1], [0], [0], [1], [0, 0, 1, 1], [], []>} : vector<64x32xf32>, vector<32x384xf32>, vector<64x384xf32> -> vector<64x384xf32>
    %c0_4 = arith.constant 0 : index
    %c0_5 = arith.constant 0 : index
    %4 = vector.load %arg5[%c0_4, %c0_5] : memref<1x384xf32, #tpu.memory_space<vmem>>, vector<1x384xf32>
    %5 = vector.broadcast %4 : vector<1x384xf32> to vector<64x384xf32>
    %6 = arith.addf %3, %5 : vector<64x384xf32>
    %c0_6 = arith.constant 0 : index
    %c0_7 = arith.constant 0 : index
    %7 = vector.load %arg16[%c0_6, %c0_7] : memref<64x512xf32, #tpu.memory_space<vmem>>, vector<64x384xf32>
    tpu.vector_store %arg16[%c0_6, %c0_7], %6 {strides = array<i32>} : memref<64x512xf32, #tpu.memory_space<vmem>>, vector<64x384xf32>,
    %c0_8 = arith.constant 0 : index
    %c0_9 = arith.constant 0 : index
    %8 = vector.load %arg4[%c0_8, %c0_9] : memref<128x384xf32, #tpu.memory_space<vmem>>, vector<128x384xf32>
    %9 = arith.truncf %8 : vector<128x384xf32> to vector<128x384xbf16>
    %c0_10 = arith.constant 0 : index
    %c0_11 = arith.constant 0 : index
    %10 = vector.load %arg6[%c0_10, %c0_11] : memref<1x128xf32, #tpu.memory_space<vmem>>, vector<1x128xf32>
    %11 = vector.shape_cast %10 : vector<1x128xf32> to vector<1x128xf32>
    %12 = vector.broadcast %11 : vector<1x128xf32> to vector<8x128xf32>
    %cst_12 = arith.constant 0.000000e+00 : f32
    %13 = vector.broadcast %cst_12 : f32 to vector<8x128xf32>
    %c0_i32 = arith.constant 0 : i32
    %c8_i32 = arith.constant 8 : i32
    %14 = arith.muli %c0_i32, %c8_i32 : i32
    %15 = tpu.assume_multiple %14, 8 : i32
    %16 = arith.index_cast %15 : i32 to index
    %c0_13 = arith.constant 0 : index
    %17 = vector.load %arg16[%16, %c0_13] : memref<64x512xf32, #tpu.memory_space<vmem>>, vector<8x384xf32>
    %18 = arith.truncf %13 : vector<8x128xf32> to vector<8x128xbf16>
    %cst_14 = arith.constant dense<0.000000e+00> : vector<8x384xf32>
    %19 = tpu.matmul %18, %9, %cst_14 {dimension_numbers = #tpu.dot_dimension_numbers<[1], [0], [0], [1], [0, 0, 1, 1], [], []>} : vector<8x128xbf16>, vector<128x384xbf16>, vector<8x384xf32> -> vector<8x384xf32>
    %20 = vector.extract_strided_slice %17 {offsets = [0, 0], sizes = [8, 128], strides = [1, 1]} : vector<8x384xf32> to vector<8x128xf32>
    %21 = vector.extract_strided_slice %19 {offsets = [0, 0], sizes = [8, 128], strides = [1, 1]} : vector<8x384xf32> to vector<8x128xf32>
    %22 = arith.addf %20, %21 : vector<8x128xf32>
    %23 = arith.negf %22 : vector<8x128xf32>
    %24 = math.exp %23 : vector<8x128xf32>
    %cst_15 = arith.constant 1.000000e+00 : f32
    %25 = vector.broadcast %cst_15 : f32 to vector<8x128xf32>
    %26 = arith.addf %25, %24 : vector<8x128xf32>
    %27 = arith.divf %25, %26 : vector<8x128xf32>
    %28 = vector.extract_strided_slice %17 {offsets = [0, 128], sizes = [8, 128], strides = [1, 1]} : vector<8x384xf32> to vector<8x128xf32>
    %29 = vector.extract_strided_slice %19 {offsets = [0, 128], sizes = [8, 128], strides = [1, 1]} : vector<8x384xf32> to vector<8x128xf32>
    %30 = arith.addf %28, %29 : vector<8x128xf32>
    %31 = arith.negf %30 : vector<8x128xf32>
    %32 = math.exp %31 : vector<8x128xf32>
    %cst_16 = arith.constant 1.000000e+00 : f32
    %33 = vector.broadcast %cst_16 : f32 to vector<8x128xf32>
    %34 = arith.addf %33, %32 : vector<8x128xf32>
    %35 = arith.divf %33, %34 : vector<8x128xf32>
    %36 = vector.extract_strided_slice %17 {offsets = [0, 256], sizes = [8, 128], strides = [1, 1]} : vector<8x384xf32> to vector<8x128xf32>
    %37 = vector.extract_strided_slice %19 {offsets = [0, 256], sizes = [8, 128], strides = [1, 1]} : vector<8x384xf32> to vector<8x128xf32>
    %38 = arith.addf %37, %12 : vector<8x128xf32>
    %39 = arith.mulf %27, %38 : vector<8x128xf32>
    %40 = arith.addf %36, %39 : vector<8x128xf32>
    %41 = math.tanh %40 : vector<8x128xf32>
    %cst_17 = arith.constant 1.000000e+00 : f32
    %42 = vector.broadcast %cst_17 : f32 to vector<8x128xf32>
    %43 = arith.subf %42, %35 : vector<8x128xf32>
    %44 = arith.mulf %43, %41 : vector<8x128xf32>
    %45 = arith.mulf %35, %13 : vector<8x128xf32>
    %46 = arith.addf %44, %45 : vector<8x128xf32>
    %47 = arith.index_cast %15 : i32 to index
    %c0_18 = arith.constant 0 : index
    %48 = vector.load %arg17[%47, %c0_18] : memref<64x128xf32, #tpu.memory_space<vmem>>, vector<8x128xf32>
    tpu.vector_store %arg17[%47, %c0_18], %46 {strides = array<i32>} : memref<64x128xf32, #tpu.memory_space<vmem>>, vector<8x128xf32>,
    %c1_i32 = arith.constant 1 : i32
    %c8_i32_19 = arith.constant 8 : i32
    %49 = arith.muli %c1_i32, %c8_i32_19 : i32
    %50 = tpu.assume_multiple %49, 8 : i32
    %51 = arith.index_cast %50 : i32 to index
    %c0_20 = arith.constant 0 : index
    %52 = vector.load %arg16[%51, %c0_20] : memref<64x512xf32, #tpu.memory_space<vmem>>, vector<8x384xf32>
    %53 = arith.truncf %46 : vector<8x128xf32> to vector<8x128xbf16>
    %cst_21 = arith.constant dense<0.000000e+00> : vector<8x384xf32>
    %54 = tpu.matmul %53, %9, %cst_21 {dimension_numbers = #tpu.dot_dimension_numbers<[1], [0], [0], [1], [0, 0, 1, 1], [], []>} : vector<8x128xbf16>, vector<128x384xbf16>, vector<8x384xf32> -> vector<8x384xf32>
    %55 = vector.extract_strided_slice %52 {offsets = [0, 0], sizes = [8, 128], strides = [1, 1]} : vector<8x384xf32> to vector<8x128xf32>
    %56 = vector.extract_strided_slice %54 {offsets = [0, 0], sizes = [8, 128], strides = [1, 1]} : vector<8x384xf32> to vector<8x128xf32>
    %57 = arith.addf %55, %56 : vector<8x128xf32>
    %58 = arith.negf %57 : vector<8x128xf32>
    %59 = math.exp %58 : vector<8x128xf32>
    %cst_22 = arith.constant 1.000000e+00 : f32
    %60 = vector.broadcast %cst_22 : f32 to vector<8x128xf32>
    %61 = arith.addf %60, %59 : vector<8x128xf32>
    %62 = arith.divf %60, %61 : vector<8x128xf32>
    %63 = vector.extract_strided_slice %52 {offsets = [0, 128], sizes = [8, 128], strides = [1, 1]} : vector<8x384xf32> to vector<8x128xf32>
    %64 = vector.extract_strided_slice %54 {offsets = [0, 128], sizes = [8, 128], strides = [1, 1]} : vector<8x384xf32> to vector<8x128xf32>
    %65 = arith.addf %63, %64 : vector<8x128xf32>
    %66 = arith.negf %65 : vector<8x128xf32>
    %67 = math.exp %66 : vector<8x128xf32>
    %cst_23 = arith.constant 1.000000e+00 : f32
    %68 = vector.broadcast %cst_23 : f32 to vector<8x128xf32>
    %69 = arith.addf %68, %67 : vector<8x128xf32>
    %70 = arith.divf %68, %69 : vector<8x128xf32>
    %71 = vector.extract_strided_slice %52 {offsets = [0, 256], sizes = [8, 128], strides = [1, 1]} : vector<8x384xf32> to vector<8x128xf32>
    %72 = vector.extract_strided_slice %54 {offsets = [0, 256], sizes = [8, 128], strides = [1, 1]} : vector<8x384xf32> to vector<8x128xf32>
    %73 = arith.addf %72, %12 : vector<8x128xf32>
    %74 = arith.mulf %62, %73 : vector<8x128xf32>
    %75 = arith.addf %71, %74 : vector<8x128xf32>
    %76 = math.tanh %75 : vector<8x128xf32>
    %cst_24 = arith.constant 1.000000e+00 : f32
    %77 = vector.broadcast %cst_24 : f32 to vector<8x128xf32>
    %78 = arith.subf %77, %70 : vector<8x128xf32>
    %79 = arith.mulf %78, %76 : vector<8x128xf32>
    %80 = arith.mulf %70, %46 : vector<8x128xf32>
    %81 = arith.addf %79, %80 : vector<8x128xf32>
    %82 = arith.index_cast %50 : i32 to index
    %c0_25 = arith.constant 0 : index
    %83 = vector.load %arg17[%82, %c0_25] : memref<64x128xf32, #tpu.memory_space<vmem>>, vector<8x128xf32>
    tpu.vector_store %arg17[%82, %c0_25], %81 {strides = array<i32>} : memref<64x128xf32, #tpu.memory_space<vmem>>, vector<8x128xf32>,
    %c2_i32 = arith.constant 2 : i32
    %c8_i32_26 = arith.constant 8 : i32
    %84 = arith.muli %c2_i32, %c8_i32_26 : i32
    %85 = tpu.assume_multiple %84, 8 : i32
    %86 = arith.index_cast %85 : i32 to index
    %c0_27 = arith.constant 0 : index
    %87 = vector.load %arg16[%86, %c0_27] : memref<64x512xf32, #tpu.memory_space<vmem>>, vector<8x384xf32>
    %88 = arith.truncf %81 : vector<8x128xf32> to vector<8x128xbf16>
    %cst_28 = arith.constant dense<0.000000e+00> : vector<8x384xf32>
    %89 = tpu.matmul %88, %9, %cst_28 {dimension_numbers = #tpu.dot_dimension_numbers<[1], [0], [0], [1], [0, 0, 1, 1], [], []>} : vector<8x128xbf16>, vector<128x384xbf16>, vector<8x384xf32> -> vector<8x384xf32>
    %90 = vector.extract_strided_slice %87 {offsets = [0, 0], sizes = [8, 128], strides = [1, 1]} : vector<8x384xf32> to vector<8x128xf32>
    %91 = vector.extract_strided_slice %89 {offsets = [0, 0], sizes = [8, 128], strides = [1, 1]} : vector<8x384xf32> to vector<8x128xf32>
    %92 = arith.addf %90, %91 : vector<8x128xf32>
    %93 = arith.negf %92 : vector<8x128xf32>
    %94 = math.exp %93 : vector<8x128xf32>
    %cst_29 = arith.constant 1.000000e+00 : f32
    %95 = vector.broadcast %cst_29 : f32 to vector<8x128xf32>
    %96 = arith.addf %95, %94 : vector<8x128xf32>
    %97 = arith.divf %95, %96 : vector<8x128xf32>
    %98 = vector.extract_strided_slice %87 {offsets = [0, 128], sizes = [8, 128], strides = [1, 1]} : vector<8x384xf32> to vector<8x128xf32>
    %99 = vector.extract_strided_slice %89 {offsets = [0, 128], sizes = [8, 128], strides = [1, 1]} : vector<8x384xf32> to vector<8x128xf32>
    %100 = arith.addf %98, %99 : vector<8x128xf32>
    %101 = arith.negf %100 : vector<8x128xf32>
    %102 = math.exp %101 : vector<8x128xf32>
    %cst_30 = arith.constant 1.000000e+00 : f32
    %103 = vector.broadcast %cst_30 : f32 to vector<8x128xf32>
    %104 = arith.addf %103, %102 : vector<8x128xf32>
    %105 = arith.divf %103, %104 : vector<8x128xf32>
    %106 = vector.extract_strided_slice %87 {offsets = [0, 256], sizes = [8, 128], strides = [1, 1]} : vector<8x384xf32> to vector<8x128xf32>
    %107 = vector.extract_strided_slice %89 {offsets = [0, 256], sizes = [8, 128], strides = [1, 1]} : vector<8x384xf32> to vector<8x128xf32>
    %108 = arith.addf %107, %12 : vector<8x128xf32>
    %109 = arith.mulf %97, %108 : vector<8x128xf32>
    %110 = arith.addf %106, %109 : vector<8x128xf32>
    %111 = math.tanh %110 : vector<8x128xf32>
    %cst_31 = arith.constant 1.000000e+00 : f32
    %112 = vector.broadcast %cst_31 : f32 to vector<8x128xf32>
    %113 = arith.subf %112, %105 : vector<8x128xf32>
    %114 = arith.mulf %113, %111 : vector<8x128xf32>
    %115 = arith.mulf %105, %81 : vector<8x128xf32>
    %116 = arith.addf %114, %115 : vector<8x128xf32>
    %117 = arith.index_cast %85 : i32 to index
    %c0_32 = arith.constant 0 : index
    %118 = vector.load %arg17[%117, %c0_32] : memref<64x128xf32, #tpu.memory_space<vmem>>, vector<8x128xf32>
    tpu.vector_store %arg17[%117, %c0_32], %116 {strides = array<i32>} : memref<64x128xf32, #tpu.memory_space<vmem>>, vector<8x128xf32>,
    %c3_i32 = arith.constant 3 : i32
    %c8_i32_33 = arith.constant 8 : i32
    %119 = arith.muli %c3_i32, %c8_i32_33 : i32
    %120 = tpu.assume_multiple %119, 8 : i32
    %121 = arith.index_cast %120 : i32 to index
    %c0_34 = arith.constant 0 : index
    %122 = vector.load %arg16[%121, %c0_34] : memref<64x512xf32, #tpu.memory_space<vmem>>, vector<8x384xf32>
    %123 = arith.truncf %116 : vector<8x128xf32> to vector<8x128xbf16>
    %cst_35 = arith.constant dense<0.000000e+00> : vector<8x384xf32>
    %124 = tpu.matmul %123, %9, %cst_35 {dimension_numbers = #tpu.dot_dimension_numbers<[1], [0], [0], [1], [0, 0, 1, 1], [], []>} : vector<8x128xbf16>, vector<128x384xbf16>, vector<8x384xf32> -> vector<8x384xf32>
    %125 = vector.extract_strided_slice %122 {offsets = [0, 0], sizes = [8, 128], strides = [1, 1]} : vector<8x384xf32> to vector<8x128xf32>
    %126 = vector.extract_strided_slice %124 {offsets = [0, 0], sizes = [8, 128], strides = [1, 1]} : vector<8x384xf32> to vector<8x128xf32>
    %127 = arith.addf %125, %126 : vector<8x128xf32>
    %128 = arith.negf %127 : vector<8x128xf32>
    %129 = math.exp %128 : vector<8x128xf32>
    %cst_36 = arith.constant 1.000000e+00 : f32
    %130 = vector.broadcast %cst_36 : f32 to vector<8x128xf32>
    %131 = arith.addf %130, %129 : vector<8x128xf32>
    %132 = arith.divf %130, %131 : vector<8x128xf32>
    %133 = vector.extract_strided_slice %122 {offsets = [0, 128], sizes = [8, 128], strides = [1, 1]} : vector<8x384xf32> to vector<8x128xf32>
    %134 = vector.extract_strided_slice %124 {offsets = [0, 128], sizes = [8, 128], strides = [1, 1]} : vector<8x384xf32> to vector<8x128xf32>
    %135 = arith.addf %133, %134 : vector<8x128xf32>
    %136 = arith.negf %135 : vector<8x128xf32>
    %137 = math.exp %136 : vector<8x128xf32>
    %cst_37 = arith.constant 1.000000e+00 : f32
    %138 = vector.broadcast %cst_37 : f32 to vector<8x128xf32>
    %139 = arith.addf %138, %137 : vector<8x128xf32>
    %140 = arith.divf %138, %139 : vector<8x128xf32>
    %141 = vector.extract_strided_slice %122 {offsets = [0, 256], sizes = [8, 128], strides = [1, 1]} : vector<8x384xf32> to vector<8x128xf32>
    %142 = vector.extract_strided_slice %124 {offsets = [0, 256], sizes = [8, 128], strides = [1, 1]} : vector<8x384xf32> to vector<8x128xf32>
    %143 = arith.addf %142, %12 : vector<8x128xf32>
    %144 = arith.mulf %132, %143 : vector<8x128xf32>
    %145 = arith.addf %141, %144 : vector<8x128xf32>
    %146 = math.tanh %145 : vector<8x128xf32>
    %cst_38 = arith.constant 1.000000e+00 : f32
    %147 = vector.broadcast %cst_38 : f32 to vector<8x128xf32>
    %148 = arith.subf %147, %140 : vector<8x128xf32>
    %149 = arith.mulf %148, %146 : vector<8x128xf32>
    %150 = arith.mulf %140, %116 : vector<8x128xf32>
    %151 = arith.addf %149, %150 : vector<8x128xf32>
    %152 = arith.index_cast %120 : i32 to index
    %c0_39 = arith.constant 0 : index
    %153 = vector.load %arg17[%152, %c0_39] : memref<64x128xf32, #tpu.memory_space<vmem>>, vector<8x128xf32>
    tpu.vector_store %arg17[%152, %c0_39], %151 {strides = array<i32>} : memref<64x128xf32, #tpu.memory_space<vmem>>, vector<8x128xf32>,
    %c4_i32 = arith.constant 4 : i32
    %c8_i32_40 = arith.constant 8 : i32
    %154 = arith.muli %c4_i32, %c8_i32_40 : i32
    %155 = tpu.assume_multiple %154, 8 : i32
    %156 = arith.index_cast %155 : i32 to index
    %c0_41 = arith.constant 0 : index
    %157 = vector.load %arg16[%156, %c0_41] : memref<64x512xf32, #tpu.memory_space<vmem>>, vector<8x384xf32>
    %158 = arith.truncf %151 : vector<8x128xf32> to vector<8x128xbf16>
    %cst_42 = arith.constant dense<0.000000e+00> : vector<8x384xf32>
    %159 = tpu.matmul %158, %9, %cst_42 {dimension_numbers = #tpu.dot_dimension_numbers<[1], [0], [0], [1], [0, 0, 1, 1], [], []>} : vector<8x128xbf16>, vector<128x384xbf16>, vector<8x384xf32> -> vector<8x384xf32>
    %160 = vector.extract_strided_slice %157 {offsets = [0, 0], sizes = [8, 128], strides = [1, 1]} : vector<8x384xf32> to vector<8x128xf32>
    %161 = vector.extract_strided_slice %159 {offsets = [0, 0], sizes = [8, 128], strides = [1, 1]} : vector<8x384xf32> to vector<8x128xf32>
    %162 = arith.addf %160, %161 : vector<8x128xf32>
    %163 = arith.negf %162 : vector<8x128xf32>
    %164 = math.exp %163 : vector<8x128xf32>
    %cst_43 = arith.constant 1.000000e+00 : f32
    %165 = vector.broadcast %cst_43 : f32 to vector<8x128xf32>
    %166 = arith.addf %165, %164 : vector<8x128xf32>
    %167 = arith.divf %165, %166 : vector<8x128xf32>
    %168 = vector.extract_strided_slice %157 {offsets = [0, 128], sizes = [8, 128], strides = [1, 1]} : vector<8x384xf32> to vector<8x128xf32>
    %169 = vector.extract_strided_slice %159 {offsets = [0, 128], sizes = [8, 128], strides = [1, 1]} : vector<8x384xf32> to vector<8x128xf32>
    %170 = arith.addf %168, %169 : vector<8x128xf32>
    %171 = arith.negf %170 : vector<8x128xf32>
    %172 = math.exp %171 : vector<8x128xf32>
    %cst_44 = arith.constant 1.000000e+00 : f32
    %173 = vector.broadcast %cst_44 : f32 to vector<8x128xf32>
    %174 = arith.addf %173, %172 : vector<8x128xf32>
    %175 = arith.divf %173, %174 : vector<8x128xf32>
    %176 = vector.extract_strided_slice %157 {offsets = [0, 256], sizes = [8, 128], strides = [1, 1]} : vector<8x384xf32> to vector<8x128xf32>
    %177 = vector.extract_strided_slice %159 {offsets = [0, 256], sizes = [8, 128], strides = [1, 1]} : vector<8x384xf32> to vector<8x128xf32>
    %178 = arith.addf %177, %12 : vector<8x128xf32>
    %179 = arith.mulf %167, %178 : vector<8x128xf32>
    %180 = arith.addf %176, %179 : vector<8x128xf32>
    %181 = math.tanh %180 : vector<8x128xf32>
    %cst_45 = arith.constant 1.000000e+00 : f32
    %182 = vector.broadcast %cst_45 : f32 to vector<8x128xf32>
    %183 = arith.subf %182, %175 : vector<8x128xf32>
    %184 = arith.mulf %183, %181 : vector<8x128xf32>
    %185 = arith.mulf %175, %151 : vector<8x128xf32>
    %186 = arith.addf %184, %185 : vector<8x128xf32>
    %187 = arith.index_cast %155 : i32 to index
    %c0_46 = arith.constant 0 : index
    %188 = vector.load %arg17[%187, %c0_46] : memref<64x128xf32, #tpu.memory_space<vmem>>, vector<8x128xf32>
    tpu.vector_store %arg17[%187, %c0_46], %186 {strides = array<i32>} : memref<64x128xf32, #tpu.memory_space<vmem>>, vector<8x128xf32>,
    %c5_i32 = arith.constant 5 : i32
    %c8_i32_47 = arith.constant 8 : i32
    %189 = arith.muli %c5_i32, %c8_i32_47 : i32
    %190 = tpu.assume_multiple %189, 8 : i32
    %191 = arith.index_cast %190 : i32 to index
    %c0_48 = arith.constant 0 : index
    %192 = vector.load %arg16[%191, %c0_48] : memref<64x512xf32, #tpu.memory_space<vmem>>, vector<8x384xf32>
    %193 = arith.truncf %186 : vector<8x128xf32> to vector<8x128xbf16>
    %cst_49 = arith.constant dense<0.000000e+00> : vector<8x384xf32>
    %194 = tpu.matmul %193, %9, %cst_49 {dimension_numbers = #tpu.dot_dimension_numbers<[1], [0], [0], [1], [0, 0, 1, 1], [], []>} : vector<8x128xbf16>, vector<128x384xbf16>, vector<8x384xf32> -> vector<8x384xf32>
    %195 = vector.extract_strided_slice %192 {offsets = [0, 0], sizes = [8, 128], strides = [1, 1]} : vector<8x384xf32> to vector<8x128xf32>
    %196 = vector.extract_strided_slice %194 {offsets = [0, 0], sizes = [8, 128], strides = [1, 1]} : vector<8x384xf32> to vector<8x128xf32>
    %197 = arith.addf %195, %196 : vector<8x128xf32>
    %198 = arith.negf %197 : vector<8x128xf32>
    %199 = math.exp %198 : vector<8x128xf32>
    %cst_50 = arith.constant 1.000000e+00 : f32
    %200 = vector.broadcast %cst_50 : f32 to vector<8x128xf32>
    %201 = arith.addf %200, %199 : vector<8x128xf32>
    %202 = arith.divf %200, %201 : vector<8x128xf32>
    %203 = vector.extract_strided_slice %192 {offsets = [0, 128], sizes = [8, 128], strides = [1, 1]} : vector<8x384xf32> to vector<8x128xf32>
    %204 = vector.extract_strided_slice %194 {offsets = [0, 128], sizes = [8, 128], strides = [1, 1]} : vector<8x384xf32> to vector<8x128xf32>
    %205 = arith.addf %203, %204 : vector<8x128xf32>
    %206 = arith.negf %205 : vector<8x128xf32>
    %207 = math.exp %206 : vector<8x128xf32>
    %cst_51 = arith.constant 1.000000e+00 : f32
    %208 = vector.broadcast %cst_51 : f32 to vector<8x128xf32>
    %209 = arith.addf %208, %207 : vector<8x128xf32>
    %210 = arith.divf %208, %209 : vector<8x128xf32>
    %211 = vector.extract_strided_slice %192 {offsets = [0, 256], sizes = [8, 128], strides = [1, 1]} : vector<8x384xf32> to vector<8x128xf32>
    %212 = vector.extract_strided_slice %194 {offsets = [0, 256], sizes = [8, 128], strides = [1, 1]} : vector<8x384xf32> to vector<8x128xf32>
    %213 = arith.addf %212, %12 : vector<8x128xf32>
    %214 = arith.mulf %202, %213 : vector<8x128xf32>
    %215 = arith.addf %211, %214 : vector<8x128xf32>
    %216 = math.tanh %215 : vector<8x128xf32>
    %cst_52 = arith.constant 1.000000e+00 : f32
    %217 = vector.broadcast %cst_52 : f32 to vector<8x128xf32>
    %218 = arith.subf %217, %210 : vector<8x128xf32>
    %219 = arith.mulf %218, %216 : vector<8x128xf32>
    %220 = arith.mulf %210, %186 : vector<8x128xf32>
    %221 = arith.addf %219, %220 : vector<8x128xf32>
    %222 = arith.index_cast %190 : i32 to index
    %c0_53 = arith.constant 0 : index
    %223 = vector.load %arg17[%222, %c0_53] : memref<64x128xf32, #tpu.memory_space<vmem>>, vector<8x128xf32>
    tpu.vector_store %arg17[%222, %c0_53], %221 {strides = array<i32>} : memref<64x128xf32, #tpu.memory_space<vmem>>, vector<8x128xf32>,
    %c6_i32 = arith.constant 6 : i32
    %c8_i32_54 = arith.constant 8 : i32
    %224 = arith.muli %c6_i32, %c8_i32_54 : i32
    %225 = tpu.assume_multiple %224, 8 : i32
    %226 = arith.index_cast %225 : i32 to index
    %c0_55 = arith.constant 0 : index
    %227 = vector.load %arg16[%226, %c0_55] : memref<64x512xf32, #tpu.memory_space<vmem>>, vector<8x384xf32>
    %228 = arith.truncf %221 : vector<8x128xf32> to vector<8x128xbf16>
    %cst_56 = arith.constant dense<0.000000e+00> : vector<8x384xf32>
    %229 = tpu.matmul %228, %9, %cst_56 {dimension_numbers = #tpu.dot_dimension_numbers<[1], [0], [0], [1], [0, 0, 1, 1], [], []>} : vector<8x128xbf16>, vector<128x384xbf16>, vector<8x384xf32> -> vector<8x384xf32>
    %230 = vector.extract_strided_slice %227 {offsets = [0, 0], sizes = [8, 128], strides = [1, 1]} : vector<8x384xf32> to vector<8x128xf32>
    %231 = vector.extract_strided_slice %229 {offsets = [0, 0], sizes = [8, 128], strides = [1, 1]} : vector<8x384xf32> to vector<8x128xf32>
    %232 = arith.addf %230, %231 : vector<8x128xf32>
    %233 = arith.negf %232 : vector<8x128xf32>
    %234 = math.exp %233 : vector<8x128xf32>
    %cst_57 = arith.constant 1.000000e+00 : f32
    %235 = vector.broadcast %cst_57 : f32 to vector<8x128xf32>
    %236 = arith.addf %235, %234 : vector<8x128xf32>
    %237 = arith.divf %235, %236 : vector<8x128xf32>
    %238 = vector.extract_strided_slice %227 {offsets = [0, 128], sizes = [8, 128], strides = [1, 1]} : vector<8x384xf32> to vector<8x128xf32>
    %239 = vector.extract_strided_slice %229 {offsets = [0, 128], sizes = [8, 128], strides = [1, 1]} : vector<8x384xf32> to vector<8x128xf32>
    %240 = arith.addf %238, %239 : vector<8x128xf32>
    %241 = arith.negf %240 : vector<8x128xf32>
    %242 = math.exp %241 : vector<8x128xf32>
    %cst_58 = arith.constant 1.000000e+00 : f32
    %243 = vector.broadcast %cst_58 : f32 to vector<8x128xf32>
    %244 = arith.addf %243, %242 : vector<8x128xf32>
    %245 = arith.divf %243, %244 : vector<8x128xf32>
    %246 = vector.extract_strided_slice %227 {offsets = [0, 256], sizes = [8, 128], strides = [1, 1]} : vector<8x384xf32> to vector<8x128xf32>
    %247 = vector.extract_strided_slice %229 {offsets = [0, 256], sizes = [8, 128], strides = [1, 1]} : vector<8x384xf32> to vector<8x128xf32>
    %248 = arith.addf %247, %12 : vector<8x128xf32>
    %249 = arith.mulf %237, %248 : vector<8x128xf32>
    %250 = arith.addf %246, %249 : vector<8x128xf32>
    %251 = math.tanh %250 : vector<8x128xf32>
    %cst_59 = arith.constant 1.000000e+00 : f32
    %252 = vector.broadcast %cst_59 : f32 to vector<8x128xf32>
    %253 = arith.subf %252, %245 : vector<8x128xf32>
    %254 = arith.mulf %253, %251 : vector<8x128xf32>
    %255 = arith.mulf %245, %221 : vector<8x128xf32>
    %256 = arith.addf %254, %255 : vector<8x128xf32>
    %257 = arith.index_cast %225 : i32 to index
    %c0_60 = arith.constant 0 : index
    %258 = vector.load %arg17[%257, %c0_60] : memref<64x128xf32, #tpu.memory_space<vmem>>, vector<8x128xf32>
    tpu.vector_store %arg17[%257, %c0_60], %256 {strides = array<i32>} : memref<64x128xf32, #tpu.memory_space<vmem>>, vector<8x128xf32>,
    %c7_i32 = arith.constant 7 : i32
    %c8_i32_61 = arith.constant 8 : i32
    %259 = arith.muli %c7_i32, %c8_i32_61 : i32
    %260 = tpu.assume_multiple %259, 8 : i32
    %261 = arith.index_cast %260 : i32 to index
    %c0_62 = arith.constant 0 : index
    %262 = vector.load %arg16[%261, %c0_62] : memref<64x512xf32, #tpu.memory_space<vmem>>, vector<8x384xf32>
    %263 = arith.truncf %256 : vector<8x128xf32> to vector<8x128xbf16>
    %cst_63 = arith.constant dense<0.000000e+00> : vector<8x384xf32>
    %264 = tpu.matmul %263, %9, %cst_63 {dimension_numbers = #tpu.dot_dimension_numbers<[1], [0], [0], [1], [0, 0, 1, 1], [], []>} : vector<8x128xbf16>, vector<128x384xbf16>, vector<8x384xf32> -> vector<8x384xf32>
    %265 = vector.extract_strided_slice %262 {offsets = [0, 0], sizes = [8, 128], strides = [1, 1]} : vector<8x384xf32> to vector<8x128xf32>
    %266 = vector.extract_strided_slice %264 {offsets = [0, 0], sizes = [8, 128], strides = [1, 1]} : vector<8x384xf32> to vector<8x128xf32>
    %267 = arith.addf %265, %266 : vector<8x128xf32>
    %268 = arith.negf %267 : vector<8x128xf32>
    %269 = math.exp %268 : vector<8x128xf32>
    %cst_64 = arith.constant 1.000000e+00 : f32
    %270 = vector.broadcast %cst_64 : f32 to vector<8x128xf32>
    %271 = arith.addf %270, %269 : vector<8x128xf32>
    %272 = arith.divf %270, %271 : vector<8x128xf32>
    %273 = vector.extract_strided_slice %262 {offsets = [0, 128], sizes = [8, 128], strides = [1, 1]} : vector<8x384xf32> to vector<8x128xf32>
    %274 = vector.extract_strided_slice %264 {offsets = [0, 128], sizes = [8, 128], strides = [1, 1]} : vector<8x384xf32> to vector<8x128xf32>
    %275 = arith.addf %273, %274 : vector<8x128xf32>
    %276 = arith.negf %275 : vector<8x128xf32>
    %277 = math.exp %276 : vector<8x128xf32>
    %cst_65 = arith.constant 1.000000e+00 : f32
    %278 = vector.broadcast %cst_65 : f32 to vector<8x128xf32>
    %279 = arith.addf %278, %277 : vector<8x128xf32>
    %280 = arith.divf %278, %279 : vector<8x128xf32>
    %281 = vector.extract_strided_slice %262 {offsets = [0, 256], sizes = [8, 128], strides = [1, 1]} : vector<8x384xf32> to vector<8x128xf32>
    %282 = vector.extract_strided_slice %264 {offsets = [0, 256], sizes = [8, 128], strides = [1, 1]} : vector<8x384xf32> to vector<8x128xf32>
    %283 = arith.addf %282, %12 : vector<8x128xf32>
    %284 = arith.mulf %272, %283 : vector<8x128xf32>
    %285 = arith.addf %281, %284 : vector<8x128xf32>
    %286 = math.tanh %285 : vector<8x128xf32>
    %cst_66 = arith.constant 1.000000e+00 : f32
    %287 = vector.broadcast %cst_66 : f32 to vector<8x128xf32>
    %288 = arith.subf %287, %280 : vector<8x128xf32>
    %289 = arith.mulf %288, %286 : vector<8x128xf32>
    %290 = arith.mulf %280, %256 : vector<8x128xf32>
    %291 = arith.addf %289, %290 : vector<8x128xf32>
    %292 = arith.index_cast %260 : i32 to index
    %c0_67 = arith.constant 0 : index
    %293 = vector.load %arg17[%292, %c0_67] : memref<64x128xf32, #tpu.memory_space<vmem>>, vector<8x128xf32>
    tpu.vector_store %arg17[%292, %c0_67], %291 {strides = array<i32>} : memref<64x128xf32, #tpu.memory_space<vmem>>, vector<8x128xf32>,
    %c8_i32_68 = arith.constant 8 : i32
    %c0_69 = arith.constant 0 : index
    %c0_70 = arith.constant 0 : index
    %294 = vector.load %arg17[%c0_69, %c0_70] : memref<64x128xf32, #tpu.memory_space<vmem>>, vector<64x128xf32>
    %c0_71 = arith.constant 0 : index
    %c0_72 = arith.constant 0 : index
    %295 = vector.load %arg11[%c0_71, %c0_72] : memref<128x384xf32, #tpu.memory_space<vmem>>, vector<128x384xf32>
    %cst_73 = arith.constant dense<0.000000e+00> : vector<64x384xf32>
    %296 = tpu.matmul %294, %295, %cst_73 {dimension_numbers = #tpu.dot_dimension_numbers<[1], [0], [0], [1], [0, 0, 1, 1], [], []>} : vector<64x128xf32>, vector<128x384xf32>, vector<64x384xf32> -> vector<64x384xf32>
    %c0_74 = arith.constant 0 : index
    %c0_75 = arith.constant 0 : index
    %297 = vector.load %arg14[%c0_74, %c0_75] : memref<1x384xf32, #tpu.memory_space<vmem>>, vector<1x384xf32>
    %298 = vector.broadcast %297 : vector<1x384xf32> to vector<64x384xf32>
    %299 = arith.addf %296, %298 : vector<64x384xf32>
    %c0_76 = arith.constant 0 : index
    %c0_77 = arith.constant 0 : index
    %300 = vector.load %arg16[%c0_76, %c0_77] : memref<64x512xf32, #tpu.memory_space<vmem>>, vector<64x384xf32>
    tpu.vector_store %arg16[%c0_76, %c0_77], %299 {strides = array<i32>} : memref<64x512xf32, #tpu.memory_space<vmem>>, vector<64x384xf32>,
    %c0_78 = arith.constant 0 : index
    %c0_79 = arith.constant 0 : index
    %301 = vector.load %arg1[%c0_78, %c0_79] : memref<8x32xf32, #tpu.memory_space<vmem>>, vector<8x32xf32>
    %c0_80 = arith.constant 0 : index
    %c0_81 = arith.constant 0 : index
    %302 = vector.load %arg7[%c0_80, %c0_81] : memref<32x128xf32, #tpu.memory_space<vmem>>, vector<32x128xf32>
    %cst_82 = arith.constant dense<0.000000e+00> : vector<8x128xf32>
    %303 = tpu.matmul %301, %302, %cst_82 {dimension_numbers = #tpu.dot_dimension_numbers<[1], [0], [0], [1], [0, 0, 1, 1], [], []>} : vector<8x32xf32>, vector<32x128xf32>, vector<8x128xf32> -> vector<8x128xf32>
    %c0_83 = arith.constant 0 : index
    %c0_84 = arith.constant 0 : index
    %304 = vector.load %arg8[%c0_83, %c0_84] : memref<1x128xf32, #tpu.memory_space<vmem>>, vector<1x128xf32>
    %305 = vector.broadcast %304 : vector<1x128xf32> to vector<8x128xf32>
    %306 = arith.addf %303, %305 : vector<8x128xf32>
    %c0_85 = arith.constant 0 : index
    %c0_86 = arith.constant 0 : index
    %307 = vector.load %arg9[%c0_85, %c0_86] : memref<128x128xf32, #tpu.memory_space<vmem>>, vector<128x128xf32>
    %cst_87 = arith.constant dense<0.000000e+00> : vector<8x128xf32>
    %308 = tpu.matmul %306, %307, %cst_87 {dimension_numbers = #tpu.dot_dimension_numbers<[1], [0], [0], [1], [0, 0, 1, 1], [], []>} : vector<8x128xf32>, vector<128x128xf32>, vector<8x128xf32> -> vector<8x128xf32>
    %c0_88 = arith.constant 0 : index
    %c0_89 = arith.constant 0 : index
    %309 = vector.load %arg10[%c0_88, %c0_89] : memref<1x128xf32, #tpu.memory_space<vmem>>, vector<1x128xf32>
    %310 = vector.broadcast %309 : vector<1x128xf32> to vector<8x128xf32>
    %311 = arith.mulf %306, %310 : vector<8x128xf32>
    %cst_90 = arith.constant dense<0.000000e+00> : vector<8xf32>
    %312 = vector.multi_reduction <add>, %311, %cst_90 [1] : vector<8x128xf32> to vector<8xf32>
    %313 = vector.shape_cast %312 : vector<8xf32> to vector<8x1xf32>
    %314 = vector.shape_cast %294 : vector<64x128xf32> to vector<8x8x128xf32>
    %315 = vector.shape_cast %308 : vector<8x128xf32> to vector<1x8x128xf32>
    %316 = vector.broadcast %315 : vector<1x8x128xf32> to vector<8x8x128xf32>
    %317 = arith.mulf %314, %316 : vector<8x8x128xf32>
    %cst_91 = arith.constant dense<0.000000e+00> : vector<8x8xf32>
    %318 = vector.multi_reduction <add>, %317, %cst_91 [2] : vector<8x8x128xf32> to vector<8x8xf32>
    %319 = vector.shape_cast %318 : vector<8x8xf32> to vector<8x8x1xf32>
    %320 = vector.shape_cast %313 : vector<8x1xf32> to vector<1x8x1xf32>
    %321 = vector.broadcast %320 : vector<1x8x1xf32> to vector<8x8x1xf32>
    %322 = arith.addf %319, %321 : vector<8x8x1xf32>
    %cst_92 = arith.constant 0.176776692 : f32
    %323 = vector.broadcast %cst_92 : f32 to vector<8x8x1xf32>
    %324 = arith.mulf %322, %323 : vector<8x8x1xf32>
    %325 = vector.shape_cast %324 : vector<8x8x1xf32> to vector<8x8x1xf32>
    %326 = vector.broadcast %325 : vector<8x8x1xf32> to vector<8x8x128xf32>
    %327 = vector.shape_cast %326 : vector<8x8x128xf32> to vector<64x128xf32>
    %c0_93 = arith.constant 0 : index
    %c384 = arith.constant 384 : index
    %328 = vector.load %arg16[%c0_93, %c384] : memref<64x512xf32, #tpu.memory_space<vmem>>, vector<64x128xf32>
    tpu.vector_store %arg16[%c0_93, %c384], %327 {strides = array<i32>} : memref<64x512xf32, #tpu.memory_space<vmem>>, vector<64x128xf32>,
    %c0_94 = arith.constant 0 : index
    %c0_95 = arith.constant 0 : index
    %329 = vector.load %arg12[%c0_94, %c0_95] : memref<128x256xf32, #tpu.memory_space<vmem>>, vector<128x256xf32>
    %330 = arith.truncf %329 : vector<128x256xf32> to vector<128x256xbf16>
    %c0_96 = arith.constant 0 : index
    %c0_97 = arith.constant 0 : index
    %331 = vector.load %arg13[%c0_96, %c0_97] : memref<128x128xf32, #tpu.memory_space<vmem>>, vector<128x128xf32>
    %332 = arith.truncf %331 : vector<128x128xf32> to vector<128x128xbf16>
    %c0_98 = arith.constant 0 : index
    %c0_99 = arith.constant 0 : index
    %333 = vector.load %arg17[%c0_98, %c0_99] : memref<64x128xf32, #tpu.memory_space<vmem>>, vector<8x128xf32>
    %c0_i32_100 = arith.constant 0 : i32
    %c8_i32_101 = arith.constant 8 : i32
    %334 = arith.muli %c0_i32_100, %c8_i32_101 : i32
    %335 = tpu.assume_multiple %334, 8 : i32
    %336 = arith.index_cast %335 : i32 to index
    %c0_102 = arith.constant 0 : index
    %337 = vector.load %arg16[%336, %c0_102] : memref<64x512xf32, #tpu.memory_space<vmem>>, vector<8x512xf32>
    %338 = arith.truncf %333 : vector<8x128xf32> to vector<8x128xbf16>
    %cst_103 = arith.constant dense<0.000000e+00> : vector<8x256xf32>
    %339 = tpu.matmul %338, %330, %cst_103 {dimension_numbers = #tpu.dot_dimension_numbers<[1], [0], [0], [1], [0, 0, 1, 1], [], []>} : vector<8x128xbf16>, vector<128x256xbf16>, vector<8x256xf32> -> vector<8x256xf32>
    %340 = vector.extract_strided_slice %337 {offsets = [0, 0], sizes = [8, 128], strides = [1, 1]} : vector<8x512xf32> to vector<8x128xf32>
    %341 = vector.extract_strided_slice %339 {offsets = [0, 0], sizes = [8, 128], strides = [1, 1]} : vector<8x256xf32> to vector<8x128xf32>
    %342 = arith.addf %340, %341 : vector<8x128xf32>
    %343 = arith.negf %342 : vector<8x128xf32>
    %344 = math.exp %343 : vector<8x128xf32>
    %cst_104 = arith.constant 1.000000e+00 : f32
    %345 = vector.broadcast %cst_104 : f32 to vector<8x128xf32>
    %346 = arith.addf %345, %344 : vector<8x128xf32>
    %347 = arith.divf %345, %346 : vector<8x128xf32>
    %348 = vector.extract_strided_slice %337 {offsets = [0, 128], sizes = [8, 128], strides = [1, 1]} : vector<8x512xf32> to vector<8x128xf32>
    %349 = vector.extract_strided_slice %339 {offsets = [0, 128], sizes = [8, 128], strides = [1, 1]} : vector<8x256xf32> to vector<8x128xf32>
    %350 = arith.addf %348, %349 : vector<8x128xf32>
    %351 = arith.negf %350 : vector<8x128xf32>
    %352 = math.exp %351 : vector<8x128xf32>
    %cst_105 = arith.constant 1.000000e+00 : f32
    %353 = vector.broadcast %cst_105 : f32 to vector<8x128xf32>
    %354 = arith.addf %353, %352 : vector<8x128xf32>
    %355 = arith.divf %353, %354 : vector<8x128xf32>
    %356 = vector.extract_strided_slice %337 {offsets = [0, 256], sizes = [8, 128], strides = [1, 1]} : vector<8x512xf32> to vector<8x128xf32>
    %357 = arith.mulf %355, %333 : vector<8x128xf32>
    %358 = arith.truncf %357 : vector<8x128xf32> to vector<8x128xbf16>
    %cst_106 = arith.constant dense<0.000000e+00> : vector<8x128xf32>
    %359 = tpu.matmul %358, %332, %cst_106 {dimension_numbers = #tpu.dot_dimension_numbers<[1], [0], [0], [1], [0, 0, 1, 1], [], []>} : vector<8x128xbf16>, vector<128x128xbf16>, vector<8x128xf32> -> vector<8x128xf32>
    %360 = arith.addf %356, %359 : vector<8x128xf32>
    %361 = math.tanh %360 : vector<8x128xf32>
    %362 = vector.extract_strided_slice %337 {offsets = [0, 384], sizes = [8, 128], strides = [1, 1]} : vector<8x512xf32> to vector<8x128xf32>
    %363 = arith.mulf %347, %362 : vector<8x128xf32>
    %cst_107 = arith.constant 1.000000e+00 : f32
    %364 = vector.broadcast %cst_107 : f32 to vector<8x128xf32>
    %365 = arith.subf %364, %363 : vector<8x128xf32>
    %366 = arith.mulf %365, %333 : vector<8x128xf32>
    %367 = arith.mulf %363, %361 : vector<8x128xf32>
    %368 = arith.addf %366, %367 : vector<8x128xf32>
    %c1_i32_108 = arith.constant 1 : i32
    %c8_i32_109 = arith.constant 8 : i32
    %369 = arith.muli %c1_i32_108, %c8_i32_109 : i32
    %370 = tpu.assume_multiple %369, 8 : i32
    %371 = arith.index_cast %370 : i32 to index
    %c0_110 = arith.constant 0 : index
    %372 = vector.load %arg16[%371, %c0_110] : memref<64x512xf32, #tpu.memory_space<vmem>>, vector<8x512xf32>
    %373 = arith.truncf %368 : vector<8x128xf32> to vector<8x128xbf16>
    %cst_111 = arith.constant dense<0.000000e+00> : vector<8x256xf32>
    %374 = tpu.matmul %373, %330, %cst_111 {dimension_numbers = #tpu.dot_dimension_numbers<[1], [0], [0], [1], [0, 0, 1, 1], [], []>} : vector<8x128xbf16>, vector<128x256xbf16>, vector<8x256xf32> -> vector<8x256xf32>
    %375 = vector.extract_strided_slice %372 {offsets = [0, 0], sizes = [8, 128], strides = [1, 1]} : vector<8x512xf32> to vector<8x128xf32>
    %376 = vector.extract_strided_slice %374 {offsets = [0, 0], sizes = [8, 128], strides = [1, 1]} : vector<8x256xf32> to vector<8x128xf32>
    %377 = arith.addf %375, %376 : vector<8x128xf32>
    %378 = arith.negf %377 : vector<8x128xf32>
    %379 = math.exp %378 : vector<8x128xf32>
    %cst_112 = arith.constant 1.000000e+00 : f32
    %380 = vector.broadcast %cst_112 : f32 to vector<8x128xf32>
    %381 = arith.addf %380, %379 : vector<8x128xf32>
    %382 = arith.divf %380, %381 : vector<8x128xf32>
    %383 = vector.extract_strided_slice %372 {offsets = [0, 128], sizes = [8, 128], strides = [1, 1]} : vector<8x512xf32> to vector<8x128xf32>
    %384 = vector.extract_strided_slice %374 {offsets = [0, 128], sizes = [8, 128], strides = [1, 1]} : vector<8x256xf32> to vector<8x128xf32>
    %385 = arith.addf %383, %384 : vector<8x128xf32>
    %386 = arith.negf %385 : vector<8x128xf32>
    %387 = math.exp %386 : vector<8x128xf32>
    %cst_113 = arith.constant 1.000000e+00 : f32
    %388 = vector.broadcast %cst_113 : f32 to vector<8x128xf32>
    %389 = arith.addf %388, %387 : vector<8x128xf32>
    %390 = arith.divf %388, %389 : vector<8x128xf32>
    %391 = vector.extract_strided_slice %372 {offsets = [0, 256], sizes = [8, 128], strides = [1, 1]} : vector<8x512xf32> to vector<8x128xf32>
    %392 = arith.mulf %390, %368 : vector<8x128xf32>
    %393 = arith.truncf %392 : vector<8x128xf32> to vector<8x128xbf16>
    %cst_114 = arith.constant dense<0.000000e+00> : vector<8x128xf32>
    %394 = tpu.matmul %393, %332, %cst_114 {dimension_numbers = #tpu.dot_dimension_numbers<[1], [0], [0], [1], [0, 0, 1, 1], [], []>} : vector<8x128xbf16>, vector<128x128xbf16>, vector<8x128xf32> -> vector<8x128xf32>
    %395 = arith.addf %391, %394 : vector<8x128xf32>
    %396 = math.tanh %395 : vector<8x128xf32>
    %397 = vector.extract_strided_slice %372 {offsets = [0, 384], sizes = [8, 128], strides = [1, 1]} : vector<8x512xf32> to vector<8x128xf32>
    %398 = arith.mulf %382, %397 : vector<8x128xf32>
    %cst_115 = arith.constant 1.000000e+00 : f32
    %399 = vector.broadcast %cst_115 : f32 to vector<8x128xf32>
    %400 = arith.subf %399, %398 : vector<8x128xf32>
    %401 = arith.mulf %400, %368 : vector<8x128xf32>
    %402 = arith.mulf %398, %396 : vector<8x128xf32>
    %403 = arith.addf %401, %402 : vector<8x128xf32>
    %c2_i32_116 = arith.constant 2 : i32
    %c8_i32_117 = arith.constant 8 : i32
    %404 = arith.muli %c2_i32_116, %c8_i32_117 : i32
    %405 = tpu.assume_multiple %404, 8 : i32
    %406 = arith.index_cast %405 : i32 to index
    %c0_118 = arith.constant 0 : index
    %407 = vector.load %arg16[%406, %c0_118] : memref<64x512xf32, #tpu.memory_space<vmem>>, vector<8x512xf32>
    %408 = arith.truncf %403 : vector<8x128xf32> to vector<8x128xbf16>
    %cst_119 = arith.constant dense<0.000000e+00> : vector<8x256xf32>
    %409 = tpu.matmul %408, %330, %cst_119 {dimension_numbers = #tpu.dot_dimension_numbers<[1], [0], [0], [1], [0, 0, 1, 1], [], []>} : vector<8x128xbf16>, vector<128x256xbf16>, vector<8x256xf32> -> vector<8x256xf32>
    %410 = vector.extract_strided_slice %407 {offsets = [0, 0], sizes = [8, 128], strides = [1, 1]} : vector<8x512xf32> to vector<8x128xf32>
    %411 = vector.extract_strided_slice %409 {offsets = [0, 0], sizes = [8, 128], strides = [1, 1]} : vector<8x256xf32> to vector<8x128xf32>
    %412 = arith.addf %410, %411 : vector<8x128xf32>
    %413 = arith.negf %412 : vector<8x128xf32>
    %414 = math.exp %413 : vector<8x128xf32>
    %cst_120 = arith.constant 1.000000e+00 : f32
    %415 = vector.broadcast %cst_120 : f32 to vector<8x128xf32>
    %416 = arith.addf %415, %414 : vector<8x128xf32>
    %417 = arith.divf %415, %416 : vector<8x128xf32>
    %418 = vector.extract_strided_slice %407 {offsets = [0, 128], sizes = [8, 128], strides = [1, 1]} : vector<8x512xf32> to vector<8x128xf32>
    %419 = vector.extract_strided_slice %409 {offsets = [0, 128], sizes = [8, 128], strides = [1, 1]} : vector<8x256xf32> to vector<8x128xf32>
    %420 = arith.addf %418, %419 : vector<8x128xf32>
    %421 = arith.negf %420 : vector<8x128xf32>
    %422 = math.exp %421 : vector<8x128xf32>
    %cst_121 = arith.constant 1.000000e+00 : f32
    %423 = vector.broadcast %cst_121 : f32 to vector<8x128xf32>
    %424 = arith.addf %423, %422 : vector<8x128xf32>
    %425 = arith.divf %423, %424 : vector<8x128xf32>
    %426 = vector.extract_strided_slice %407 {offsets = [0, 256], sizes = [8, 128], strides = [1, 1]} : vector<8x512xf32> to vector<8x128xf32>
    %427 = arith.mulf %425, %403 : vector<8x128xf32>
    %428 = arith.truncf %427 : vector<8x128xf32> to vector<8x128xbf16>
    %cst_122 = arith.constant dense<0.000000e+00> : vector<8x128xf32>
    %429 = tpu.matmul %428, %332, %cst_122 {dimension_numbers = #tpu.dot_dimension_numbers<[1], [0], [0], [1], [0, 0, 1, 1], [], []>} : vector<8x128xbf16>, vector<128x128xbf16>, vector<8x128xf32> -> vector<8x128xf32>
    %430 = arith.addf %426, %429 : vector<8x128xf32>
    %431 = math.tanh %430 : vector<8x128xf32>
    %432 = vector.extract_strided_slice %407 {offsets = [0, 384], sizes = [8, 128], strides = [1, 1]} : vector<8x512xf32> to vector<8x128xf32>
    %433 = arith.mulf %417, %432 : vector<8x128xf32>
    %cst_123 = arith.constant 1.000000e+00 : f32
    %434 = vector.broadcast %cst_123 : f32 to vector<8x128xf32>
    %435 = arith.subf %434, %433 : vector<8x128xf32>
    %436 = arith.mulf %435, %403 : vector<8x128xf32>
    %437 = arith.mulf %433, %431 : vector<8x128xf32>
    %438 = arith.addf %436, %437 : vector<8x128xf32>
    %c3_i32_124 = arith.constant 3 : i32
    %c8_i32_125 = arith.constant 8 : i32
    %439 = arith.muli %c3_i32_124, %c8_i32_125 : i32
    %440 = tpu.assume_multiple %439, 8 : i32
    %441 = arith.index_cast %440 : i32 to index
    %c0_126 = arith.constant 0 : index
    %442 = vector.load %arg16[%441, %c0_126] : memref<64x512xf32, #tpu.memory_space<vmem>>, vector<8x512xf32>
    %443 = arith.truncf %438 : vector<8x128xf32> to vector<8x128xbf16>
    %cst_127 = arith.constant dense<0.000000e+00> : vector<8x256xf32>
    %444 = tpu.matmul %443, %330, %cst_127 {dimension_numbers = #tpu.dot_dimension_numbers<[1], [0], [0], [1], [0, 0, 1, 1], [], []>} : vector<8x128xbf16>, vector<128x256xbf16>, vector<8x256xf32> -> vector<8x256xf32>
    %445 = vector.extract_strided_slice %442 {offsets = [0, 0], sizes = [8, 128], strides = [1, 1]} : vector<8x512xf32> to vector<8x128xf32>
    %446 = vector.extract_strided_slice %444 {offsets = [0, 0], sizes = [8, 128], strides = [1, 1]} : vector<8x256xf32> to vector<8x128xf32>
    %447 = arith.addf %445, %446 : vector<8x128xf32>
    %448 = arith.negf %447 : vector<8x128xf32>
    %449 = math.exp %448 : vector<8x128xf32>
    %cst_128 = arith.constant 1.000000e+00 : f32
    %450 = vector.broadcast %cst_128 : f32 to vector<8x128xf32>
    %451 = arith.addf %450, %449 : vector<8x128xf32>
    %452 = arith.divf %450, %451 : vector<8x128xf32>
    %453 = vector.extract_strided_slice %442 {offsets = [0, 128], sizes = [8, 128], strides = [1, 1]} : vector<8x512xf32> to vector<8x128xf32>
    %454 = vector.extract_strided_slice %444 {offsets = [0, 128], sizes = [8, 128], strides = [1, 1]} : vector<8x256xf32> to vector<8x128xf32>
    %455 = arith.addf %453, %454 : vector<8x128xf32>
    %456 = arith.negf %455 : vector<8x128xf32>
    %457 = math.exp %456 : vector<8x128xf32>
    %cst_129 = arith.constant 1.000000e+00 : f32
    %458 = vector.broadcast %cst_129 : f32 to vector<8x128xf32>
    %459 = arith.addf %458, %457 : vector<8x128xf32>
    %460 = arith.divf %458, %459 : vector<8x128xf32>
    %461 = vector.extract_strided_slice %442 {offsets = [0, 256], sizes = [8, 128], strides = [1, 1]} : vector<8x512xf32> to vector<8x128xf32>
    %462 = arith.mulf %460, %438 : vector<8x128xf32>
    %463 = arith.truncf %462 : vector<8x128xf32> to vector<8x128xbf16>
    %cst_130 = arith.constant dense<0.000000e+00> : vector<8x128xf32>
    %464 = tpu.matmul %463, %332, %cst_130 {dimension_numbers = #tpu.dot_dimension_numbers<[1], [0], [0], [1], [0, 0, 1, 1], [], []>} : vector<8x128xbf16>, vector<128x128xbf16>, vector<8x128xf32> -> vector<8x128xf32>
    %465 = arith.addf %461, %464 : vector<8x128xf32>
    %466 = math.tanh %465 : vector<8x128xf32>
    %467 = vector.extract_strided_slice %442 {offsets = [0, 384], sizes = [8, 128], strides = [1, 1]} : vector<8x512xf32> to vector<8x128xf32>
    %468 = arith.mulf %452, %467 : vector<8x128xf32>
    %cst_131 = arith.constant 1.000000e+00 : f32
    %469 = vector.broadcast %cst_131 : f32 to vector<8x128xf32>
    %470 = arith.subf %469, %468 : vector<8x128xf32>
    %471 = arith.mulf %470, %438 : vector<8x128xf32>
    %472 = arith.mulf %468, %466 : vector<8x128xf32>
    %473 = arith.addf %471, %472 : vector<8x128xf32>
    %c4_i32_132 = arith.constant 4 : i32
    %c8_i32_133 = arith.constant 8 : i32
    %474 = arith.muli %c4_i32_132, %c8_i32_133 : i32
    %475 = tpu.assume_multiple %474, 8 : i32
    %476 = arith.index_cast %475 : i32 to index
    %c0_134 = arith.constant 0 : index
    %477 = vector.load %arg16[%476, %c0_134] : memref<64x512xf32, #tpu.memory_space<vmem>>, vector<8x512xf32>
    %478 = arith.truncf %473 : vector<8x128xf32> to vector<8x128xbf16>
    %cst_135 = arith.constant dense<0.000000e+00> : vector<8x256xf32>
    %479 = tpu.matmul %478, %330, %cst_135 {dimension_numbers = #tpu.dot_dimension_numbers<[1], [0], [0], [1], [0, 0, 1, 1], [], []>} : vector<8x128xbf16>, vector<128x256xbf16>, vector<8x256xf32> -> vector<8x256xf32>
    %480 = vector.extract_strided_slice %477 {offsets = [0, 0], sizes = [8, 128], strides = [1, 1]} : vector<8x512xf32> to vector<8x128xf32>
    %481 = vector.extract_strided_slice %479 {offsets = [0, 0], sizes = [8, 128], strides = [1, 1]} : vector<8x256xf32> to vector<8x128xf32>
    %482 = arith.addf %480, %481 : vector<8x128xf32>
    %483 = arith.negf %482 : vector<8x128xf32>
    %484 = math.exp %483 : vector<8x128xf32>
    %cst_136 = arith.constant 1.000000e+00 : f32
    %485 = vector.broadcast %cst_136 : f32 to vector<8x128xf32>
    %486 = arith.addf %485, %484 : vector<8x128xf32>
    %487 = arith.divf %485, %486 : vector<8x128xf32>
    %488 = vector.extract_strided_slice %477 {offsets = [0, 128], sizes = [8, 128], strides = [1, 1]} : vector<8x512xf32> to vector<8x128xf32>
    %489 = vector.extract_strided_slice %479 {offsets = [0, 128], sizes = [8, 128], strides = [1, 1]} : vector<8x256xf32> to vector<8x128xf32>
    %490 = arith.addf %488, %489 : vector<8x128xf32>
    %491 = arith.negf %490 : vector<8x128xf32>
    %492 = math.exp %491 : vector<8x128xf32>
    %cst_137 = arith.constant 1.000000e+00 : f32
    %493 = vector.broadcast %cst_137 : f32 to vector<8x128xf32>
    %494 = arith.addf %493, %492 : vector<8x128xf32>
    %495 = arith.divf %493, %494 : vector<8x128xf32>
    %496 = vector.extract_strided_slice %477 {offsets = [0, 256], sizes = [8, 128], strides = [1, 1]} : vector<8x512xf32> to vector<8x128xf32>
    %497 = arith.mulf %495, %473 : vector<8x128xf32>
    %498 = arith.truncf %497 : vector<8x128xf32> to vector<8x128xbf16>
    %cst_138 = arith.constant dense<0.000000e+00> : vector<8x128xf32>
    %499 = tpu.matmul %498, %332, %cst_138 {dimension_numbers = #tpu.dot_dimension_numbers<[1], [0], [0], [1], [0, 0, 1, 1], [], []>} : vector<8x128xbf16>, vector<128x128xbf16>, vector<8x128xf32> -> vector<8x128xf32>
    %500 = arith.addf %496, %499 : vector<8x128xf32>
    %501 = math.tanh %500 : vector<8x128xf32>
    %502 = vector.extract_strided_slice %477 {offsets = [0, 384], sizes = [8, 128], strides = [1, 1]} : vector<8x512xf32> to vector<8x128xf32>
    %503 = arith.mulf %487, %502 : vector<8x128xf32>
    %cst_139 = arith.constant 1.000000e+00 : f32
    %504 = vector.broadcast %cst_139 : f32 to vector<8x128xf32>
    %505 = arith.subf %504, %503 : vector<8x128xf32>
    %506 = arith.mulf %505, %473 : vector<8x128xf32>
    %507 = arith.mulf %503, %501 : vector<8x128xf32>
    %508 = arith.addf %506, %507 : vector<8x128xf32>
    %c5_i32_140 = arith.constant 5 : i32
    %c8_i32_141 = arith.constant 8 : i32
    %509 = arith.muli %c5_i32_140, %c8_i32_141 : i32
    %510 = tpu.assume_multiple %509, 8 : i32
    %511 = arith.index_cast %510 : i32 to index
    %c0_142 = arith.constant 0 : index
    %512 = vector.load %arg16[%511, %c0_142] : memref<64x512xf32, #tpu.memory_space<vmem>>, vector<8x512xf32>
    %513 = arith.truncf %508 : vector<8x128xf32> to vector<8x128xbf16>
    %cst_143 = arith.constant dense<0.000000e+00> : vector<8x256xf32>
    %514 = tpu.matmul %513, %330, %cst_143 {dimension_numbers = #tpu.dot_dimension_numbers<[1], [0], [0], [1], [0, 0, 1, 1], [], []>} : vector<8x128xbf16>, vector<128x256xbf16>, vector<8x256xf32> -> vector<8x256xf32>
    %515 = vector.extract_strided_slice %512 {offsets = [0, 0], sizes = [8, 128], strides = [1, 1]} : vector<8x512xf32> to vector<8x128xf32>
    %516 = vector.extract_strided_slice %514 {offsets = [0, 0], sizes = [8, 128], strides = [1, 1]} : vector<8x256xf32> to vector<8x128xf32>
    %517 = arith.addf %515, %516 : vector<8x128xf32>
    %518 = arith.negf %517 : vector<8x128xf32>
    %519 = math.exp %518 : vector<8x128xf32>
    %cst_144 = arith.constant 1.000000e+00 : f32
    %520 = vector.broadcast %cst_144 : f32 to vector<8x128xf32>
    %521 = arith.addf %520, %519 : vector<8x128xf32>
    %522 = arith.divf %520, %521 : vector<8x128xf32>
    %523 = vector.extract_strided_slice %512 {offsets = [0, 128], sizes = [8, 128], strides = [1, 1]} : vector<8x512xf32> to vector<8x128xf32>
    %524 = vector.extract_strided_slice %514 {offsets = [0, 128], sizes = [8, 128], strides = [1, 1]} : vector<8x256xf32> to vector<8x128xf32>
    %525 = arith.addf %523, %524 : vector<8x128xf32>
    %526 = arith.negf %525 : vector<8x128xf32>
    %527 = math.exp %526 : vector<8x128xf32>
    %cst_145 = arith.constant 1.000000e+00 : f32
    %528 = vector.broadcast %cst_145 : f32 to vector<8x128xf32>
    %529 = arith.addf %528, %527 : vector<8x128xf32>
    %530 = arith.divf %528, %529 : vector<8x128xf32>
    %531 = vector.extract_strided_slice %512 {offsets = [0, 256], sizes = [8, 128], strides = [1, 1]} : vector<8x512xf32> to vector<8x128xf32>
    %532 = arith.mulf %530, %508 : vector<8x128xf32>
    %533 = arith.truncf %532 : vector<8x128xf32> to vector<8x128xbf16>
    %cst_146 = arith.constant dense<0.000000e+00> : vector<8x128xf32>
    %534 = tpu.matmul %533, %332, %cst_146 {dimension_numbers = #tpu.dot_dimension_numbers<[1], [0], [0], [1], [0, 0, 1, 1], [], []>} : vector<8x128xbf16>, vector<128x128xbf16>, vector<8x128xf32> -> vector<8x128xf32>
    %535 = arith.addf %531, %534 : vector<8x128xf32>
    %536 = math.tanh %535 : vector<8x128xf32>
    %537 = vector.extract_strided_slice %512 {offsets = [0, 384], sizes = [8, 128], strides = [1, 1]} : vector<8x512xf32> to vector<8x128xf32>
    %538 = arith.mulf %522, %537 : vector<8x128xf32>
    %cst_147 = arith.constant 1.000000e+00 : f32
    %539 = vector.broadcast %cst_147 : f32 to vector<8x128xf32>
    %540 = arith.subf %539, %538 : vector<8x128xf32>
    %541 = arith.mulf %540, %508 : vector<8x128xf32>
    %542 = arith.mulf %538, %536 : vector<8x128xf32>
    %543 = arith.addf %541, %542 : vector<8x128xf32>
    %c6_i32_148 = arith.constant 6 : i32
    %c8_i32_149 = arith.constant 8 : i32
    %544 = arith.muli %c6_i32_148, %c8_i32_149 : i32
    %545 = tpu.assume_multiple %544, 8 : i32
    %546 = arith.index_cast %545 : i32 to index
    %c0_150 = arith.constant 0 : index
    %547 = vector.load %arg16[%546, %c0_150] : memref<64x512xf32, #tpu.memory_space<vmem>>, vector<8x512xf32>
    %548 = arith.truncf %543 : vector<8x128xf32> to vector<8x128xbf16>
    %cst_151 = arith.constant dense<0.000000e+00> : vector<8x256xf32>
    %549 = tpu.matmul %548, %330, %cst_151 {dimension_numbers = #tpu.dot_dimension_numbers<[1], [0], [0], [1], [0, 0, 1, 1], [], []>} : vector<8x128xbf16>, vector<128x256xbf16>, vector<8x256xf32> -> vector<8x256xf32>
    %550 = vector.extract_strided_slice %547 {offsets = [0, 0], sizes = [8, 128], strides = [1, 1]} : vector<8x512xf32> to vector<8x128xf32>
    %551 = vector.extract_strided_slice %549 {offsets = [0, 0], sizes = [8, 128], strides = [1, 1]} : vector<8x256xf32> to vector<8x128xf32>
    %552 = arith.addf %550, %551 : vector<8x128xf32>
    %553 = arith.negf %552 : vector<8x128xf32>
    %554 = math.exp %553 : vector<8x128xf32>
    %cst_152 = arith.constant 1.000000e+00 : f32
    %555 = vector.broadcast %cst_152 : f32 to vector<8x128xf32>
    %556 = arith.addf %555, %554 : vector<8x128xf32>
    %557 = arith.divf %555, %556 : vector<8x128xf32>
    %558 = vector.extract_strided_slice %547 {offsets = [0, 128], sizes = [8, 128], strides = [1, 1]} : vector<8x512xf32> to vector<8x128xf32>
    %559 = vector.extract_strided_slice %549 {offsets = [0, 128], sizes = [8, 128], strides = [1, 1]} : vector<8x256xf32> to vector<8x128xf32>
    %560 = arith.addf %558, %559 : vector<8x128xf32>
    %561 = arith.negf %560 : vector<8x128xf32>
    %562 = math.exp %561 : vector<8x128xf32>
    %cst_153 = arith.constant 1.000000e+00 : f32
    %563 = vector.broadcast %cst_153 : f32 to vector<8x128xf32>
    %564 = arith.addf %563, %562 : vector<8x128xf32>
    %565 = arith.divf %563, %564 : vector<8x128xf32>
    %566 = vector.extract_strided_slice %547 {offsets = [0, 256], sizes = [8, 128], strides = [1, 1]} : vector<8x512xf32> to vector<8x128xf32>
    %567 = arith.mulf %565, %543 : vector<8x128xf32>
    %568 = arith.truncf %567 : vector<8x128xf32> to vector<8x128xbf16>
    %cst_154 = arith.constant dense<0.000000e+00> : vector<8x128xf32>
    %569 = tpu.matmul %568, %332, %cst_154 {dimension_numbers = #tpu.dot_dimension_numbers<[1], [0], [0], [1], [0, 0, 1, 1], [], []>} : vector<8x128xbf16>, vector<128x128xbf16>, vector<8x128xf32> -> vector<8x128xf32>
    %570 = arith.addf %566, %569 : vector<8x128xf32>
    %571 = math.tanh %570 : vector<8x128xf32>
    %572 = vector.extract_strided_slice %547 {offsets = [0, 384], sizes = [8, 128], strides = [1, 1]} : vector<8x512xf32> to vector<8x128xf32>
    %573 = arith.mulf %557, %572 : vector<8x128xf32>
    %cst_155 = arith.constant 1.000000e+00 : f32
    %574 = vector.broadcast %cst_155 : f32 to vector<8x128xf32>
    %575 = arith.subf %574, %573 : vector<8x128xf32>
    %576 = arith.mulf %575, %543 : vector<8x128xf32>
    %577 = arith.mulf %573, %571 : vector<8x128xf32>
    %578 = arith.addf %576, %577 : vector<8x128xf32>
    %c7_i32_156 = arith.constant 7 : i32
    %c8_i32_157 = arith.constant 8 : i32
    %579 = arith.muli %c7_i32_156, %c8_i32_157 : i32
    %580 = tpu.assume_multiple %579, 8 : i32
    %581 = arith.index_cast %580 : i32 to index
    %c0_158 = arith.constant 0 : index
    %582 = vector.load %arg16[%581, %c0_158] : memref<64x512xf32, #tpu.memory_space<vmem>>, vector<8x512xf32>
    %583 = arith.truncf %578 : vector<8x128xf32> to vector<8x128xbf16>
    %cst_159 = arith.constant dense<0.000000e+00> : vector<8x256xf32>
    %584 = tpu.matmul %583, %330, %cst_159 {dimension_numbers = #tpu.dot_dimension_numbers<[1], [0], [0], [1], [0, 0, 1, 1], [], []>} : vector<8x128xbf16>, vector<128x256xbf16>, vector<8x256xf32> -> vector<8x256xf32>
    %585 = vector.extract_strided_slice %582 {offsets = [0, 0], sizes = [8, 128], strides = [1, 1]} : vector<8x512xf32> to vector<8x128xf32>
    %586 = vector.extract_strided_slice %584 {offsets = [0, 0], sizes = [8, 128], strides = [1, 1]} : vector<8x256xf32> to vector<8x128xf32>
    %587 = arith.addf %585, %586 : vector<8x128xf32>
    %588 = arith.negf %587 : vector<8x128xf32>
    %589 = math.exp %588 : vector<8x128xf32>
    %cst_160 = arith.constant 1.000000e+00 : f32
    %590 = vector.broadcast %cst_160 : f32 to vector<8x128xf32>
    %591 = arith.addf %590, %589 : vector<8x128xf32>
    %592 = arith.divf %590, %591 : vector<8x128xf32>
    %593 = vector.extract_strided_slice %582 {offsets = [0, 128], sizes = [8, 128], strides = [1, 1]} : vector<8x512xf32> to vector<8x128xf32>
    %594 = vector.extract_strided_slice %584 {offsets = [0, 128], sizes = [8, 128], strides = [1, 1]} : vector<8x256xf32> to vector<8x128xf32>
    %595 = arith.addf %593, %594 : vector<8x128xf32>
    %596 = arith.negf %595 : vector<8x128xf32>
    %597 = math.exp %596 : vector<8x128xf32>
    %cst_161 = arith.constant 1.000000e+00 : f32
    %598 = vector.broadcast %cst_161 : f32 to vector<8x128xf32>
    %599 = arith.addf %598, %597 : vector<8x128xf32>
    %600 = arith.divf %598, %599 : vector<8x128xf32>
    %601 = vector.extract_strided_slice %582 {offsets = [0, 256], sizes = [8, 128], strides = [1, 1]} : vector<8x512xf32> to vector<8x128xf32>
    %602 = arith.mulf %600, %578 : vector<8x128xf32>
    %603 = arith.truncf %602 : vector<8x128xf32> to vector<8x128xbf16>
    %cst_162 = arith.constant dense<0.000000e+00> : vector<8x128xf32>
    %604 = tpu.matmul %603, %332, %cst_162 {dimension_numbers = #tpu.dot_dimension_numbers<[1], [0], [0], [1], [0, 0, 1, 1], [], []>} : vector<8x128xbf16>, vector<128x128xbf16>, vector<8x128xf32> -> vector<8x128xf32>
    %605 = arith.addf %601, %604 : vector<8x128xf32>
    %606 = math.tanh %605 : vector<8x128xf32>
    %607 = vector.extract_strided_slice %582 {offsets = [0, 384], sizes = [8, 128], strides = [1, 1]} : vector<8x512xf32> to vector<8x128xf32>
    %608 = arith.mulf %592, %607 : vector<8x128xf32>
    %cst_163 = arith.constant 1.000000e+00 : f32
    %609 = vector.broadcast %cst_163 : f32 to vector<8x128xf32>
    %610 = arith.subf %609, %608 : vector<8x128xf32>
    %611 = arith.mulf %610, %578 : vector<8x128xf32>
    %612 = arith.mulf %608, %606 : vector<8x128xf32>
    %613 = arith.addf %611, %612 : vector<8x128xf32>
    %c8_i32_164 = arith.constant 8 : i32
    %c0_165 = arith.constant 0 : index
    %c0_166 = arith.constant 0 : index
    %614 = vector.load %arg15[%c0_165, %c0_166] : memref<8x128xf32, #tpu.memory_space<vmem>>, vector<8x128xf32>
    tpu.vector_store %arg15[%c0_165, %c0_166], %613 {strides = array<i32>} : memref<8x128xf32, #tpu.memory_space<vmem>>, vector<8x128xf32>,
    return
  }
  func.func @transform_0(%arg0: i32) -> (i32, i32) {
    %c0_i32 = arith.constant 0 : i32
    %c0_i32_0 = arith.constant 0 : i32
    return %arg0, %c0_i32 : i32, i32
  }
  func.func @transform_1(%arg0: i32) -> (i32, i32, i32) {
    %c0_i32 = arith.constant 0 : i32
    %c0_i32_0 = arith.constant 0 : i32
    %c0_i32_1 = arith.constant 0 : i32
    return %c0_i32, %arg0, %c0_i32_0 : i32, i32, i32
  }
  func.func @transform_2(%arg0: i32) -> (i32, i32) {
    %c0_i32 = arith.constant 0 : i32
    %c0_i32_0 = arith.constant 0 : i32
    %c0_i32_1 = arith.constant 0 : i32
    return %c0_i32, %c0_i32_0 : i32, i32
  }
  func.func @transform_3(%arg0: i32) -> (i32, i32) {
    %c0_i32 = arith.constant 0 : i32
    %c0_i32_0 = arith.constant 0 : i32
    %c0_i32_1 = arith.constant 0 : i32
    return %c0_i32, %c0_i32_0 : i32, i32
  }
  func.func @transform_4(%arg0: i32) -> (i32, i32) {
    %c0_i32 = arith.constant 0 : i32
    %c0_i32_0 = arith.constant 0 : i32
    %c0_i32_1 = arith.constant 0 : i32
    return %c0_i32, %c0_i32_0 : i32, i32
  }
  func.func @transform_5(%arg0: i32) -> (i32, i32) {
    %c0_i32 = arith.constant 0 : i32
    %c0_i32_0 = arith.constant 0 : i32
    %c0_i32_1 = arith.constant 0 : i32
    return %c0_i32, %c0_i32_0 : i32, i32
  }
  func.func @transform_6(%arg0: i32) -> (i32, i32) {
    %c0_i32 = arith.constant 0 : i32
    %c0_i32_0 = arith.constant 0 : i32
    %c0_i32_1 = arith.constant 0 : i32
    return %c0_i32, %c0_i32_0 : i32, i32
  }
  func.func @transform_7(%arg0: i32) -> (i32, i32) {
    %c0_i32 = arith.constant 0 : i32
    %c0_i32_0 = arith.constant 0 : i32
    %c0_i32_1 = arith.constant 0 : i32
    return %c0_i32, %c0_i32_0 : i32, i32
  }
  func.func @transform_8(%arg0: i32) -> (i32, i32) {
    %c0_i32 = arith.constant 0 : i32
    %c0_i32_0 = arith.constant 0 : i32
    %c0_i32_1 = arith.constant 0 : i32
    return %c0_i32, %c0_i32_0 : i32, i32
  }
  func.func @transform_9(%arg0: i32) -> (i32, i32) {
    %c0_i32 = arith.constant 0 : i32
    %c0_i32_0 = arith.constant 0 : i32
    %c0_i32_1 = arith.constant 0 : i32
    return %c0_i32, %c0_i32_0 : i32, i32
  }
  func.func @transform_10(%arg0: i32) -> (i32, i32) {
    %c0_i32 = arith.constant 0 : i32
    %c0_i32_0 = arith.constant 0 : i32
    %c0_i32_1 = arith.constant 0 : i32
    return %c0_i32, %c0_i32_0 : i32, i32
  }
  func.func @transform_11(%arg0: i32) -> (i32, i32) {
    %c0_i32 = arith.constant 0 : i32
    %c0_i32_0 = arith.constant 0 : i32
    %c0_i32_1 = arith.constant 0 : i32
    return %c0_i32, %c0_i32_0 : i32, i32
  }
  func.func @transform_12(%arg0: i32) -> (i32, i32) {
    %c0_i32 = arith.constant 0 : i32
    %c0_i32_0 = arith.constant 0 : i32
    %c0_i32_1 = arith.constant 0 : i32
    return %c0_i32, %c0_i32_0 : i32, i32
  }
  func.func @transform_13(%arg0: i32) -> (i32, i32) {
    %c0_i32 = arith.constant 0 : i32
    %c0_i32_0 = arith.constant 0 : i32
    %c0_i32_1 = arith.constant 0 : i32
    return %c0_i32, %c0_i32_0 : i32, i32
  }
  func.func @transform_14(%arg0: i32) -> (i32, i32) {
    %c0_i32 = arith.constant 0 : i32
    %c0_i32_0 = arith.constant 0 : i32
    return %arg0, %c0_i32 : i32, i32
  }
}

</mosaic_0001>

<bundles_post_ra>
// kernel: tpu_custom_call.1
= control target key start
LH: loop header
LB: loop body
LE: loop exit
PB: predicated region body
PF: predicated region fallthrough
CT: control target
= control target key end

     0   :  { %19 = vsyncpa [#allocation5], 0  ;;  %s5462_s0 = inlined_call_operand.hbm [shape: f32[8,32], index: 0, kind: input, shape index: {}]   ;;  %s5463_s1 = inlined_call_operand.hbm [shape: f32[8,8,32], index: 1, kind: input, shape index: {}]   ;;  %s5464_s2 = inlined_call_operand.hbm [shape: f32[32,384], index: 2, kind: input, shape index: {}]   ;;  %s5465_s3 = inlined_call_operand.hbm [shape: f32[128,384], index: 3, kind: input, shape index: {}]   ;;  %s5466_s4 = inlined_call_operand.vmem [shape: f32[1,384], index: 4, kind: input, shape index: {}]   ;;  %s5467_s5 = inlined_call_operand.vmem [shape: f32[1,128], index: 5, kind: input, shape index: {}]   ;;  %s5468_s6 = inlined_call_operand.hbm [shape: f32[32,128], index: 6, kind: input, shape index: {}]   ;;  %s5469_s7 = inlined_call_operand.vmem [shape: f32[1,128], index: 7, kind: input, shape index: {}]   ;;  %s5470_s8 = inlined_call_operand.hbm [shape: f32[128,128], index: 8, kind: input, shape index: {}]   ;;  %s5471_s9 = inlined_call_operand.vmem [shape: f32[1,128], index: 9, kind: input, shape index: {}]   ;;  %s5472_s10 = inlined_call_operand.hbm [shape: f32[128,384], index: 10, kind: input, shape index: {}]   ;;  %s5473_s11 = inlined_call_operand.hbm [shape: f32[128,256], index: 11, kind: input, shape index: {}]   ;;  %s5474_s12 = inlined_call_operand.hbm [shape: f32[128,128], index: 12, kind: input, shape index: {}]   ;;  %s5475_s13 = inlined_call_operand.vmem [shape: f32[1,384], index: 13, kind: input, shape index: {}]   ;;  %s5476_s14 = inlined_call_operand.hbm [shape: f32[8,128], index: 14, kind: output, shape index: {}]  }
   0x1   :  { %20 = vsyncpa [#allocation8], 0 }
   0x2   :  { %21 = vsyncpa [#allocation11], 0 }
   0x3   :  { %22 = vsyncpa [#allocation14], 0 }
   0x4   :  { %23 = vsyncpa [#allocation17], 0 }
   0x5   :  { %24 = vsyncpa [#allocation6], 0  ;;  %s4169_s29 = smov [#allocation7]   ;;  %s3937_s17 = scalar_lea.hbm %s5463_s1, 1024 }
   0x6   :  { %s40_s30 = sshll.u32 %s4169_s29, 4  ;;  %p3938_p0 = scmp.ne.s32.totalorder %s5463_s1, %s3937_s17  ;;  %s41_s30 = int_to_ptr.vmem [resolvable:$true] %s40_s30 }
   0x7   :  { %p3941_p1 = scmp.lt.u32.totalorder %s3937_s17, %s5463_s1 }
   0x9   :  { %p3943_p2 = pnand %p3941_p1, %p3938_p0 }
   0xb   :  { %3946 = shalt.err (!%p3943_p2)
}
   0xc   :  { %s3947_s22 = scalar_lea.vmem %s41_s30, 1024  ;;  %p3952_p4 = scmp.lt.s32.totalorder %s41_s30, %s41_s30 }
   0xd   :  { %p3948_p3 = scmp.ne.s32.totalorder %s41_s30, %s3947_s22  ;;  %p3953_p5 = scmp.lt.s32.totalorder %s3947_s22, %s3947_s22 }
   0xf   :  { %p3954_p6 = por %p3953_p5, %p3952_p4 }
  0x11   :  { %p3955_p7 = pnand %p3954_p6, %p3948_p3 }
  0x13   :  { %3958 = shalt.err (!%p3955_p7)
}
  0x14   :  { %s5477_s23 = smov 128   ;;  %s4171_s24 = smov 8  }
  0x15   :  { %46 = dma.hbm_to_vmem [thread:$0]  %s5463_s1, 1024, %s41_s30, [#allocation8], %s5477_s23, %s5477_s23, %s4171_s24  }
  0x16   :  { %s4172_s27 = smov [#allocation10]   ;;  %s4173_s29 = smov [#allocation13]  }
  0x17   :  { %s64_s28 = sshll.u32 %s4172_s27, 4  ;;  %s94_s15 = sshll.u32 %s4173_s29, 4  ;;  %s65_s28 = int_to_ptr.vmem [resolvable:$true] %s64_s28  ;;  %s95_s15 = int_to_ptr.vmem [resolvable:$true] %s94_s15 }
  0x18   :  { %s3959_s18 = scalar_lea.hbm %s5465_s3, 6144 }
  0x19   :  { %p3960_p8 = scmp.ne.s32.totalorder %s5465_s3, %s3959_s18  ;;  %p3963_p9 = scmp.lt.u32.totalorder %s3959_s18, %s5465_s3 }
  0x1b   :  { %p3965_p10 = pnand %p3963_p9, %p3960_p8 }
  0x1d   :  { %3968 = shalt.err (!%p3965_p10)
}
  0x1e   :  { %s3969_s1 = scalar_lea.vmem %s65_s28, 6144  ;;  %p3974_p12 = scmp.lt.s32.totalorder %s65_s28, %s65_s28 }
  0x1f   :  { %p3970_p11 = scmp.ne.s32.totalorder %s65_s28, %s3969_s1  ;;  %p3975_p13 = scmp.lt.s32.totalorder %s3969_s1, %s3969_s1 }
  0x21   :  { %p3976_p0 = por %p3975_p13, %p3974_p12 }
  0x23   :  { %p3977_p1 = pnand %p3976_p0, %p3970_p11 }
  0x25   :  { %3980 = shalt.err (!%p3977_p1)
}
  0x26   :  { %s4174_s30 = smov 384   ;;  %s4175_s25 = smov 24  }
  0x27   :  { %70 = dma.hbm_to_vmem [thread:$0]  %s5465_s3, 6144, %s65_s28, [#allocation11], %s4174_s30, %s4174_s30, %s4175_s25  }
  0x28   :  { %s3981_s17 = scalar_lea.hbm %s5470_s8, 2048 }
  0x29   :  { %p3982_p2 = scmp.ne.s32.totalorder %s5470_s8, %s3981_s17  ;;  %p3985_p3 = scmp.lt.u32.totalorder %s3981_s17, %s5470_s8 }
  0x2b   :  { %p3987_p4 = pnand %p3985_p3, %p3982_p2 }
  0x2d   :  { %3990 = shalt.err (!%p3987_p4)
}
  0x2e   :  { %s3991_s22 = scalar_lea.vmem %s95_s15, 2048  ;;  %p3996_p6 = scmp.lt.s32.totalorder %s95_s15, %s95_s15 }
  0x2f   :  { %p3992_p5 = scmp.ne.s32.totalorder %s95_s15, %s3991_s22  ;;  %p3997_p7 = scmp.lt.s32.totalorder %s3991_s22, %s3991_s22 }
  0x31   :  { %p3998_p8 = por %p3997_p7, %p3996_p6 }
  0x33   :  { %p3999_p9 = pnand %p3998_p8, %p3992_p5 }
  0x35   :  { %4002 = shalt.err (!%p3999_p9)
}
  0x36   :  { %100 = dma.hbm_to_vmem [thread:$0]  %s5470_s8, 2048, %s95_s15, [#allocation14], %s5477_s23, %s5477_s23, %s4171_s24  }
  0x37   :  { %s4176_s1 = smov [#allocation16]   ;;  %s4003_s16 = scalar_lea.hbm %s5473_s11, 4096 }
  0x38   :  { %s120_s26 = sshll.u32 %s4176_s1, 4  ;;  %p4004_p10 = scmp.ne.s32.totalorder %s5473_s11, %s4003_s16  ;;  %s121_s26 = int_to_ptr.vmem [resolvable:$true] %s120_s26 }
  0x39   :  { %p4007_p11 = scmp.lt.u32.totalorder %s4003_s16, %s5473_s11 }
  0x3b   :  { %p4009_p12 = pnand %p4007_p11, %p4004_p10 }
  0x3d   :  { %4012 = shalt.err (!%p4009_p12)
}
  0x3e   :  { %s4013_s21 = scalar_lea.vmem %s121_s26, 4096  ;;  %p4018_p0 = scmp.lt.s32.totalorder %s121_s26, %s121_s26 }
  0x3f   :  { %p4014_p13 = scmp.ne.s32.totalorder %s121_s26, %s4013_s21  ;;  %p4019_p1 = scmp.lt.s32.totalorder %s4013_s21, %s4013_s21 }
  0x41   :  { %p4020_p2 = por %p4019_p1, %p4018_p0 }
  0x43   :  { %p4021_p3 = pnand %p4020_p2, %p4014_p13 }
  0x45   :  { %4024 = shalt.err (!%p4021_p3)
}
  0x46   :  { %s4177_s8 = smov 256   ;;  %s4178_s15 = smov 16  }
  0x47   :  { %126 = dma.hbm_to_vmem [thread:$0]  %s5473_s11, 4096, %s121_s26, [#allocation17], %s4177_s8, %s4177_s8, %s4178_s15  }
  0x48   :  { %s4179_s28 = smov [#allocation4]   ;;  %s4180_s27 = smov [#allocation9]  }
  0x49   :  { %s31_s1 = sshll.u32 %s4179_s28, 4  ;;  %s52_s29 = sshll.u32 %s4180_s27, 4  ;;  %s32_s1 = int_to_ptr.vmem [resolvable:$true] %s31_s1  ;;  %s4321_s29 = int_to_ptr.vmem [resolvable:$true] %s52_s29 }
  0x4a   :  { %s4025_s18 = scalar_lea.hbm %s5462_s0, 128 }
  0x4b   :  { %p4026_p4 = scmp.ne.s32.totalorder %s5462_s0, %s4025_s18  ;;  %p4029_p5 = scmp.lt.u32.totalorder %s4025_s18, %s5462_s0 }
  0x4d   :  { %p4031_p6 = pnand %p4029_p5, %p4026_p4 }
  0x4f   :  { %4034 = shalt.err (!%p4031_p6)
}
  0x50   :  { %s4035_s11 = scalar_lea.vmem %s32_s1, 128  ;;  %p4040_p8 = scmp.lt.s32.totalorder %s32_s1, %s32_s1 }
  0x51   :  { %p4036_p7 = scmp.ne.s32.totalorder %s32_s1, %s4035_s11  ;;  %p4041_p9 = scmp.lt.s32.totalorder %s4035_s11, %s4035_s11 }
  0x53   :  { %p4042_p10 = por %p4041_p9, %p4040_p8 }
  0x55   :  { %p4043_p11 = pnand %p4042_p10, %p4036_p7 }
  0x57   :  { %4046 = shalt.err (!%p4043_p11)
}
  0x58   :  { %34 = dma.hbm_to_vmem [thread:$0]  %s5462_s0, 128, %s32_s1, [#allocation5]  }
  0x59   :  { %s4047_s3 = scalar_lea.hbm %s5464_s2, 1536 }
  0x5a   :  { %p4048_p12 = scmp.ne.s32.totalorder %s5464_s2, %s4047_s3  ;;  %p4051_p13 = scmp.lt.u32.totalorder %s4047_s3, %s5464_s2 }
  0x5c   :  { %p4053_p0 = pnand %p4051_p13, %p4048_p12 }
  0x5e   :  { %4056 = shalt.err (!%p4053_p0)
}
  0x5f   :  { %s4057_s17 = scalar_lea.vmem %s4321_s29, 1536  ;;  %p4062_p2 = scmp.lt.s32.totalorder %s4321_s29, %s4321_s29 }
  0x60   :  { %p4058_p1 = scmp.ne.s32.totalorder %s4321_s29, %s4057_s17  ;;  %p4063_p3 = scmp.lt.s32.totalorder %s4057_s17, %s4057_s17 }
  0x62   :  { %p4064_p4 = por %p4063_p3, %p4062_p2 }
  0x64   :  { %p4065_p5 = pnand %p4064_p4, %p4058_p1 }
  0x66   :  { %4068 = shalt.err (!%p4065_p5)
}
  0x67   :  { %58 = dma.hbm_to_vmem [thread:$0]  %s5464_s2, 1536, %s4321_s29, [#allocation8], %s4174_s30, %s4174_s30, %s4175_s25  }
  0x68   :  { %s4181_s18 = smov [#allocation12]   ;;  %s4182_s20 = smov [#allocation15]  }
  0x69   :  { %s80_s19 = sshll.u32 %s4181_s18, 4  ;;  %s108_s21 = sshll.u32 %s4182_s20, 4  ;;  %s81_s19 = int_to_ptr.vmem [resolvable:$true] %s80_s19  ;;  %s4355_s21 = int_to_ptr.vmem [resolvable:$true] %s108_s21 }
  0x6a   :  { %s4069_s8 = scalar_lea.hbm %s5468_s6, 512 }
  0x6b   :  { %p4070_p6 = scmp.ne.s32.totalorder %s5468_s6, %s4069_s8  ;;  %p4073_p7 = scmp.lt.u32.totalorder %s4069_s8, %s5468_s6 }
  0x6d   :  { %p4075_p8 = pnand %p4073_p7, %p4070_p6 }
  0x6f   :  { %4078 = shalt.err (!%p4075_p8)
}
  0x70   :  { %s4079_s2 = scalar_lea.vmem %s81_s19, 512  ;;  %p4084_p10 = scmp.lt.s32.totalorder %s81_s19, %s81_s19 }
  0x71   :  { %p4080_p9 = scmp.ne.s32.totalorder %s81_s19, %s4079_s2  ;;  %p4085_p11 = scmp.lt.s32.totalorder %s4079_s2, %s4079_s2 }
  0x73   :  { %p4086_p12 = por %p4085_p11, %p4084_p10 }
  0x75   :  { %p4087_p13 = pnand %p4086_p12, %p4080_p9 }
  0x77   :  { %4090 = shalt.err (!%p4087_p13)
}
  0x78   :  { %s5488_s29 = smov 128   ;;  %s4091_s0 = scalar_lea.hbm %s5472_s10, 6144 }
  0x79   :  { %86 = dma.hbm_to_vmem [thread:$0]  %s5468_s6, 512, %s81_s19, [#allocation11], %s5488_s29, %s5488_s29, %s4171_s24  }
  0x7a   :  { %p4092_p0 = scmp.ne.s32.totalorder %s5472_s10, %s4091_s0  ;;  %p4095_p1 = scmp.lt.u32.totalorder %s4091_s0, %s5472_s10 }
  0x7c   :  { %p4097_p2 = pnand %p4095_p1, %p4092_p0 }
  0x7e   :  { %4100 = shalt.err (!%p4097_p2)
}
  0x7f   :  { %s4101_s26 = scalar_lea.vmem %s4355_s21, 6144  ;;  %p4106_p4 = scmp.lt.s32.totalorder %s4355_s21, %s4355_s21 }
  0x80   :  { %p4102_p3 = scmp.ne.s32.totalorder %s4355_s21, %s4101_s26  ;;  %p4107_p5 = scmp.lt.s32.totalorder %s4101_s26, %s4101_s26 }
  0x82   :  { %p4108_p6 = por %p4107_p5, %p4106_p4 }
  0x84   :  { %p4109_p7 = pnand %p4108_p6, %p4102_p3 }
  0x86   :  { %4112 = shalt.err (!%p4109_p7)
}
  0x87   :  { %114 = dma.hbm_to_vmem [thread:$0]  %s5472_s10, 6144, %s4355_s21, [#allocation14], %s4174_s30, %s4174_s30, %s4175_s25  }
  0x88   :  { %s4183_s8 = smov [#allocation18]   ;;  %s4113_s28 = scalar_lea.hbm %s5474_s12, 2048 }
  0x89   :  { %s132_s15 = sshll.u32 %s4183_s8, 4  ;;  %p4114_p8 = scmp.ne.s32.totalorder %s5474_s12, %s4113_s28  ;;  %s133_s15 = int_to_ptr.vmem [resolvable:$true] %s132_s15 }
  0x8a   :  { %p4117_p9 = scmp.lt.u32.totalorder %s4113_s28, %s5474_s12 }
  0x8c   :  { %p4119_p10 = pnand %p4117_p9, %p4114_p8 }
  0x8e   :  { %4122 = shalt.err (!%p4119_p10)
}
  0x8f   :  { %s4123_s17 = scalar_lea.vmem %s133_s15, 2048  ;;  %p4128_p12 = scmp.lt.s32.totalorder %s133_s15, %s133_s15 }
  0x90   :  { %p4124_p11 = scmp.ne.s32.totalorder %s133_s15, %s4123_s17  ;;  %p4129_p13 = scmp.lt.s32.totalorder %s4123_s17, %s4123_s17 }
  0x92   :  { %p4130_p0 = por %p4129_p13, %p4128_p12 }
  0x94   :  { %p4131_p1 = pnand %p4130_p0, %p4124_p11 }
  0x96   :  { %4134 = shalt.err (!%p4131_p1)
}
  0x97   :  { %138 = dma.hbm_to_vmem [thread:$0]  %s5474_s12, 2048, %s133_s15, [#allocation17], %s5488_s29, %s5488_s29, %s4171_s24  }
  0x98   :  { %4157 = dma.done.wait [#allocation5], 128  }
  0x99   :  { %4158 = vsyncadd [#allocation5], 4294967168 }
  0x9a   :  { %4159 = dma.done.wait [#allocation8], 2560  }
  0x9b   :  { %4160 = vsyncadd [#allocation8], 4294964736 }
  0x9c   :  { %4161 = dma.done.wait [#allocation11], 6656  }
  0x9d   :  { %4162 = vsyncadd [#allocation11], 4294960640 }
  0x9e   :  { %4163 = dma.done.wait [#allocation14], 8192  }
  0x9f   :  { %4164 = vsyncadd [#allocation14], 4294959104 }
  0xa0   :  { %4165 = dma.done.wait [#allocation17], 6144  }
  0xa1   :  { %4166 = vsyncadd [#allocation17], 4294961152  ;;  %v5484_v0 = vmov 0.0   ;;  %v178_v1 = vld [vmem:[#allocation9 + $0x8] sm:$0xff]  ;;  %v181_v2 = vld [vmem:[#allocation9 + $0x20] sm:$0xff]  ;;  %vm206_vm0 = vcmask 261120  }
  0xa2   :  { %295 = vmatprep.mubr.f32.mxu0 %v5484_v0  ;;  %v177_v3 = vld [vmem:[#allocation9] sm:$0xff]  ;;  %v3646_v4 = vpack.c.bf16 %v181_v2, %v178_v1  ;;  %v180_v5 = vld [vmem:[#allocation9 + $0x18] sm:$0xff]  ;;  %v187_v7 = vld [vmem:[#allocation9 + $0x50] sm:$0xff]  ;;  %vm4185_vm1 = vmmov 0  }
  0xa3   :  { %v184_v6 = vld [vmem:[#allocation9 + $0x38] sm:$0xff]  ;;  %v3648_v8 = vpack.c.bf16 %v180_v5, %v177_v3  ;;  %v183_v10 = vld [vmem:[#allocation9 + $0x30] sm:$0xff]  ;;  %v186_v11 = vld [vmem:[#allocation9 + $0x48] sm:$0xff] }
  0xa4   :  { %v3650_v9 = vpack.c.bf16 %v187_v7, %v184_v6  ;;  %v169_v12 = vld [vmem:[#allocation7] sm:$0xff]  ;;  %3647 = vmatprep.subr.bf16.mxu0 %v3646_v4  ;;  %v474_v13 = vld [vmem:[#allocation10 + $0x8] sm:$0xff]  ;;  %v3652_v15 = vpack.c.bf16 %v186_v11, %v183_v10  ;;  %v476_v18 = vld [vmem:[#allocation10 + $0x18] sm:$0xff] }
  0xa5   :  { %v477_v14 = vld [vmem:[#allocation10 + $0x20] sm:$0xff]  ;;  %3224 = vmatprep.mubr.msk.f32.mxu1 %vm206_vm0, %v169_v12  ;;  %3649 = vmatpush1.bf16.msra.mxu0 %v3648_v8  ;;  %v480_v19 = vld [vmem:[#allocation10 + $0x38] sm:$0xff]  ;;  %v483_v20 = vld [vmem:[#allocation10 + $0x50] sm:$0xff] }
  0xa6   :  { %3651 = vmatprep.subr.bf16.mxu0 %v3650_v9  ;;  %v4409_v16 = vpack.c.bf16 %v477_v14, %v474_v13  ;;  %v473_v17 = vld [vmem:[#allocation10] sm:$0xff]  ;;  %v4414_v22 = vpack.c.bf16 %v483_v20, %v480_v19  ;;  %v479_v23 = vld [vmem:[#allocation10 + $0x30] sm:$0xff]  ;;  %v482_v24 = vld [vmem:[#allocation10 + $0x48] sm:$0xff] }
  0xa7   :  { %v4411_v21 = vpack.c.bf16 %v476_v18, %v473_v17  ;;  %v179_v25 = vld [vmem:[#allocation9 + $0x10] sm:$0xff]  ;;  %v486_v26 = vld [vmem:[#allocation10 + $0x68] sm:$0xff]  ;;  %v489_v27 = vld [vmem:[#allocation10 + $0x80] sm:$0xff]  ;;  %v4419_v31 = vpack.c.bf16 %v482_v24, %v479_v23 }
  0xa8   :  { %v182_v28 = vld [vmem:[#allocation9 + $0x28] sm:$0xff]  ;;  %v185_v32 = vld [vmem:[#allocation9 + $0x40] sm:$0xff]  ;;  %v188_v33 = vld [vmem:[#allocation9 + $0x58] sm:$0xff]  ;;  %v4422_v34 = vpack.c.bf16 %v489_v27, %v486_v26 }
  0xa9   :  { %3653 = vmatpush1.bf16.msra.mxu0 %v3652_v15  ;;  %v3654_v29 = vpack.c.bf16 %v182_v28, %v179_v25  ;;  %v170_v30 = vld [vmem:[#allocation7 + $0x8] sm:$0xff]  ;;  %v485_v35 = vld [vmem:[#allocation10 + $0x60] sm:$0xff]  ;;  %v488_v36 = vld [vmem:[#allocation10 + $0x78] sm:$0xff]  ;;  %v3658_v37 = vpack.c.bf16 %v188_v33, %v185_v32 }
  0xaa   :  { %558 = vmatprep.subr.bf16.mxu0 %v4409_v16  ;;  %v492_v38 = vld [vmem:[#allocation10 + $0x98] sm:$0xff]  ;;  %v495_v39 = vld [vmem:[#allocation10 + $0xb0] sm:$0xff]  ;;  %v4427_v42 = vpack.c.bf16 %v488_v36, %v485_v35  ;;  %v478_v43 = vld [vmem:[#allocation10 + $0x28] sm:$0xff] }
  0xab   :  { %3655 = vmatprep.subr.bf16.mxu1 %v3654_v29  ;;  %v475_v40 = vld [vmem:[#allocation10 + $0x10] sm:$0xff]  ;;  %v4430_v44 = vpack.c.bf16 %v495_v39, %v492_v38  ;;  %v494_v46 = vld [vmem:[#allocation10 + $0xa8] sm:$0xff]  ;;  %v501_v48 = vld [vmem:[#allocation10 + $0xe0] sm:$0xff] }
  0xac   :  { %2962 = vmatmul.mubr.msk.f32.vlgmr.msra.gmra.mrb[0].mxu0 %vm206_vm0, %v169_v12  ;;  %3657 = vmatpush3.bf16.msra.mxu1 %v3654_v29  ;;  %v171_v41 = vld [vmem:[#allocation7 + $0x10] sm:$0xff]  ;;  %v498_v47 = vld [vmem:[#allocation10 + $0xc8] sm:$0xff]  ;;  %v4432_v49 = vpack.c.bf16 %v478_v43, %v475_v40  ;;  %v481_v50 = vld [vmem:[#allocation10 + $0x40] sm:$0xff]  ;;  %v191_v43 = vlaneseq }
  0xad   :  { %559 = vmatpush1.bf16.msra.mxu0 %v4411_v21  ;;  %301 = vmatprep.mubr.f32.mxu0 %v5484_v0  ;;  %v491_v45 = vld [vmem:[#allocation10 + $0x90] sm:$0xff]  ;;  %v484_v51 = vld [vmem:[#allocation10 + $0x58] sm:$0xff]  ;;  %v4441_v54 = vpack.c.bf16 %v501_v48, %v498_v47  ;;  %v497_v55 = vld [vmem:[#allocation10 + $0xc0] sm:$0xff] }
  0xae   :  { %560 = vmatprep.subr.bf16.mxu0 %v4414_v22  ;;  %3659 = vmatprep.subr.bf16.mxu1 %v3658_v37  ;;  %v172_v52 = vld [vmem:[#allocation7 + $0x18] sm:$0xff]  ;;  %v4438_v53 = vpack.c.bf16 %v494_v46, %v491_v45  ;;  %v507_v58 = vld [vmem:[#allocation10 + $0x110] sm:$0xff]  ;;  %v4445_v59 = vpack.c.bf16 %v484_v51, %v481_v50  ;;  %v490_v61 = vld [vmem:[#allocation10 + $0x88] sm:$0xff]  ;;  %v4553_v45 = vshrl.u32 %v191_v43, 7 }
  0xaf   :  { %v500_v56 = vld [vmem:[#allocation10 + $0xd8] sm:$0xff]  ;;  %v487_v60 = vld [vmem:[#allocation10 + $0x70] sm:$0xff]  ;;  %v173_v62 = vld [vmem:[#allocation7 + $0x20] sm:$0xff] }
  0xb0   :  { %2963 = vmatmul.mubr.msk.f32.gmra.mrb[2].mxu0 %vm206_vm0, %v170_v30  ;;  %3661 = vmatpush3.bf16.msra.mxu1 %v3658_v37  ;;  %v504_v57 = vld [vmem:[#allocation10 + $0xf8] sm:$0xff]  ;;  %v4452_v63 = vpack.c.bf16 %v500_v56, %v497_v55  ;;  %v503_v2 = vld [vmem:[#allocation10 + $0xf0] sm:$0xff]  ;;  %v506_v3 = vld [vmem:[#allocation10 + $0x108] sm:$0xff]  ;;  %v4459_v6 = vpack.c.bf16 %v490_v61, %v487_v60  ;;  %v5482_v37 = vmov 0   ;;  %5489 = vst [vmem:[#allocation26_spill] sm:$0xff] %v4553_v45  ;;  %v5481_v46 = vsub.s32 0, %v4553_v45 }
  0xb1   :  { %561 = vmatpush1.bf16.msra.mxu0 %v4419_v31  ;;  %307 = vmatprep.mubr.f32.mxu0 %v5484_v0  ;;  %v4455_v1 = vpack.c.bf16 %v507_v58, %v504_v57  ;;  %v510_v4 = vld [vmem:[#allocation10 + $0x128] sm:$0xff]  ;;  %v513_v5 = vld [vmem:[#allocation10 + $0x140] sm:$0xff]  ;;  %v496_v8 = vld [vmem:[#allocation10 + $0xb8] sm:$0xff]  ;;  %v4466_v10 = vpack.c.bf16 %v506_v3, %v503_v2  ;;  %v5480_v50 = vsub.s32 1, %v4553_v45  ;;  %v5479_v55 = vsub.s32 2, %v4553_v45 }
  0xb2   :  { %562 = vmatprep.subr.bf16.mxu0 %v4422_v34  ;;  %3236 = vmatprep.subr.bf16.mxu1 %v5484_v0  ;;  %v493_v7 = vld [vmem:[#allocation10 + $0xa0] sm:$0xff]  ;;  %v174_v9 = vld [vmem:[#allocation7 + $0x28] sm:$0xff]  ;;  %v175_v11 = vld [vmem:[#allocation7 + $0x30] sm:$0xff]  ;;  %v4469_v12 = vpack.c.bf16 %v513_v5, %v510_v4 }
  0xb3   :  { %3225 = vmatmul.mubr.msk.f32.vlgmr.msra.gmra.mrb[0].mxu1 %vm206_vm0, %v170_v30  ;;  %v509_v13 = vld [vmem:[#allocation10 + $0x120] sm:$0xff]  ;;  %v512_v14 = vld [vmem:[#allocation10 + $0x138] sm:$0xff]  ;;  %v519_v17 = vld [vmem:[#allocation10 + $0x170] sm:$0xff]  ;;  %v4473_v18 = vpack.c.bf16 %v496_v8, %v493_v7 }
  0xb4   :  { %2964 = vmatmul.mubr.msk.f32.gmra.mrb[4].mxu0 %vm206_vm0, %v171_v41  ;;  %3237 = vmatpush3.bf16.msra.mxu1 %v4432_v49  ;;  %v516_v15 = vld [vmem:[#allocation10 + $0x158] sm:$0xff]  ;;  %v499_v19 = vld [vmem:[#allocation10 + $0xd0] sm:$0xff]  ;;  %v502_v20 = vld [vmem:[#allocation10 + $0xe8] sm:$0xff]  ;;  %v4480_v23 = vpack.c.bf16 %v512_v14, %v509_v13 }
  0xb5   :  { %563 = vmatpush1.bf16.msra.mxu0 %v4427_v42  ;;  %313 = vmatprep.mubr.f32.mxu0 %v5484_v0  ;;  %v176_v24 = vld [vmem:[#allocation7 + $0x38] sm:$0xff]  ;;  %v4483_v25 = vpack.c.bf16 %v519_v17, %v516_v15  ;;  %v515_v26 = vld [vmem:[#allocation10 + $0x150] sm:$0xff]  ;;  %v518_v27 = vld [vmem:[#allocation10 + $0x168] sm:$0xff]  ;;  %v4487_v28 = vpack.c.bf16 %v502_v20, %v499_v19 }
  0xb6   :  { %564 = vmatprep.subr.bf16.mxu0 %v4430_v44  ;;  %3227 = vmatprep.mubr.msk.f32.mxu1 %vm206_vm0, %v171_v41  ;;  %v505_v29 = vld [vmem:[#allocation10 + $0x100] sm:$0xff]  ;;  %v508_v30 = vld [vmem:[#allocation10 + $0x118] sm:$0xff]  ;;  %v4495_v32 = vpack.c.bf16 %v518_v27, %v515_v26  ;;  %v511_v35 = vld [vmem:[#allocation10 + $0x130] sm:$0xff] }
  0xb7   :  { %3238 = vmatprep.subr.bf16.mxu1 %v5484_v0  ;;  %3228 = vmatmul.mubr.msk.f32.gmra.mrb[2].mxu1 %vm206_vm0, %v172_v52  ;;  %v4499_v33 = vpack.c.bf16 %v508_v30, %v505_v29  ;;  %v514_v36 = vld [vmem:[#allocation10 + $0x148] sm:$0xff]  ;;  %v517_v39 = vld [vmem:[#allocation10 + $0x160] sm:$0xff]  ;;  %v520_v40 = vld [vmem:[#allocation10 + $0x178] sm:$0xff] }
  0xb8   :  { %2965 = vmatmul.mubr.msk.f32.gmra.mrb[6].mxu0 %vm206_vm0, %v172_v52  ;;  %3239 = vmatpush3.bf16.msra.mxu1 %v4445_v59  ;;  %v4507_v38 = vpack.c.bf16 %v514_v36, %v511_v35  ;;  %v4515_v41 = vpack.c.bf16 %v520_v40, %v517_v39  ;;  %v189_v47 = vld [vmem:[%s5466_s4] sm:$0x7] }
  0xb9   :  { %565 = vmatpush1.bf16.msra.mxu0 %v4438_v53  ;;  %319 = vmatprep.mubr.f32.mxu0 %v5484_v0  ;;  %v194_v52 = vrot.slane %v189_v47, %v5481_v46  ;;  %v198_v56 = vrot.slane %v189_v47, %v5480_v50 }
  0xba   :  { %566 = vmatprep.subr.bf16.mxu0 %v4441_v54  ;;  %3230 = vmatprep.mubr.msk.f32.mxu1 %vm206_vm0, %v173_v62 }
  0xbb   :  { %3240 = vmatprep.subr.bf16.mxu1 %v5484_v0  ;;  %3231 = vmatmul.mubr.msk.f32.gmra.mrb[4].mxu1 %vm206_vm0, %v174_v9 }
  0xbc   :  { %2966 = vmatmul.mubr.msk.f32.gmra.mrb[8].mxu0 %vm206_vm0, %v173_v62  ;;  %3241 = vmatpush3.bf16.msra.mxu1 %v4459_v6  ;;  %v4571_v62 = vrot.slane %v189_v47, %v5479_v55 }
  0xbd   :  { %567 = vmatpush1.bf16.msra.mxu0 %v4452_v63  ;;  %325 = vmatprep.mubr.f32.mxu0 %v5484_v0 }
  0xbe   :  { %568 = vmatprep.subr.bf16.mxu0 %v4455_v1  ;;  %3233 = vmatprep.mubr.msk.f32.mxu1 %vm206_vm0, %v175_v11 }
  0xbf   :  { %3242 = vmatprep.subr.bf16.mxu1 %v5484_v0  ;;  %3234 = vmatmul.mubr.msk.f32.gmra.mrb[6].mxu1 %vm206_vm0, %v176_v24 }
  0xc0   :  { %2967 = vmatmul.mubr.msk.f32.gmra.mrb[10].mxu0 %vm206_vm0, %v174_v9  ;;  %3243 = vmatpush3.bf16.msra.mxu1 %v4473_v18 }
  0xc1   :  { %569 = vmatpush1.bf16.msra.mxu0 %v4466_v10  ;;  %331 = vmatprep.mubr.f32.mxu0 %v5484_v0 }
  0xc2   :  { %570 = vmatprep.subr.bf16.mxu0 %v4469_v12  ;;  %3252 = vmatprep.mubr.msk.bf16.mxu1 %vm4185_vm1, %v5484_v0 }
  0xc3   :  { %3244 = vmatprep.subr.bf16.mxu1 %v5484_v0 }
  0xc4   :  { %2968 = vmatmul.mubr.msk.f32.gmra.mrb[12].mxu0 %vm206_vm0, %v175_v11  ;;  %3245 = vmatpush3.bf16.msra.mxu1 %v4487_v28 }
  0xc5   :  { %571 = vmatpush1.bf16.msra.mxu0 %v4480_v23  ;;  %337 = vmatprep.mubr.f32.mxu0 %v5484_v0 }
  0xc6   :  { %572 = vmatprep.subr.bf16.mxu0 %v4483_v25  ;;  %3246 = vmatprep.subr.bf16.mxu1 %v5484_v0 }
  0xc8   :  { %2969 = vmatmul.mubr.msk.f32.gmra.mrb[14].mxu0 %vm206_vm0, %v176_v24  ;;  %3247 = vmatpush3.bf16.msra.mxu1 %v4499_v33 }
  0xc9   :  { %573 = vmatpush1.bf16.msra.mxu0 %v4495_v32  ;;  %590 = vmatprep.mubr.bf16.mxu0 %v5482_v37 }
  0xca   :  { %669 = vmatprep.subr.bf16.mxu0 %v4409_v16  ;;  %3248 = vmatprep.subr.bf16.mxu1 %v5484_v0 }
  0xcc   :  { %591 = vmatmul.mubr.bf16.vlgmr.msra.gmra.mrb[16].mxu0 %v5482_v37  ;;  %3249 = vmatpush3.bf16.msra.mxu1 %v4507_v38 }
  0xcd   :  { %670 = vmatpush1.bf16.msra.mxu0 %v4411_v21  ;;  %701 = vmatprep.mubr.bf16.mxu0 %v5482_v37 }
  0xce   :  { %671 = vmatprep.subr.bf16.mxu0 %v4414_v22  ;;  %3250 = vmatprep.subr.bf16.mxu1 %v5484_v0 }
  0xd0   :  { %3251 = vmatpush3.bf16.msra.mxu1 %v4515_v41 }
  0xd1   :  { %672 = vmatpush1.bf16.msra.mxu0 %v4419_v31  ;;  %3256 = vmatprep.subr.bf16.mxu1 %v5484_v0 }
  0xd2   :  { %673 = vmatprep.subr.bf16.mxu0 %v4422_v34 }
  0xd3   :  { %3253 = vmatmul.mubr.bf16.vlgmr.msra.gmra.mrb[8].mxu1 %v5482_v37 }
  0xd4   :  { %3257 = vmatpush3.bf16.msra.mxu1 %v4432_v49  ;;  %3272 = vmatprep.mubr.msk.bf16.mxu1 %vm4185_vm1, %v5484_v0 }
  0xd5   :  { %674 = vmatpush1.bf16.msra.mxu0 %v4427_v42  ;;  %3258 = vmatprep.subr.bf16.mxu1 %v5484_v0 }
  0xd6   :  { %675 = vmatprep.subr.bf16.mxu0 %v4430_v44 }
  0xd8   :  { %3259 = vmatpush3.bf16.msra.mxu1 %v4445_v59 }
  0xd9   :  { %676 = vmatpush1.bf16.msra.mxu0 %v4438_v53  ;;  %3260 = vmatprep.subr.bf16.mxu1 %v5484_v0 }
  0xda   :  { %677 = vmatprep.subr.bf16.mxu0 %v4441_v54 }
  0xdc   :  { %3261 = vmatpush3.bf16.msra.mxu1 %v4459_v6 }
  0xdd   :  { %678 = vmatpush1.bf16.msra.mxu0 %v4452_v63  ;;  %3262 = vmatprep.subr.bf16.mxu1 %v5484_v0 }
  0xde   :  { %679 = vmatprep.subr.bf16.mxu0 %v4455_v1 }
  0xe0   :  { %3263 = vmatpush3.bf16.msra.mxu1 %v4473_v18 }
  0xe1   :  { %680 = vmatpush1.bf16.msra.mxu0 %v4466_v10  ;;  %3264 = vmatprep.subr.bf16.mxu1 %v5484_v0 }
  0xe2   :  { %681 = vmatprep.subr.bf16.mxu0 %v4469_v12 }
  0xe4   :  { %3265 = vmatpush3.bf16.msra.mxu1 %v4487_v28 }
  0xe5   :  { %682 = vmatpush1.bf16.msra.mxu0 %v4480_v23  ;;  %3266 = vmatprep.subr.bf16.mxu1 %v5484_v0 }
  0xe6   :  { %683 = vmatprep.subr.bf16.mxu0 %v4483_v25 }
  0xe8   :  { %3267 = vmatpush3.bf16.msra.mxu1 %v4499_v33 }
  0xe9   :  { %684 = vmatpush1.bf16.msra.mxu0 %v4495_v32  ;;  %3268 = vmatprep.subr.bf16.mxu1 %v5484_v0 }
  0xea   :  { %781 = vmatprep.subr.bf16.mxu0 %v4409_v16 }
  0xec   :  { %3269 = vmatpush3.bf16.msra.mxu1 %v4507_v38 }
  0xed   :  { %3270 = vmatprep.subr.bf16.mxu1 %v5484_v0 }
  0xf0   :  { %3271 = vmatpush3.bf16.msra.mxu1 %v4515_v41 }
  0xf1   :  { %3276 = vmatprep.subr.bf16.mxu1 %v5484_v0 }
 0x17f   :  { %v297_v48 = vpop.f32.mrb[0].mxu0 }
 0x180   :  { %v299_v51 = vpop.f32.mrb[1].mxu0 }
 0x181   :  { %v300_v55 = vadd.f32 %v299_v51, %v198_v56 }
 0x183   :  { %v303_v57 = vpop.f32.mrb[2].mxu0 }
 0x184   :  { %v4565_v58 = vadd.f32 %v303_v57, %v194_v52  ;;  %v305_v60 = vpop.f32.mrb[3].mxu0 }
 0x185   :  { %v4567_v61 = vadd.f32 %v305_v60, %v198_v56 }
 0x186   :  { %v3226_v7 = vpop.f32.mrb[0].mxu1 }
 0x187   :  { %v309_v2 = vpop.f32.mrb[4].mxu0  ;;  %v4578_v8 = vadd.f32 %v3226_v7, %v4571_v62  ;;  %v410_v9 = vpop.f32.mrb[1].mxu1 }
 0x188   :  { %v4573_v3 = vadd.f32 %v309_v2, %v194_v52  ;;  %v311_v4 = vpop.f32.mrb[5].mxu0 }
 0x189   :  { %v4575_v5 = vadd.f32 %v311_v4, %v198_v56 }
 0x18a   :  { %v3229_v17 = vpop.f32.mrb[2].mxu1 }
 0x18b   :  { %v315_v11 = vpop.f32.mrb[6].mxu0  ;;  %v4585_v19 = vadd.f32 %v3229_v17, %v4571_v62  ;;  %v420_v20 = vpop.f32.mrb[3].mxu1 }
 0x18c   :  { %v4580_v13 = vadd.f32 %v315_v11, %v194_v52  ;;  %v317_v14 = vpop.f32.mrb[7].mxu0  ;;  %v4588_v26 = vadd.f32 %v420_v20, %v4571_v62 }
 0x18d   :  { %v4582_v15 = vadd.f32 %v317_v14, %v198_v56 }
 0x18e   :  { %v3232_v35 = vpop.f32.mrb[4].mxu1 }
 0x18f   :  { %v321_v24 = vpop.f32.mrb[8].mxu0  ;;  %v4595_v36 = vadd.f32 %v3232_v35, %v4571_v62  ;;  %v430_v39 = vpop.f32.mrb[5].mxu1 }
 0x190   :  { %v4590_v27 = vadd.f32 %v321_v24, %v194_v52  ;;  %v323_v29 = vpop.f32.mrb[9].mxu0  ;;  %v4598_v43 = vadd.f32 %v430_v39, %v4571_v62 }
 0x191   :  { %v4592_v30 = vadd.f32 %v323_v29, %v198_v56 }
 0x192   :  { %v3235_v2 = vpop.f32.mrb[6].mxu1 }
 0x193   :  { %v327_v40 = vpop.f32.mrb[10].mxu0  ;;  %v4605_v4 = vadd.f32 %v3235_v2, %v4571_v62  ;;  %v440_v7 = vpop.f32.mrb[7].mxu1 }
 0x194   :  { %v4600_v47 = vadd.f32 %v327_v40, %v194_v52  ;;  %v329_v57 = vpop.f32.mrb[11].mxu0  ;;  %v4608_v14 = vadd.f32 %v440_v7, %v4571_v62 }
 0x195   :  { %v4602_v60 = vadd.f32 %v329_v57, %v198_v56  ;;  %5490 = vst [vmem:[#allocation27_spill] sm:$0xff] %v4605_v4  ;;  %v298_v57 = vadd.f32 %v297_v48, %v194_v52  ;;  %v4621_v48 = vld [vmem:[%s5467_s5] ss:$0 sm:$0xff] }
 0x196   :  { %5491 = vst [vmem:[#allocation28_spill] sm:$0xff] %v4608_v14 }
 0x197   :  { %v333_v11 = vpop.f32.mrb[12].mxu0 }
 0x198   :  { %v4610_v17 = vadd.f32 %v333_v11, %v194_v52  ;;  %v335_v20 = vpop.f32.mrb[13].mxu0 }
 0x199   :  { %v4612_v24 = vadd.f32 %v335_v20, %v198_v56 }
 0x19b   :  { %5492 = vst [vmem:[#allocation29_spill] sm:$0xff] %v4612_v24  ;;  %v339_v29 = vpop.f32.mrb[14].mxu0 }
 0x19c   :  { %v4614_v35 = vadd.f32 %v339_v29, %v194_v52  ;;  %v341_v39 = vpop.f32.mrb[15].mxu0 }
 0x19d   :  { %v4616_v40 = vadd.f32 %v341_v39, %v198_v56 }
 0x19e   :  { %5493 = vst [vmem:[#allocation30_spill] sm:$0xff] %v4614_v35 }
 0x19f   :  { %v592_v2 = vpop.f32.mrb[16].mxu0 }
 0x1a0   :  { %v639_v50 = vadd.f32 %v592_v2, %v298_v57  ;;  %v594_v46 = vpop.f32.mrb[17].mxu0 }
 0x1a1   :  { %v646_v37 = vadd.f32 %v594_v46, %v300_v55  ;;  %v596_v0 = vpop.f32.mrb[18].mxu0 }
 0x1a2   :  { %v2979_v7 = vmul.f32 -1.442695, %v639_v50  ;;  %v597_v45 = vpop.f32.mrb[19].mxu0 }
 0x1a3   :  { %v2980_v11 = vmul.f32 -1.442695, %v646_v37  ;;  %v411_v37 = vadd.f32 %v410_v9, %v4571_v62  ;;  %v5494_v62 = vmov 0.0   ;;  %v5495_v9 = vmov 0  }
 0x1a4   :  { %3776 = vpow2.f32 %v2979_v7 }
 0x1a5   :  { %3778 = vpow2.f32 %v2980_v11 }
 0x1a6   :  { %v633_v4 = vpop.f32.mrb[8].mxu1 }
 0x1a7   :  { %v3254_v20 = vpop.f32.mrb[9].mxu1  ;;  %v653_v0 = vadd.f32 %v4621_v48, %v633_v4 }
 0x1a8   :  { %v636_v14 = vpop.f32.mrb[10].mxu1 }
 0x1a9   :  { %v3255_v29 = vpop.f32.mrb[11].mxu1 }
 0x1ae   :  { %v3777_v35 = vpop.eup %3776 }
 0x1af   :  { %v643_v24 = vadd.f32 1.0, %v3777_v35  ;;  %v3779_v39 = vpop.eup %3778 }
 0x1b0   :  { %v650_v46 = vadd.f32 1.0, %v3779_v39 }
 0x1b1   :  { %3780 = vrcp.f32 %v643_v24 }
 0x1b2   :  { %3782 = vrcp.f32 %v650_v46 }
 0x1bb   :  { %v3781_v45 = vpop.eup %3780 }
 0x1bc   :  { %v654_v50 = vmul.f32 %v3781_v45, %v653_v0  ;;  %v3783_v52 = vpop.eup %3782 }
 0x1bd   :  { %v657_v55 = vsub.f32 1.0, %v3783_v52  ;;  %v659_v14 = vmul.f32 0.0, %v3783_v52 }
 0x1be   :  { %v655_v51 = vadd.f32 %v654_v50, %v411_v37 }
 0x1c0   :  { %3784 = vtanh.f32 %v655_v51 }
 0x1ca   :  { %v3785_v56 = vpop.eup %3784 }
 0x1cb   :  { %v658_v24 = vmul.f32 %v3785_v56, %v657_v55 }
 0x1cd   :  { %v4625_v35 = vadd.f32 %v659_v14, %v658_v24 }
 0x1cf   :  { %v4629_v57 = vpack.c.bf16 %v4625_v35, %v4625_v35 }
 0x1d1   :  { %702 = vmatmul.mubr.bf16.vlgmr.msra.gmra.mrb[20].mxu0 %v4629_v57  ;;  %3273 = vmatmul.mubr.bf16.vlgmr.msra.gmra.mrb[12].mxu1 %v4629_v57 }
 0x1d2   :  { %782 = vmatpush1.bf16.msra.mxu0 %v4411_v21  ;;  %3277 = vmatpush3.bf16.msra.mxu1 %v4432_v49 }
 0x1d3   :  { %783 = vmatprep.subr.bf16.mxu0 %v4414_v22  ;;  %3278 = vmatprep.subr.bf16.mxu1 %v5494_v62 }
 0x1d4   :  { %813 = vmatprep.mubr.bf16.mxu0 %v5495_v9  ;;  %3292 = vmatprep.mubr.msk.bf16.mxu1 %vm4185_vm1, %v5494_v62 }
 0x1d6   :  { %784 = vmatpush1.bf16.msra.mxu0 %v4419_v31  ;;  %3279 = vmatpush3.bf16.msra.mxu1 %v4445_v59 }
 0x1d7   :  { %785 = vmatprep.subr.bf16.mxu0 %v4422_v34  ;;  %3280 = vmatprep.subr.bf16.mxu1 %v5494_v62 }
 0x1da   :  { %786 = vmatpush1.bf16.msra.mxu0 %v4427_v42  ;;  %3281 = vmatpush3.bf16.msra.mxu1 %v4459_v6 }
 0x1db   :  { %787 = vmatprep.subr.bf16.mxu0 %v4430_v44  ;;  %3282 = vmatprep.subr.bf16.mxu1 %v5494_v62 }
 0x1de   :  { %788 = vmatpush1.bf16.msra.mxu0 %v4438_v53  ;;  %3283 = vmatpush3.bf16.msra.mxu1 %v4473_v18 }
 0x1df   :  { %789 = vmatprep.subr.bf16.mxu0 %v4441_v54  ;;  %3284 = vmatprep.subr.bf16.mxu1 %v5494_v62 }
 0x1e2   :  { %790 = vmatpush1.bf16.msra.mxu0 %v4452_v63  ;;  %3285 = vmatpush3.bf16.msra.mxu1 %v4487_v28 }
 0x1e3   :  { %791 = vmatprep.subr.bf16.mxu0 %v4455_v1  ;;  %3286 = vmatprep.subr.bf16.mxu1 %v5494_v62 }
 0x1e6   :  { %792 = vmatpush1.bf16.msra.mxu0 %v4466_v10  ;;  %3287 = vmatpush3.bf16.msra.mxu1 %v4499_v33 }
 0x1e7   :  { %793 = vmatprep.subr.bf16.mxu0 %v4469_v12  ;;  %3288 = vmatprep.subr.bf16.mxu1 %v5494_v62 }
 0x1ea   :  { %794 = vmatpush1.bf16.msra.mxu0 %v4480_v23  ;;  %3289 = vmatpush3.bf16.msra.mxu1 %v4507_v38 }
 0x1eb   :  { %795 = vmatprep.subr.bf16.mxu0 %v4483_v25  ;;  %3290 = vmatprep.subr.bf16.mxu1 %v5494_v62 }
 0x1ee   :  { %796 = vmatpush1.bf16.msra.mxu0 %v4495_v32  ;;  %3291 = vmatpush3.bf16.msra.mxu1 %v4515_v41 }
 0x1ef   :  { %893 = vmatprep.subr.bf16.mxu0 %v4409_v16  ;;  %3296 = vmatprep.subr.bf16.mxu1 %v5494_v62 }
 0x2a4   :  { %v703_v4 = vpop.f32.mrb[20].mxu0  ;;  %v744_v2 = vpop.f32.mrb[12].mxu1 }
 0x2a5   :  { %v750_v7 = vadd.f32 %v703_v4, %v4565_v58  ;;  %v705_v11 = vpop.f32.mrb[21].mxu0  ;;  %v3274_v20 = vpop.f32.mrb[13].mxu1  ;;  %v764_v14 = vadd.f32 %v4621_v48, %v744_v2 }
 0x2a6   :  { %v757_v29 = vadd.f32 %v705_v11, %v4567_v61  ;;  %v707_v39 = vpop.f32.mrb[22].mxu0  ;;  %v747_v46 = vpop.f32.mrb[14].mxu1 }
 0x2a7   :  { %v2981_v0 = vmul.f32 -1.442695, %v750_v7  ;;  %v708_v45 = vpop.f32.mrb[23].mxu0  ;;  %v3275_v37 = vpop.f32.mrb[15].mxu1 }
 0x2a8   :  { %v2982_v50 = vmul.f32 -1.442695, %v757_v29 }
 0x2a9   :  { %3786 = vpow2.f32 %v2981_v0 }
 0x2aa   :  { %3788 = vpow2.f32 %v2982_v50 }
 0x2b3   :  { %v3787_v51 = vpop.eup %3786 }
 0x2b4   :  { %v754_v52 = vadd.f32 1.0, %v3787_v51  ;;  %v3789_v55 = vpop.eup %3788 }
 0x2b5   :  { %v761_v56 = vadd.f32 1.0, %v3789_v55 }
 0x2b6   :  { %3790 = vrcp.f32 %v754_v52 }
 0x2b7   :  { %3792 = vrcp.f32 %v761_v56 }
 0x2c0   :  { %v3791_v58 = vpop.eup %3790 }
 0x2c1   :  { %v765_v24 = vmul.f32 %v3791_v58, %v764_v14  ;;  %v3793_v4 = vpop.eup %3792 }
 0x2c2   :  { %v768_v7 = vsub.f32 1.0, %v3793_v4  ;;  %v770_v29 = vmul.f32 %v3793_v4, %v4625_v35 }
 0x2c3   :  { %v766_v61 = vadd.f32 %v765_v24, %v4578_v8 }
 0x2c5   :  { %3794 = vtanh.f32 %v766_v61 }
 0x2cf   :  { %v3795_v11 = vpop.eup %3794 }
 0x2d0   :  { %v769_v20 = vmul.f32 %v3795_v11, %v768_v7 }
 0x2d2   :  { %v4673_v39 = vadd.f32 %v770_v29, %v769_v20 }
 0x2d4   :  { %v780_v46 = vpack.c.bf16 %v4673_v39, %v4673_v39 }
 0x2d6   :  { %814 = vmatmul.mubr.bf16.vlgmr.msra.gmra.mrb[24].mxu0 %v780_v46  ;;  %3293 = vmatmul.mubr.bf16.vlgmr.msra.gmra.mrb[16].mxu1 %v780_v46 }
 0x2d7   :  { %894 = vmatpush1.bf16.msra.mxu0 %v4411_v21  ;;  %3297 = vmatpush3.bf16.msra.mxu1 %v4432_v49 }
 0x2d8   :  { %895 = vmatprep.subr.bf16.mxu0 %v4414_v22  ;;  %3298 = vmatprep.subr.bf16.mxu1 %v5494_v62 }
 0x2d9   :  { %925 = vmatprep.mubr.bf16.mxu0 %v5495_v9  ;;  %3312 = vmatprep.mubr.msk.bf16.mxu1 %vm4185_vm1, %v5494_v62 }
 0x2db   :  { %896 = vmatpush1.bf16.msra.mxu0 %v4419_v31  ;;  %3299 = vmatpush3.bf16.msra.mxu1 %v4445_v59 }
 0x2dc   :  { %897 = vmatprep.subr.bf16.mxu0 %v4422_v34  ;;  %3300 = vmatprep.subr.bf16.mxu1 %v5494_v62 }
 0x2df   :  { %898 = vmatpush1.bf16.msra.mxu0 %v4427_v42  ;;  %3301 = vmatpush3.bf16.msra.mxu1 %v4459_v6 }
 0x2e0   :  { %899 = vmatprep.subr.bf16.mxu0 %v4430_v44  ;;  %3302 = vmatprep.subr.bf16.mxu1 %v5494_v62 }
 0x2e3   :  { %900 = vmatpush1.bf16.msra.mxu0 %v4438_v53  ;;  %3303 = vmatpush3.bf16.msra.mxu1 %v4473_v18 }
 0x2e4   :  { %901 = vmatprep.subr.bf16.mxu0 %v4441_v54  ;;  %3304 = vmatprep.subr.bf16.mxu1 %v5494_v62 }
 0x2e7   :  { %902 = vmatpush1.bf16.msra.mxu0 %v4452_v63  ;;  %3305 = vmatpush3.bf16.msra.mxu1 %v4487_v28 }
 0x2e8   :  { %903 = vmatprep.subr.bf16.mxu0 %v4455_v1  ;;  %3306 = vmatprep.subr.bf16.mxu1 %v5494_v62 }
 0x2eb   :  { %904 = vmatpush1.bf16.msra.mxu0 %v4466_v10  ;;  %3307 = vmatpush3.bf16.msra.mxu1 %v4499_v33 }
 0x2ec   :  { %905 = vmatprep.subr.bf16.mxu0 %v4469_v12  ;;  %3308 = vmatprep.subr.bf16.mxu1 %v5494_v62 }
 0x2ef   :  { %906 = vmatpush1.bf16.msra.mxu0 %v4480_v23  ;;  %3309 = vmatpush3.bf16.msra.mxu1 %v4507_v38 }
 0x2f0   :  { %907 = vmatprep.subr.bf16.mxu0 %v4483_v25  ;;  %3310 = vmatprep.subr.bf16.mxu1 %v5494_v62 }
 0x2f3   :  { %908 = vmatpush1.bf16.msra.mxu0 %v4495_v32  ;;  %3311 = vmatpush3.bf16.msra.mxu1 %v4515_v41 }
 0x2f4   :  { %1005 = vmatprep.subr.bf16.mxu0 %v4409_v16  ;;  %3316 = vmatprep.subr.bf16.mxu1 %v5494_v62 }
 0x3a9   :  { %v815_v8 = vpop.f32.mrb[24].mxu0  ;;  %v856_v2 = vpop.f32.mrb[16].mxu1 }
 0x3aa   :  { %v862_v0 = vadd.f32 %v815_v8, %v4573_v3  ;;  %v817_v45 = vpop.f32.mrb[25].mxu0  ;;  %v3294_v37 = vpop.f32.mrb[17].mxu1  ;;  %v876_v11 = vadd.f32 %v4621_v48, %v856_v2 }
 0x3ab   :  { %v869_v50 = vadd.f32 %v817_v45, %v4575_v5  ;;  %v819_v51 = vpop.f32.mrb[26].mxu0  ;;  %v859_v52 = vpop.f32.mrb[18].mxu1 }
 0x3ac   :  { %v2983_v55 = vmul.f32 -1.442695, %v862_v0  ;;  %v820_v56 = vpop.f32.mrb[27].mxu0  ;;  %v3295_v14 = vpop.f32.mrb[19].mxu1 }
 0x3ad   :  { %v2984_v58 = vmul.f32 -1.442695, %v869_v50 }
 0x3ae   :  { %3796 = vpow2.f32 %v2983_v55 }
 0x3af   :  { %3798 = vpow2.f32 %v2984_v58 }
 0x3b8   :  { %v3797_v24 = vpop.eup %3796 }
 0x3b9   :  { %v866_v61 = vadd.f32 1.0, %v3797_v24  ;;  %v3799_v4 = vpop.eup %3798 }
 0x3ba   :  { %v873_v7 = vadd.f32 1.0, %v3799_v4 }
 0x3bb   :  { %3800 = vrcp.f32 %v866_v61 }
 0x3bc   :  { %3802 = vrcp.f32 %v873_v7 }
 0x3c5   :  { %v3801_v3 = vpop.eup %3800 }
 0x3c6   :  { %v877_v20 = vmul.f32 %v3801_v3, %v876_v11  ;;  %v3803_v29 = vpop.eup %3802 }
 0x3c7   :  { %v880_v46 = vsub.f32 1.0, %v3803_v29  ;;  %v882_v45 = vmul.f32 %v3803_v29, %v4673_v39 }
 0x3c8   :  { %v878_v5 = vadd.f32 %v877_v20, %v4588_v26 }
 0x3ca   :  { %3804 = vtanh.f32 %v878_v5 }
 0x3d4   :  { %v3805_v8 = vpop.eup %3804 }
 0x3d5   :  { %v881_v0 = vmul.f32 %v3805_v8, %v880_v46 }
 0x3d7   :  { %v4717_v37 = vadd.f32 %v882_v45, %v881_v0 }
 0x3d9   :  { %v892_v50 = vpack.c.bf16 %v4717_v37, %v4717_v37 }
 0x3db   :  { %926 = vmatmul.mubr.bf16.vlgmr.msra.gmra.mrb[28].mxu0 %v892_v50  ;;  %3313 = vmatmul.mubr.bf16.vlgmr.msra.gmra.mrb[20].mxu1 %v892_v50 }
 0x3dc   :  { %1006 = vmatpush1.bf16.msra.mxu0 %v4411_v21  ;;  %3317 = vmatpush3.bf16.msra.mxu1 %v4432_v49 }
 0x3dd   :  { %1007 = vmatprep.subr.bf16.mxu0 %v4414_v22  ;;  %3318 = vmatprep.subr.bf16.mxu1 %v5494_v62 }
 0x3de   :  { %1037 = vmatprep.mubr.bf16.mxu0 %v5495_v9  ;;  %3332 = vmatprep.mubr.msk.bf16.mxu1 %vm4185_vm1, %v5494_v62 }
 0x3e0   :  { %1008 = vmatpush1.bf16.msra.mxu0 %v4419_v31  ;;  %3319 = vmatpush3.bf16.msra.mxu1 %v4445_v59 }
 0x3e1   :  { %1009 = vmatprep.subr.bf16.mxu0 %v4422_v34  ;;  %3320 = vmatprep.subr.bf16.mxu1 %v5494_v62 }
 0x3e4   :  { %1010 = vmatpush1.bf16.msra.mxu0 %v4427_v42  ;;  %3321 = vmatpush3.bf16.msra.mxu1 %v4459_v6 }
 0x3e5   :  { %1011 = vmatprep.subr.bf16.mxu0 %v4430_v44  ;;  %3322 = vmatprep.subr.bf16.mxu1 %v5494_v62 }
 0x3e8   :  { %1012 = vmatpush1.bf16.msra.mxu0 %v4438_v53  ;;  %3323 = vmatpush3.bf16.msra.mxu1 %v4473_v18 }
 0x3e9   :  { %1013 = vmatprep.subr.bf16.mxu0 %v4441_v54  ;;  %3324 = vmatprep.subr.bf16.mxu1 %v5494_v62 }
 0x3ec   :  { %1014 = vmatpush1.bf16.msra.mxu0 %v4452_v63  ;;  %3325 = vmatpush3.bf16.msra.mxu1 %v4487_v28 }
 0x3ed   :  { %1015 = vmatprep.subr.bf16.mxu0 %v4455_v1  ;;  %3326 = vmatprep.subr.bf16.mxu1 %v5494_v62 }
 0x3f0   :  { %1016 = vmatpush1.bf16.msra.mxu0 %v4466_v10  ;;  %3327 = vmatpush3.bf16.msra.mxu1 %v4499_v33 }
 0x3f1   :  { %1017 = vmatprep.subr.bf16.mxu0 %v4469_v12  ;;  %3328 = vmatprep.subr.bf16.mxu1 %v5494_v62 }
 0x3f4   :  { %1018 = vmatpush1.bf16.msra.mxu0 %v4480_v23  ;;  %3329 = vmatpush3.bf16.msra.mxu1 %v4507_v38 }
 0x3f5   :  { %1019 = vmatprep.subr.bf16.mxu0 %v4483_v25  ;;  %3330 = vmatprep.subr.bf16.mxu1 %v5494_v62 }
 0x3f8   :  { %1020 = vmatpush1.bf16.msra.mxu0 %v4495_v32  ;;  %3331 = vmatpush3.bf16.msra.mxu1 %v4515_v41 }
 0x3f9   :  { %1117 = vmatprep.subr.bf16.mxu0 %v4409_v16  ;;  %3336 = vmatprep.subr.bf16.mxu1 %v5494_v62 }
 0x4ae   :  { %v927_v26 = vpop.f32.mrb[28].mxu0  ;;  %v968_v2 = vpop.f32.mrb[20].mxu1 }
 0x4af   :  { %v974_v51 = vadd.f32 %v927_v26, %v4580_v13  ;;  %v929_v52 = vpop.f32.mrb[29].mxu0  ;;  %v3314_v55 = vpop.f32.mrb[21].mxu1  ;;  %v988_v29 = vadd.f32 %v4621_v48, %v968_v2 }
 0x4b0   :  { %v981_v56 = vadd.f32 %v929_v52, %v4582_v15  ;;  %v931_v14 = vpop.f32.mrb[30].mxu0  ;;  %v971_v58 = vpop.f32.mrb[22].mxu1 }
 0x4b1   :  { %v2985_v24 = vmul.f32 -1.442695, %v974_v51  ;;  %v932_v61 = vpop.f32.mrb[31].mxu0  ;;  %v3315_v4 = vpop.f32.mrb[23].mxu1 }
 0x4b2   :  { %v2986_v7 = vmul.f32 -1.442695, %v981_v56 }
 0x4b3   :  { %3806 = vpow2.f32 %v2985_v24 }
 0x4b4   :  { %3808 = vpow2.f32 %v2986_v7 }
 0x4bd   :  { %v3807_v11 = vpop.eup %3806 }
 0x4be   :  { %v978_v3 = vadd.f32 1.0, %v3807_v11  ;;  %v3809_v20 = vpop.eup %3808 }
 0x4bf   :  { %v985_v5 = vadd.f32 1.0, %v3809_v20 }
 0x4c0   :  { %3810 = vrcp.f32 %v978_v3 }
 0x4c1   :  { %3812 = vrcp.f32 %v985_v5 }
 0x4ca   :  { %v3811_v13 = vpop.eup %3810 }
 0x4cb   :  { %v989_v46 = vmul.f32 %v3811_v13, %v988_v29  ;;  %v3813_v8 = vpop.eup %3812 }
 0x4cc   :  { %v992_v0 = vsub.f32 1.0, %v3813_v8  ;;  %v994_v26 = vmul.f32 %v3813_v8, %v4717_v37 }
 0x4cd   :  { %v990_v15 = vadd.f32 %v989_v46, %v4585_v19 }
 0x4cf   :  { %3814 = vtanh.f32 %v990_v15 }
 0x4d9   :  { %v3815_v45 = vpop.eup %3814 }
 0x4da   :  { %v993_v50 = vmul.f32 %v3815_v45, %v992_v0 }
 0x4dc   :  { %v4761_v51 = vadd.f32 %v994_v26, %v993_v50 }
 0x4de   :  { %v1004_v52 = vpack.c.bf16 %v4761_v51, %v4761_v51 }
 0x4e0   :  { %1038 = vmatmul.mubr.bf16.vlgmr.msra.gmra.mrb[32].mxu0 %v1004_v52  ;;  %3333 = vmatmul.mubr.bf16.vlgmr.msra.gmra.mrb[24].mxu1 %v1004_v52 }
 0x4e1   :  { %1118 = vmatpush1.bf16.msra.mxu0 %v4411_v21  ;;  %3337 = vmatpush3.bf16.msra.mxu1 %v4432_v49 }
 0x4e2   :  { %1119 = vmatprep.subr.bf16.mxu0 %v4414_v22  ;;  %3338 = vmatprep.subr.bf16.mxu1 %v5494_v62 }
 0x4e3   :  { %1149 = vmatprep.mubr.bf16.mxu0 %v5495_v9  ;;  %3352 = vmatprep.mubr.msk.bf16.mxu1 %vm4185_vm1, %v5494_v62 }
 0x4e5   :  { %1120 = vmatpush1.bf16.msra.mxu0 %v4419_v31  ;;  %3339 = vmatpush3.bf16.msra.mxu1 %v4445_v59 }
 0x4e6   :  { %1121 = vmatprep.subr.bf16.mxu0 %v4422_v34  ;;  %3340 = vmatprep.subr.bf16.mxu1 %v5494_v62 }
 0x4e9   :  { %1122 = vmatpush1.bf16.msra.mxu0 %v4427_v42  ;;  %3341 = vmatpush3.bf16.msra.mxu1 %v4459_v6 }
 0x4ea   :  { %1123 = vmatprep.subr.bf16.mxu0 %v4430_v44  ;;  %3342 = vmatprep.subr.bf16.mxu1 %v5494_v62 }
 0x4ed   :  { %1124 = vmatpush1.bf16.msra.mxu0 %v4438_v53  ;;  %3343 = vmatpush3.bf16.msra.mxu1 %v4473_v18 }
 0x4ee   :  { %1125 = vmatprep.subr.bf16.mxu0 %v4441_v54  ;;  %3344 = vmatprep.subr.bf16.mxu1 %v5494_v62 }
 0x4f1   :  { %1126 = vmatpush1.bf16.msra.mxu0 %v4452_v63  ;;  %3345 = vmatpush3.bf16.msra.mxu1 %v4487_v28 }
 0x4f2   :  { %1127 = vmatprep.subr.bf16.mxu0 %v4455_v1  ;;  %3346 = vmatprep.subr.bf16.mxu1 %v5494_v62 }
 0x4f5   :  { %1128 = vmatpush1.bf16.msra.mxu0 %v4466_v10  ;;  %3347 = vmatpush3.bf16.msra.mxu1 %v4499_v33 }
 0x4f6   :  { %1129 = vmatprep.subr.bf16.mxu0 %v4469_v12  ;;  %3348 = vmatprep.subr.bf16.mxu1 %v5494_v62 }
 0x4f9   :  { %1130 = vmatpush1.bf16.msra.mxu0 %v4480_v23  ;;  %3349 = vmatpush3.bf16.msra.mxu1 %v4507_v38 }
 0x4fa   :  { %1131 = vmatprep.subr.bf16.mxu0 %v4483_v25  ;;  %3350 = vmatprep.subr.bf16.mxu1 %v5494_v62 }
 0x4fd   :  { %1132 = vmatpush1.bf16.msra.mxu0 %v4495_v32  ;;  %3351 = vmatpush3.bf16.msra.mxu1 %v4515_v41 }
 0x4fe   :  { %1229 = vmatprep.subr.bf16.mxu0 %v4409_v16  ;;  %3356 = vmatprep.subr.bf16.mxu1 %v5494_v62 }
 0x5b3   :  { %v1039_v19 = vpop.f32.mrb[32].mxu0  ;;  %v1080_v2 = vpop.f32.mrb[24].mxu1 }
 0x5b4   :  { %v1086_v55 = vadd.f32 %v1039_v19, %v4590_v27  ;;  %v1041_v56 = vpop.f32.mrb[33].mxu0  ;;  %v3334_v14 = vpop.f32.mrb[25].mxu1  ;;  %v1100_v46 = vadd.f32 %v4621_v48, %v1080_v2 }
 0x5b5   :  { %v1093_v58 = vadd.f32 %v1041_v56, %v4592_v30  ;;  %v1043_v24 = vpop.f32.mrb[34].mxu0  ;;  %v1083_v61 = vpop.f32.mrb[26].mxu1 }
 0x5b6   :  { %v2987_v4 = vmul.f32 -1.442695, %v1086_v55  ;;  %v1044_v7 = vpop.f32.mrb[35].mxu0  ;;  %v3335_v11 = vpop.f32.mrb[27].mxu1 }
 0x5b7   :  { %v2988_v3 = vmul.f32 -1.442695, %v1093_v58 }
 0x5b8   :  { %3816 = vpow2.f32 %v2987_v4 }
 0x5b9   :  { %3818 = vpow2.f32 %v2988_v3 }
 0x5c2   :  { %v3817_v20 = vpop.eup %3816 }
 0x5c3   :  { %v1090_v5 = vadd.f32 1.0, %v3817_v20  ;;  %v3819_v29 = vpop.eup %3818 }
 0x5c4   :  { %v1097_v13 = vadd.f32 1.0, %v3819_v29 }
 0x5c5   :  { %3820 = vrcp.f32 %v1090_v5 }
 0x5c6   :  { %3822 = vrcp.f32 %v1097_v13 }
 0x5cf   :  { %v3821_v27 = vpop.eup %3820 }
 0x5d0   :  { %v1101_v15 = vmul.f32 %v3821_v27, %v1100_v46  ;;  %v3823_v8 = vpop.eup %3822 }
 0x5d1   :  { %v1104_v0 = vsub.f32 1.0, %v3823_v8  ;;  %v1106_v26 = vmul.f32 %v3823_v8, %v4761_v51 }
 0x5d2   :  { %v1102_v30 = vadd.f32 %v1101_v15, %v4598_v43 }
 0x5d4   :  { %3824 = vtanh.f32 %v1102_v30 }
 0x5de   :  { %v3825_v45 = vpop.eup %3824 }
 0x5df   :  { %v1105_v50 = vmul.f32 %v3825_v45, %v1104_v0 }
 0x5e1   :  { %v4805_v52 = vadd.f32 %v1106_v26, %v1105_v50 }
 0x5e3   :  { %v1116_v19 = vpack.c.bf16 %v4805_v52, %v4805_v52 }
 0x5e5   :  { %1150 = vmatmul.mubr.bf16.vlgmr.msra.gmra.mrb[36].mxu0 %v1116_v19  ;;  %3353 = vmatmul.mubr.bf16.vlgmr.msra.gmra.mrb[28].mxu1 %v1116_v19  ;;  %v5497_v19 = vld [vmem:[#allocation28_spill] sm:$0xff] }
 0x5e6   :  { %1230 = vmatpush1.bf16.msra.mxu0 %v4411_v21  ;;  %3357 = vmatpush3.bf16.msra.mxu1 %v4432_v49 }
 0x5e7   :  { %1231 = vmatprep.subr.bf16.mxu0 %v4414_v22  ;;  %3358 = vmatprep.subr.bf16.mxu1 %v5494_v62 }
 0x5e8   :  { %1261 = vmatprep.mubr.bf16.mxu0 %v5495_v9  ;;  %3372 = vmatprep.mubr.msk.bf16.mxu1 %vm4185_vm1, %v5494_v62 }
 0x5ea   :  { %1232 = vmatpush1.bf16.msra.mxu0 %v4419_v31  ;;  %3359 = vmatpush3.bf16.msra.mxu1 %v4445_v59 }
 0x5eb   :  { %1233 = vmatprep.subr.bf16.mxu0 %v4422_v34  ;;  %3360 = vmatprep.subr.bf16.mxu1 %v5494_v62 }
 0x5ee   :  { %1234 = vmatpush1.bf16.msra.mxu0 %v4427_v42  ;;  %3361 = vmatpush3.bf16.msra.mxu1 %v4459_v6 }
 0x5ef   :  { %1235 = vmatprep.subr.bf16.mxu0 %v4430_v44  ;;  %3362 = vmatprep.subr.bf16.mxu1 %v5494_v62 }
 0x5f2   :  { %1236 = vmatpush1.bf16.msra.mxu0 %v4438_v53  ;;  %3363 = vmatpush3.bf16.msra.mxu1 %v4473_v18 }
 0x5f3   :  { %1237 = vmatprep.subr.bf16.mxu0 %v4441_v54  ;;  %3364 = vmatprep.subr.bf16.mxu1 %v5494_v62 }
 0x5f6   :  { %1238 = vmatpush1.bf16.msra.mxu0 %v4452_v63  ;;  %3365 = vmatpush3.bf16.msra.mxu1 %v4487_v28 }
 0x5f7   :  { %1239 = vmatprep.subr.bf16.mxu0 %v4455_v1  ;;  %3366 = vmatprep.subr.bf16.mxu1 %v5494_v62 }
 0x5fa   :  { %1240 = vmatpush1.bf16.msra.mxu0 %v4466_v10  ;;  %3367 = vmatpush3.bf16.msra.mxu1 %v4499_v33 }
 0x5fb   :  { %1241 = vmatprep.subr.bf16.mxu0 %v4469_v12  ;;  %3368 = vmatprep.subr.bf16.mxu1 %v5494_v62 }
 0x5fe   :  { %1242 = vmatpush1.bf16.msra.mxu0 %v4480_v23  ;;  %3369 = vmatpush3.bf16.msra.mxu1 %v4507_v38 }
 0x5ff   :  { %1243 = vmatprep.subr.bf16.mxu0 %v4483_v25  ;;  %3370 = vmatprep.subr.bf16.mxu1 %v5494_v62 }
 0x602   :  { %1244 = vmatpush1.bf16.msra.mxu0 %v4495_v32  ;;  %3371 = vmatpush3.bf16.msra.mxu1 %v4515_v41 }
 0x603   :  { %1341 = vmatprep.subr.bf16.mxu0 %v4409_v16  ;;  %3376 = vmatprep.subr.bf16.mxu1 %v5494_v62 }
 0x6b8   :  { %v1151_v43 = vpop.f32.mrb[36].mxu0  ;;  %v1192_v2 = vpop.f32.mrb[28].mxu1 }
 0x6b9   :  { %v1198_v55 = vadd.f32 %v1151_v43, %v4600_v47  ;;  %v1153_v56 = vpop.f32.mrb[37].mxu0  ;;  %v3354_v14 = vpop.f32.mrb[29].mxu1  ;;  %v1212_v13 = vadd.f32 %v4621_v48, %v1192_v2 }
 0x6ba   :  { %v1205_v58 = vadd.f32 %v1153_v56, %v4602_v60  ;;  %v1155_v24 = vpop.f32.mrb[38].mxu0  ;;  %v1195_v61 = vpop.f32.mrb[30].mxu1 }
 0x6bb   :  { %v2989_v4 = vmul.f32 -1.442695, %v1198_v55  ;;  %v1156_v7 = vpop.f32.mrb[39].mxu0  ;;  %v3355_v11 = vpop.f32.mrb[31].mxu1  ;;  %v1454_v24 = vld [vmem:[#allocation15] sm:$0xff]  ;;  %v1457_v61 = vld [vmem:[#allocation15 + $0x18] sm:$0xff] }
 0x6bc   :  { %v2990_v3 = vmul.f32 -1.442695, %v1205_v58  ;;  %v1464_v7 = vld [vmem:[#allocation15 + $0x50] sm:$0xff] }
 0x6bd   :  { %3826 = vpow2.f32 %v2989_v4  ;;  %v1461_v4 = vld [vmem:[#allocation15 + $0x38] sm:$0xff] }
 0x6be   :  { %3828 = vpow2.f32 %v2990_v3  ;;  %v1462_v3 = vld [vmem:[#allocation15 + $0x40] sm:$0xff] }
 0x6c7   :  { %v3827_v20 = vpop.eup %3826 }
 0x6c8   :  { %v1202_v16 = vadd.f32 1.0, %v3827_v20  ;;  %v3829_v5 = vpop.eup %3828  ;;  %v3664_v20 = vpack.c.bf16 %v1457_v61, %v1454_v24 }
 0x6c9   :  { %v1209_v29 = vadd.f32 1.0, %v3829_v5  ;;  %v3666_v5 = vpack.c.bf16 %v1464_v7, %v1461_v4  ;;  %v1490_v4 = vld [vmem:[#allocation15 + $0x120] sm:$0xff]  ;;  %v1493_v7 = vld [vmem:[#allocation15 + $0x138] sm:$0xff] }
 0x6ca   :  { %3830 = vrcp.f32 %v1202_v16 }
 0x6cb   :  { %3832 = vrcp.f32 %v1209_v29  ;;  %v1460_v29 = vld [vmem:[#allocation15 + $0x30] sm:$0xff] }
 0x6d4   :  { %v3831_v47 = vpop.eup %3830 }
 0x6d5   :  { %v1213_v46 = vmul.f32 %v3831_v47, %v1212_v13  ;;  %v3833_v27 = vpop.eup %3832  ;;  %v1463_v13 = vld [vmem:[#allocation15 + $0x48] sm:$0xff] }
 0x6d6   :  { %v1216_v15 = vsub.f32 1.0, %v3833_v27  ;;  %v1218_v0 = vmul.f32 %v3833_v27, %v4805_v52  ;;  %v1467_v47 = vld [vmem:[#allocation15 + $0x68] sm:$0xff]  ;;  %v1468_v27 = vld [vmem:[#allocation15 + $0x70] sm:$0xff] }
 0x6d7   :  { %v1214_v60 = vadd.f32 %v1213_v46, %v4595_v36 }
 0x6d9   :  { %3834 = vtanh.f32 %v1214_v60  ;;  %v1470_v60 = vld [vmem:[#allocation15 + $0x80] sm:$0xff] }
 0x6e3   :  { %v3835_v30 = vpop.eup %3834 }
 0x6e4   :  { %v1217_v8 = vmul.f32 %v3835_v30, %v1216_v15  ;;  %v1471_v15 = vld [vmem:[#allocation15 + $0x88] sm:$0xff]  ;;  %v3668_v30 = vpack.c.bf16 %v1463_v13, %v1460_v29 }
 0x6e6   :  { %v4849_v45 = vadd.f32 %v1218_v0, %v1217_v8  ;;  %v3670_v8 = vpack.c.bf16 %v1470_v60, %v1467_v47  ;;  %v3702_v0 = vpack.c.bf16 %v1471_v15, %v1468_v27  ;;  %v1496_v47 = vld [vmem:[#allocation15 + $0x150] sm:$0xff]  ;;  %v1762_v27 = vld [vmem:[#allocation12] sm:$0xff]  ;;  %v1763_v15 = vld [vmem:[#allocation12 + $0x8] sm:$0xff] }
 0x6e8   :  { %v1228_v50 = vpack.c.bf16 %v4849_v45, %v4849_v45 }
 0x6ea   :  { %1262 = vmatmul.mubr.bf16.vlgmr.msra.gmra.mrb[40].mxu0 %v1228_v50  ;;  %3373 = vmatmul.mubr.bf16.vlgmr.msra.gmra.mrb[32].mxu1 %v1228_v50  ;;  %v1466_v50 = vld [vmem:[#allocation15 + $0x60] sm:$0xff] }
 0x6eb   :  { %1342 = vmatpush1.bf16.msra.mxu0 %v4411_v21  ;;  %3377 = vmatpush3.bf16.msra.mxu1 %v4432_v49  ;;  %v1455_v21 = vld [vmem:[#allocation15 + $0x8] sm:$0xff] }
 0x6ec   :  { %1343 = vmatprep.subr.bf16.mxu0 %v4414_v22  ;;  %3378 = vmatprep.subr.bf16.mxu1 %v5494_v62  ;;  %v1458_v22 = vld [vmem:[#allocation15 + $0x20] sm:$0xff] }
 0x6ed   :  { %1373 = vmatprep.mubr.bf16.mxu0 %v5495_v9  ;;  %3392 = vmatprep.mubr.msk.bf16.mxu1 %vm4185_vm1, %v5494_v62 }
 0x6ef   :  { %1344 = vmatpush1.bf16.msra.mxu0 %v4419_v31  ;;  %3379 = vmatpush3.bf16.msra.mxu1 %v4445_v59  ;;  %v1456_v31 = vld [vmem:[#allocation15 + $0x10] sm:$0xff] }
 0x6f0   :  { %1345 = vmatprep.subr.bf16.mxu0 %v4422_v34  ;;  %3380 = vmatprep.subr.bf16.mxu1 %v5494_v62  ;;  %v3662_v34 = vpack.c.bf16 %v1458_v22, %v1455_v21  ;;  %v1469_v21 = vld [vmem:[#allocation15 + $0x78] sm:$0xff] }
 0x6f1   :  { %v1473_v22 = vld [vmem:[#allocation15 + $0x98] sm:$0xff] }
 0x6f3   :  { %1346 = vmatpush1.bf16.msra.mxu0 %v4427_v42  ;;  %3381 = vmatpush3.bf16.msra.mxu1 %v4459_v6  ;;  %v1459_v42 = vld [vmem:[#allocation15 + $0x28] sm:$0xff] }
 0x6f4   :  { %1347 = vmatprep.subr.bf16.mxu0 %v4430_v44  ;;  %3382 = vmatprep.subr.bf16.mxu1 %v5494_v62  ;;  %v3694_v44 = vpack.c.bf16 %v1459_v42, %v1456_v31  ;;  %v1476_v31 = vld [vmem:[#allocation15 + $0xb0] sm:$0xff]  ;;  %v1477_v42 = vld [vmem:[#allocation15 + $0xb8] sm:$0xff] }
 0x6f7   :  { %1348 = vmatpush1.bf16.msra.mxu0 %v4438_v53  ;;  %3383 = vmatpush3.bf16.msra.mxu1 %v4473_v18 }
 0x6f8   :  { %1349 = vmatprep.subr.bf16.mxu0 %v4441_v54  ;;  %3384 = vmatprep.subr.bf16.mxu1 %v5494_v62 }
 0x6fb   :  { %1350 = vmatpush1.bf16.msra.mxu0 %v4452_v63  ;;  %3385 = vmatpush3.bf16.msra.mxu1 %v4487_v28 }
 0x6fc   :  { %1351 = vmatprep.subr.bf16.mxu0 %v4455_v1  ;;  %3386 = vmatprep.subr.bf16.mxu1 %v5494_v62  ;;  %v5496_v1 = vld [vmem:[#allocation29_spill] sm:$0xff] }
 0x6ff   :  { %1352 = vmatpush1.bf16.msra.mxu0 %v4466_v10  ;;  %3387 = vmatpush3.bf16.msra.mxu1 %v4499_v33 }
 0x700   :  { %1353 = vmatprep.subr.bf16.mxu0 %v4469_v12  ;;  %3388 = vmatprep.subr.bf16.mxu1 %v5494_v62 }
 0x703   :  { %1354 = vmatpush1.bf16.msra.mxu0 %v4480_v23  ;;  %3389 = vmatpush3.bf16.msra.mxu1 %v4507_v38 }
 0x704   :  { %1355 = vmatprep.subr.bf16.mxu0 %v4483_v25  ;;  %3390 = vmatprep.subr.bf16.mxu1 %v5494_v62 }
 0x707   :  { %1356 = vmatpush1.bf16.msra.mxu0 %v4495_v32  ;;  %3391 = vmatpush3.bf16.msra.mxu1 %v4515_v41 }
 0x708   :  { %3663 = vmatprep.subr.bf16.mxu0 %v3662_v34  ;;  %3695 = vmatprep.subr.bf16.mxu1 %v3694_v44  ;;  %v1474_v34 = vld [vmem:[#allocation15 + $0xa0] sm:$0xff] }
 0x7bd   :  { %v1263_v49 = vpop.f32.mrb[40].mxu0  ;;  %v1304_v53 = vpop.f32.mrb[32].mxu1 }
 0x7be   :  { %v1310_v54 = vadd.f32 %v1263_v49, %v4610_v17  ;;  %v1265_v59 = vpop.f32.mrb[41].mxu0  ;;  %v3374_v63 = vpop.f32.mrb[33].mxu1  ;;  %v1324_v36 = vadd.f32 %v4621_v48, %v1304_v53  ;;  %v1465_v48 = vld [vmem:[#allocation15 + $0x58] sm:$0xff]  ;;  %v3672_v49 = vpack.c.bf16 %v1469_v21, %v1466_v50  ;;  %v3706_v53 = vpack.c.bf16 %v1477_v42, %v1474_v34  ;;  %v1846_v42 = vld [vmem:[#allocation13] sm:$0xff] }
 0x7bf   :  { %v1317_v6 = vadd.f32 %v1265_v59, %v5496_v1  ;;  %v1267_v10 = vpop.f32.mrb[42].mxu0  ;;  %v1307_v12 = vpop.f32.mrb[34].mxu1  ;;  %v3698_v46 = vpack.c.bf16 %v1465_v48, %v1462_v3  ;;  %v1475_v59 = vld [vmem:[#allocation15 + $0xa8] sm:$0xff]  ;;  %v1482_v1 = vld [vmem:[#allocation15 + $0xe0] sm:$0xff]  ;;  %v1497_v3 = vld [vmem:[#allocation15 + $0x158] sm:$0xff] }
 0x7c0   :  { %v2991_v18 = vmul.f32 -1.442695, %v1310_v54  ;;  %v1268_v23 = vpop.f32.mrb[43].mxu0  ;;  %v3375_v25 = vpop.f32.mrb[35].mxu1  ;;  %v1472_v54 = vld [vmem:[#allocation15 + $0x90] sm:$0xff]  ;;  %v1479_v63 = vld [vmem:[#allocation15 + $0xc8] sm:$0xff] }
 0x7c1   :  { %v2992_v28 = vmul.f32 -1.442695, %v1317_v6  ;;  %v1480_v6 = vld [vmem:[#allocation15 + $0xd0] sm:$0xff]  ;;  %v1483_v10 = vld [vmem:[#allocation15 + $0xe8] sm:$0xff]  ;;  %v3676_v12 = vpack.c.bf16 %v1475_v59, %v1472_v54  ;;  %v1478_v25 = vld [vmem:[#allocation15 + $0xc0] sm:$0xff] }
 0x7c2   :  { %3836 = vpow2.f32 %v2991_v18  ;;  %v3678_v18 = vpack.c.bf16 %v1482_v1, %v1479_v63  ;;  %v3710_v23 = vpack.c.bf16 %v1483_v10, %v1480_v6  ;;  %v1500_v48 = vld [vmem:[#allocation15 + $0x170] sm:$0xff]  ;;  %v1765_v50 = vld [vmem:[#allocation12 + $0x18] sm:$0xff]  ;;  %v1850_v63 = vld [vmem:[#allocation13 + $0x20] sm:$0xff] }
 0x7c3   :  { %3838 = vpow2.f32 %v2992_v28  ;;  %v1481_v28 = vld [vmem:[#allocation15 + $0xd8] sm:$0xff]  ;;  %v3690_v29 = vpack.c.bf16 %v1500_v48, %v1497_v3  ;;  %v1851_v1 = vld [vmem:[#allocation13 + $0x28] sm:$0xff]  ;;  %v1852_v10 = vld [vmem:[#allocation13 + $0x30] sm:$0xff] }
 0x7c4   :  { %v1849_v54 = vld [vmem:[#allocation13 + $0x18] sm:$0xff]  ;;  %v3739_v6 = vpack.c.bf16 %v1851_v1, %v1850_v63 }
 0x7cc   :  { %v3837_v32 = vpop.eup %3836 }
 0x7cd   :  { %v1314_v33 = vadd.f32 1.0, %v3837_v32  ;;  %v3839_v38 = vpop.eup %3838  ;;  %v1485_v32 = vld [vmem:[#allocation15 + $0xf8] sm:$0xff] }
 0x7ce   :  { %v1321_v41 = vadd.f32 1.0, %v3839_v38  ;;  %v1486_v38 = vld [vmem:[#allocation15 + $0x100] sm:$0xff] }
 0x7cf   :  { %3840 = vrcp.f32 %v1314_v33  ;;  %v1488_v33 = vld [vmem:[#allocation15 + $0x110] sm:$0xff] }
 0x7d0   :  { %3842 = vrcp.f32 %v1321_v41  ;;  %v1489_v41 = vld [vmem:[#allocation15 + $0x118] sm:$0xff] }
 0x7d9   :  { %v3841_v17 = vpop.eup %3840 }
 0x7da   :  { %v1325_v26 = vmul.f32 %v3841_v17, %v1324_v36  ;;  %v3843_v2 = vpop.eup %3842  ;;  %v3680_v36 = vpack.c.bf16 %v1481_v28, %v1478_v25  ;;  %v3682_v17 = vpack.c.bf16 %v1488_v33, %v1485_v32  ;;  %v1855_v25 = vld [vmem:[#allocation13 + $0x48] sm:$0xff]  ;;  %v1856_v32 = vld [vmem:[#allocation13 + $0x50] sm:$0xff]  ;;  %v1857_v33 = vld [vmem:[#allocation13 + $0x58] sm:$0xff] }
 0x7db   :  { %v1328_v55 = vsub.f32 1.0, %v3843_v2  ;;  %v1330_v58 = vmul.f32 %v3843_v2, %v4849_v45  ;;  %v1491_v2 = vld [vmem:[#allocation15 + $0x128] sm:$0xff] }
 0x7dc   :  { %v1326_v43 = vadd.f32 %v1325_v26, %v5497_v19  ;;  %v3714_v26 = vpack.c.bf16 %v1489_v41, %v1486_v38  ;;  %v1484_v19 = vld [vmem:[#allocation15 + $0xf0] sm:$0xff]  ;;  %v3748_v38 = vpack.c.bf16 %v1857_v33, %v1856_v32  ;;  %v1761_v32 = vld [vmem:[#allocation4] sm:$0xff] }
 0x7de   :  { %3844 = vtanh.f32 %v1326_v43  ;;  %v1487_v43 = vld [vmem:[#allocation15 + $0x108] sm:$0xff] }
 0x7e8   :  { %v3845_v56 = vpop.eup %3844 }
 0x7e9   :  { %v1329_v14 = vmul.f32 %v3845_v56, %v1328_v55  ;;  %v1494_v55 = vld [vmem:[#allocation15 + $0x140] sm:$0xff]  ;;  %v1492_v56 = vld [vmem:[#allocation15 + $0x130] sm:$0xff] }
 0x7ea   :  { %v3686_v24 = vpack.c.bf16 %v1494_v55, %v1491_v2 }
 0x7eb   :  { %v4891_v11 = vadd.f32 %v1330_v58, %v1329_v14  ;;  %v1495_v14 = vld [vmem:[#allocation15 + $0x148] sm:$0xff]  ;;  %v3684_v58 = vpack.c.bf16 %v1487_v43, %v1484_v19 }
 0x7ec   :  { %v3718_v61 = vpack.c.bf16 %v1495_v14, %v1492_v56 }
 0x7ed   :  { %v1340_v16 = vpack.c.bf16 %v4891_v11, %v4891_v11 }
 0x7ef   :  { %1374 = vmatmul.mubr.bf16.vlgmr.msra.gmra.mrb[44].mxu0 %v1340_v16  ;;  %3393 = vmatmul.mubr.bf16.vlgmr.msra.gmra.mrb[36].mxu1 %v1340_v16  ;;  %v1501_v16 = vld [vmem:[#allocation15 + $0x178] sm:$0xff] }
 0x7f0   :  { %3665 = vmatpush1.bf16.msra.mxu0 %v3664_v20  ;;  %3697 = vmatpush3.bf16.msra.mxu1 %v3694_v44  ;;  %v3674_v44 = vpack.c.bf16 %v1476_v31, %v1473_v22  ;;  %v1498_v20 = vld [vmem:[#allocation15 + $0x160] sm:$0xff]  ;;  %v1991_v22 = vld [vmem:[#allocation16 + $0x8] sm:$0xff]  ;;  %v1993_v31 = vld [vmem:[#allocation16 + $0x18] sm:$0xff] }
 0x7f1   :  { %3428 = vmatprep.mubr.f32.mxu1 %v4625_v35  ;;  %3667 = vmatprep.subr.bf16.mxu0 %v3666_v5  ;;  %v3688_v5 = vpack.c.bf16 %v1493_v7, %v1490_v4  ;;  %v3722_v13 = vpack.c.bf16 %v1501_v16, %v1498_v20  ;;  %v4920_v34 = vpack.c.bf16 %v1993_v31, %v1991_v22  ;;  %v3936_v20 = vld [vmem:[%s5467_s5] ss:$0 sm:$0xff] }
 0x7f2   :  { %3699 = vmatprep.subr.bf16.mxu1 %v3698_v46  ;;  %1583 = vmatprep.mubr.f32.mxu0 %v5494_v62 }
 0x7f4   :  { %3669 = vmatpush1.bf16.msra.mxu0 %v3668_v30  ;;  %3701 = vmatpush3.bf16.msra.mxu1 %v3698_v46  ;;  %v1499_v46 = vld [vmem:[#allocation15 + $0x168] sm:$0xff]  ;;  %v4187_v30 = vmov 0.0|0.0  }
 0x7f5   :  { %3671 = vmatprep.subr.bf16.mxu0 %v3670_v8  ;;  %3703 = vmatprep.subr.bf16.mxu1 %v3702_v0  ;;  %v3692_v60 = vpack.c.bf16 %v1499_v46, %v1496_v47  ;;  %v3727_v8 = vpack.c.bf16 %v1763_v15, %v1762_v27 }
 0x7f8   :  { %3673 = vmatpush1.bf16.msra.mxu0 %v3672_v49  ;;  %3705 = vmatpush3.bf16.msra.mxu1 %v3702_v0  ;;  %v1764_v0 = vld [vmem:[#allocation12 + $0x10] sm:$0xff]  ;;  %v1847_v49 = vld [vmem:[#allocation13 + $0x8] sm:$0xff] }
 0x7f9   :  { %3675 = vmatprep.subr.bf16.mxu0 %v3674_v44  ;;  %3707 = vmatprep.subr.bf16.mxu1 %v3706_v53  ;;  %v3730_v21 = vpack.c.bf16 %v1765_v50, %v1764_v0  ;;  %v1848_v44 = vld [vmem:[#allocation13 + $0x10] sm:$0xff] }
 0x7fa   :  { %v3736_v59 = vpack.c.bf16 %v1849_v54, %v1848_v44 }
 0x7fc   :  { %3677 = vmatpush1.bf16.msra.mxu0 %v3676_v12  ;;  %3709 = vmatpush3.bf16.msra.mxu1 %v3706_v53  ;;  %v3733_v53 = vpack.c.bf16 %v1847_v49, %v1846_v42  ;;  %v1853_v12 = vld [vmem:[#allocation13 + $0x38] sm:$0xff] }
 0x7fd   :  { %3679 = vmatprep.subr.bf16.mxu0 %v3678_v18  ;;  %3711 = vmatprep.subr.bf16.mxu1 %v3710_v23  ;;  %v3742_v18 = vpack.c.bf16 %v1853_v12, %v1852_v10  ;;  %v1990_v10 = vld [vmem:[#allocation16] sm:$0xff]  ;;  %v1992_v12 = vld [vmem:[#allocation16 + $0x10] sm:$0xff] }
 0x7fe   :  { %v4974_v33 = vpack.c.bf16 %v1992_v12, %v1990_v10  ;;  %v2010_v10 = vld [vmem:[#allocation16 + $0xa0] sm:$0xff]  ;;  %v2012_v12 = vld [vmem:[#allocation16 + $0xb0] sm:$0xff] }
 0x800   :  { %3681 = vmatpush1.bf16.msra.mxu0 %v3680_v36  ;;  %3713 = vmatpush3.bf16.msra.mxu1 %v3710_v23  ;;  %v1854_v23 = vld [vmem:[#allocation13 + $0x40] sm:$0xff] }
 0x801   :  { %3683 = vmatprep.subr.bf16.mxu0 %v3682_v17  ;;  %3715 = vmatprep.subr.bf16.mxu1 %v3714_v26  ;;  %v3745_v28 = vpack.c.bf16 %v1855_v25, %v1854_v23  ;;  %v5498_v17 = vld [vmem:[#allocation30_spill] sm:$0xff]  ;;  %v1997_v23 = vld [vmem:[#allocation16 + $0x38] sm:$0xff] }
 0x804   :  { %3685 = vmatpush1.bf16.msra.mxu0 %v3684_v58  ;;  %3717 = vmatpush3.bf16.msra.mxu1 %v3714_v26 }
 0x805   :  { %3687 = vmatprep.subr.bf16.mxu0 %v3686_v24  ;;  %3719 = vmatprep.subr.bf16.mxu1 %v3718_v61 }
 0x808   :  { %3689 = vmatpush1.bf16.msra.mxu0 %v3688_v5  ;;  %3721 = vmatpush3.bf16.msra.mxu1 %v3718_v61 }
 0x809   :  { %3691 = vmatprep.subr.bf16.mxu0 %v3690_v29  ;;  %3723 = vmatprep.subr.bf16.mxu1 %v3722_v13  ;;  %v5499_v29 = vld [vmem:[#allocation27_spill] sm:$0xff] }
 0x80c   :  { %3693 = vmatpush1.bf16.msra.mxu0 %v3692_v60  ;;  %3725 = vmatpush3.bf16.msra.mxu1 %v3722_v13 }
 0x80d   :  { %3726 = vmatprep.subr.bf16.mxu1 %v4187_v30  ;;  %3732 = vmatprep.subr.bf16.mxu0 %v4187_v30 }
 0x80f   :  { %1584 = vmatmul.mubr.f32.vlgmr.msra.gmra.mrb[48].mxu0 %v4625_v35  ;;  %3429 = vmatmul.mubr.f32.vlgmr.msra.gmra.mrb[40].mxu1 %v4673_v39 }
 0x810   :  { %3431 = vmatprep.mubr.f32.mxu1 %v4717_v37  ;;  %1589 = vmatprep.mubr.f32.mxu0 %v5494_v62 }
 0x811   :  { %3728 = vmatpush3.bf16.msra.mxu1 %v3727_v8  ;;  %3734 = vmatpush3.bf16.msra.mxu0 %v3733_v53 }
 0x812   :  { %3729 = vmatprep.subr.bf16.mxu1 %v4187_v30  ;;  %3735 = vmatprep.subr.bf16.mxu0 %v4187_v30 }
 0x813   :  { %1590 = vmatmul.mubr.f32.gmra.mrb[50].mxu0 %v4673_v39  ;;  %3432 = vmatmul.mubr.f32.gmra.mrb[42].mxu1 %v4761_v51 }
 0x814   :  { %3434 = vmatprep.mubr.f32.mxu1 %v4805_v52  ;;  %1595 = vmatprep.mubr.f32.mxu0 %v5494_v62 }
 0x815   :  { %3731 = vmatpush3.bf16.msra.mxu1 %v3730_v21  ;;  %3737 = vmatpush3.bf16.msra.mxu0 %v3736_v59 }
 0x816   :  { %2068 = vmatprep.subr.bf16.mxu1 %v4920_v34  ;;  %3738 = vmatprep.subr.bf16.mxu0 %v4187_v30 }
 0x817   :  { %1596 = vmatmul.mubr.f32.gmra.mrb[52].mxu0 %v4717_v37  ;;  %3435 = vmatmul.mubr.f32.gmra.mrb[44].mxu1 %v4849_v45 }
 0x818   :  { %3437 = vmatprep.mubr.f32.mxu1 %v4891_v11  ;;  %1601 = vmatprep.mubr.f32.mxu0 %v5494_v62 }
 0x819   :  { %3740 = vmatpush3.bf16.msra.mxu0 %v3739_v6 }
 0x81a   :  { %3741 = vmatprep.subr.bf16.mxu0 %v4187_v30 }
 0x81b   :  { %1602 = vmatmul.mubr.f32.gmra.mrb[54].mxu0 %v4761_v51 }
 0x81c   :  { %1607 = vmatprep.mubr.f32.mxu0 %v5494_v62 }
 0x81d   :  { %3743 = vmatpush3.bf16.msra.mxu0 %v3742_v18  ;;  %v1995_v18 = vld [vmem:[#allocation16 + $0x28] sm:$0xff] }
 0x81e   :  { %3744 = vmatprep.subr.bf16.mxu0 %v4187_v30 }
 0x81f   :  { %1608 = vmatmul.mubr.f32.gmra.mrb[56].mxu0 %v4805_v52 }
 0x820   :  { %1613 = vmatprep.mubr.f32.mxu0 %v5494_v62 }
 0x821   :  { %3746 = vmatpush3.bf16.msra.mxu0 %v3745_v28 }
 0x822   :  { %3747 = vmatprep.subr.bf16.mxu0 %v4187_v30 }
 0x823   :  { %1614 = vmatmul.mubr.f32.gmra.mrb[58].mxu0 %v4849_v45 }
 0x824   :  { %1619 = vmatprep.mubr.f32.mxu0 %v5494_v62 }
 0x825   :  { %3749 = vmatpush3.bf16.msra.mxu0 %v3748_v38  ;;  %v4978_v38 = vpack.c.bf16 %v1997_v23, %v1995_v18  ;;  %v2015_v18 = vld [vmem:[#allocation16 + $0xc8] sm:$0xff]  ;;  %v2017_v23 = vld [vmem:[#allocation16 + $0xd8] sm:$0xff] }
 0x826   :  { %3750 = vmatprep.subr.bf16.mxu0 %v4187_v30 }
 0x827   :  { %1620 = vmatmul.mubr.f32.gmra.mrb[60].mxu0 %v4891_v11 }
 0x828   :  { %1625 = vmatprep.mubr.f32.mxu0 %v5494_v62 }
 0x8c2   :  { %v1375_v41 = vpop.f32.mrb[44].mxu0  ;;  %v1416_v36 = vpop.f32.mrb[36].mxu1 }
 0x8c3   :  { %v1422_v26 = vadd.f32 %v1375_v41, %v5498_v17  ;;  %v1377_v19 = vpop.f32.mrb[45].mxu0  ;;  %v3394_v43 = vpop.f32.mrb[37].mxu1  ;;  %v1436_v16 = vadd.f32 %v3936_v20, %v1416_v36  ;;  %v1994_v41 = vld [vmem:[#allocation16 + $0x20] sm:$0xff]  ;;  %v1996_v36 = vld [vmem:[#allocation16 + $0x30] sm:$0xff]  ;;  %v1999_v17 = vld [vmem:[#allocation16 + $0x48] sm:$0xff] }
 0x8c4   :  { %v1429_v2 = vadd.f32 %v1377_v19, %v4616_v40  ;;  %v1379_v55 = vpop.f32.mrb[46].mxu0  ;;  %v1419_v56 = vpop.f32.mrb[38].mxu1  ;;  %v2004_v20 = vld [vmem:[#allocation16 + $0x70] sm:$0xff] }
 0x8c5   :  { %v2993_v14 = vmul.f32 -1.442695, %v1422_v26  ;;  %v1380_v58 = vpop.f32.mrb[47].mxu0  ;;  %v3395_v24 = vpop.f32.mrb[39].mxu1  ;;  %v2001_v26 = vld [vmem:[#allocation16 + $0x58] sm:$0xff]  ;;  %v1998_v56 = vld [vmem:[#allocation16 + $0x40] sm:$0xff] }
 0x8c6   :  { %v2994_v61 = vmul.f32 -1.442695, %v1429_v2  ;;  %v4986_v2 = vpack.c.bf16 %v1996_v36, %v1994_v41  ;;  %v4990_v55 = vpack.c.bf16 %v2001_v26, %v1999_v17  ;;  %v2003_v58 = vld [vmem:[#allocation16 + $0x68] sm:$0xff]  ;;  %v2005_v24 = vld [vmem:[#allocation16 + $0x78] sm:$0xff]  ;;  %v5018_v41 = vpack.c.bf16 %v2017_v23, %v2015_v18  ;;  %v2014_v36 = vld [vmem:[#allocation16 + $0xc0] sm:$0xff] }
 0x8c7   :  { %3846 = vpow2.f32 %v2993_v14  ;;  %v2000_v14 = vld [vmem:[#allocation16 + $0x50] sm:$0xff]  ;;  %v2019_v26 = vld [vmem:[#allocation16 + $0xe8] sm:$0xff]  ;;  %v2038_v23 = vld [vmem:[#allocation18] sm:$0xff] }
 0x8c8   :  { %3848 = vpow2.f32 %v2994_v61  ;;  %v2016_v17 = vld [vmem:[#allocation16 + $0xd0] sm:$0xff] }
 0x8d1   :  { %v3847_v4 = vpop.eup %3846 }
 0x8d2   :  { %v1426_v7 = vadd.f32 1.0, %v3847_v4  ;;  %v3849_v3 = vpop.eup %3848 }
 0x8d3   :  { %v1433_v48 = vadd.f32 1.0, %v3849_v3  ;;  %v5000_v3 = vpack.c.bf16 %v2005_v24, %v2003_v58  ;;  %v2018_v24 = vld [vmem:[#allocation16 + $0xe0] sm:$0xff] }
 0x8d4   :  { %3850 = vrcp.f32 %v1426_v7  ;;  %v4997_v7 = vpack.c.bf16 %v2000_v14, %v1998_v56  ;;  %v2021_v56 = vld [vmem:[#allocation16 + $0xf8] sm:$0xff]  ;;  %v5021_v14 = vpack.c.bf16 %v2016_v17, %v2014_v36  ;;  %v2039_v36 = vld [vmem:[#allocation18 + $0x8] sm:$0xff] }
 0x8d5   :  { %3852 = vrcp.f32 %v1433_v48  ;;  %v2002_v48 = vld [vmem:[#allocation16 + $0x60] sm:$0xff]  ;;  %v5024_v58 = vpack.c.bf16 %v2021_v56, %v2019_v26  ;;  %v2997_v26 = vld [vmem:[%s5471_s9] ss:$0 sm:$0xff]  ;;  %v5066_v56 = vpack.c.bf16 %v2039_v36, %v2038_v23  ;;  %v2044_v36 = vld [vmem:[#allocation18 + $0x30] sm:$0xff] }
 0x8de   :  { %v3851_v5 = vpop.eup %3850 }
 0x8df   :  { %v1437_v40 = vmul.f32 %v3851_v5, %v1436_v16  ;;  %v3853_v21 = vpop.eup %3852  ;;  %v2007_v16 = vld [vmem:[#allocation16 + $0x88] sm:$0xff]  ;;  %v2009_v5 = vld [vmem:[#allocation16 + $0x98] sm:$0xff] }
 0x8e0   :  { %v1440_v44 = vsub.f32 1.0, %v3853_v21  ;;  %v1442_v63 = vmul.f32 %v3853_v21, %v4891_v11  ;;  %v2008_v21 = vld [vmem:[#allocation16 + $0x90] sm:$0xff] }
 0x8e1   :  { %v1438_v13 = vadd.f32 %v1437_v40, %v5499_v29  ;;  %v5003_v40 = vpack.c.bf16 %v2004_v20, %v2002_v48  ;;  %v5006_v29 = vpack.c.bf16 %v2009_v5, %v2007_v16  ;;  %v2020_v48 = vld [vmem:[#allocation16 + $0xf0] sm:$0xff]  ;;  %v1859_v16 = vld [vmem:[#allocation13 + $0x68] sm:$0xff] }
 0x8e2   :  { %v4935_v47 = vpop.f32.mrb[48].mxu0  ;;  %v4937_v46 = vpop.f32.mrb[40].mxu1  ;;  %v5027_v20 = vpack.c.bf16 %v2020_v48, %v2018_v24 }
 0x8e3   :  { %3854 = vtanh.f32 %v1438_v13  ;;  %v4939_v60 = vpop.f32.mrb[49].mxu0  ;;  %v4941_v27 = vpop.f32.mrb[41].mxu1  ;;  %v2006_v13 = vld [vmem:[#allocation16 + $0x80] sm:$0xff] }
 0x8e6   :  { %v4943_v15 = vpop.f32.mrb[50].mxu0  ;;  %v4945_v8 = vpop.f32.mrb[42].mxu1 }
 0x8e7   :  { %v4947_v0 = vpop.f32.mrb[51].mxu0  ;;  %v4949_v50 = vpop.f32.mrb[43].mxu1 }
 0x8ea   :  { %v4951_v22 = vpop.f32.mrb[52].mxu0  ;;  %v4953_v31 = vpop.f32.mrb[44].mxu1 }
 0x8eb   :  { %5500 = vst [vmem:[#allocation29_spill] sm:$0xff] %v4953_v31  ;;  %v4955_v42 = vpop.f32.mrb[53].mxu0  ;;  %v4957_v49 = vpop.f32.mrb[45].mxu1 }
 0x8ec   :  { %5501 = vst [vmem:[#allocation28_spill] sm:$0xff] %v4957_v49 }
 0x8ed   :  { %v3855_v53 = vpop.eup %3854 }
 0x8ee   :  { %v4959_v54 = vpop.f32.mrb[54].mxu0  ;;  %v1441_v59 = vmul.f32 %v3855_v53, %v1440_v44  ;;  %v2011_v44 = vld [vmem:[#allocation16 + $0xa8] sm:$0xff]  ;;  %v2013_v53 = vld [vmem:[#allocation16 + $0xb8] sm:$0xff] }
 0x8ef   :  { %v4962_v1 = vpop.f32.mrb[55].mxu0 }
 0x8f0   :  { %v4964_v6 = vadd.f32 %v1442_v63, %v1441_v59  ;;  %v5009_v59 = vpack.c.bf16 %v2008_v21, %v2006_v13  ;;  %v5012_v63 = vpack.c.bf16 %v2013_v53, %v2011_v44  ;;  %v1860_v13 = vld [vmem:[#allocation13 + $0x70] sm:$0xff]  ;;  %v1861_v21 = vld [vmem:[#allocation13 + $0x78] sm:$0xff] }
 0x8f1   :  { %v3754_v44 = vpack.c.bf16 %v1861_v21, %v1860_v13  ;;  %v2042_v21 = vld [vmem:[#allocation18 + $0x20] sm:$0xff] }
 0x8f2   :  { %v4966_v25 = vpop.f32.mrb[56].mxu0  ;;  %1626 = vmatmul.mubr.f32.gmra.mrb[62].mxu0 %v4964_v6  ;;  %3438 = vmatmul.mubr.f32.gmra.mrb[46].mxu1 %v4964_v6 }
 0x8f3   :  { %v4970_v28 = vpop.f32.mrb[57].mxu0  ;;  %3448 = vmatprep.mubr.msk.f32.mxu1 %vm4185_vm1, %v5494_v62  ;;  %3483 = vmatprep.mubr.msk.f32.mxu0 %vm4185_vm1, %v5494_v62 }
 0x8f4   :  { %5502 = vst [vmem:[#allocation30_spill] sm:$0xff] %v4970_v28 }
 0x8f6   :  { %v4980_v19 = vpop.f32.mrb[58].mxu0  ;;  %3449 = vmatmul.mubr.msk.f32.vlgmr.msra.gmra.mrb[48].mxu1 %vm206_vm0, %v1761_v32  ;;  %v5015_v32 = vpack.c.bf16 %v2012_v12, %v2010_v10 }
 0x8f7   :  { %5503 = vst [vmem:[#allocation27_spill] sm:$0xff] %v4980_v19  ;;  %v4983_v43 = vpop.f32.mrb[59].mxu0  ;;  %2069 = vmatpush1.bf16.msra.mxu1 %v4974_v33  ;;  %2100 = vmatprep.mubr.bf16.mxu1 %v5495_v9 }
 0x8f8   :  { %5504 = vst [vmem:[#allocation31_spill] sm:$0xff] %v4983_v43  ;;  %2070 = vmatprep.subr.bf16.mxu1 %v4978_v38 }
 0x8fa   :  { %v4992_v61 = vpop.f32.mrb[60].mxu0 }
 0x8fb   :  { %5505 = vst [vmem:[#allocation32_spill] sm:$0xff] %v4992_v61  ;;  %v4994_v4 = vpop.f32.mrb[61].mxu0  ;;  %2071 = vmatpush1.bf16.msra.mxu1 %v4986_v2 }
 0x8fc   :  { %5506 = vst [vmem:[#allocation33_spill] sm:$0xff] %v4994_v4  ;;  %2072 = vmatprep.subr.bf16.mxu1 %v4990_v55 }
 0x8ff   :  { %2073 = vmatpush1.bf16.msra.mxu1 %v4997_v7 }
 0x900   :  { %2074 = vmatprep.subr.bf16.mxu1 %v5000_v3 }
 0x903   :  { %2075 = vmatpush1.bf16.msra.mxu1 %v5003_v40 }
 0x904   :  { %2076 = vmatprep.subr.bf16.mxu1 %v5006_v29 }
 0x907   :  { %2077 = vmatpush1.bf16.msra.mxu1 %v5009_v59 }
 0x908   :  { %2078 = vmatprep.subr.bf16.mxu1 %v5012_v63 }
 0x90b   :  { %2079 = vmatpush1.bf16.msra.mxu1 %v5015_v32 }
 0x90c   :  { %2080 = vmatprep.subr.bf16.mxu1 %v5018_v41 }
 0x90f   :  { %2081 = vmatpush1.bf16.msra.mxu1 %v5021_v14 }
 0x910   :  { %2082 = vmatprep.subr.bf16.mxu1 %v5024_v58 }
 0x913   :  { %2083 = vmatpush1.bf16.msra.mxu1 %v5027_v20 }
 0x914   :  { %2177 = vmatprep.subr.bf16.mxu1 %v4920_v34 }
 0x916   :  { %2101 = vmatmul.mubr.bf16.vlgmr.msra.gmra.mrb[52].mxu1 %v4629_v57  ;;  %v1858_v57 = vld [vmem:[#allocation13 + $0x60] sm:$0xff] }
 0x917   :  { %2178 = vmatpush1.bf16.msra.mxu1 %v4974_v33  ;;  %2209 = vmatprep.mubr.bf16.mxu1 %v5495_v9  ;;  %v3751_v5 = vpack.c.bf16 %v1859_v16, %v1858_v57  ;;  %v2040_v57 = vld [vmem:[#allocation18 + $0x10] sm:$0xff]  ;;  %v2041_v16 = vld [vmem:[#allocation18 + $0x18] sm:$0xff] }
 0x918   :  { %2179 = vmatprep.subr.bf16.mxu1 %v4978_v38  ;;  %v5069_v13 = vpack.c.bf16 %v2041_v16, %v2040_v57  ;;  %v2048_v57 = vld [vmem:[#allocation18 + $0x50] sm:$0xff]  ;;  %v2049_v16 = vld [vmem:[#allocation18 + $0x58] sm:$0xff] }
 0x919   :  { %3752 = vmatpush3.bf16.msra.mxu0 %v3751_v5 }
 0x91a   :  { %3753 = vmatprep.subr.bf16.mxu0 %v4187_v30  ;;  %v2995_v30 = vld [vmem:[%s5469_s7] ss:$0 sm:$0xff] }
 0x91b   :  { %2180 = vmatpush1.bf16.msra.mxu1 %v4986_v2 }
 0x91c   :  { %2181 = vmatprep.subr.bf16.mxu1 %v4990_v55 }
 0x91d   :  { %3755 = vmatpush3.bf16.msra.mxu0 %v3754_v44  ;;  %v2043_v44 = vld [vmem:[#allocation18 + $0x28] sm:$0xff] }
 0x91e   :  { %3486 = vmatprep.subr.bf16.mxu0 %v5494_v62  ;;  %v5075_v23 = vpack.c.bf16 %v2043_v44, %v2042_v21  ;;  %v2050_v21 = vld [vmem:[#allocation18 + $0x60] sm:$0xff]  ;;  %v2051_v44 = vld [vmem:[#allocation18 + $0x68] sm:$0xff] }
 0x91f   :  { %2182 = vmatpush1.bf16.msra.mxu1 %v4997_v7 }
 0x920   :  { %2183 = vmatprep.subr.bf16.mxu1 %v5000_v3 }
 0x923   :  { %2184 = vmatpush1.bf16.msra.mxu1 %v5003_v40 }
 0x924   :  { %2185 = vmatprep.subr.bf16.mxu1 %v5006_v29 }
 0x927   :  { %2186 = vmatpush1.bf16.msra.mxu1 %v5009_v59 }
 0x928   :  { %2187 = vmatprep.subr.bf16.mxu1 %v5012_v63 }
 0x92b   :  { %2188 = vmatpush1.bf16.msra.mxu1 %v5015_v32 }
 0x92c   :  { %2189 = vmatprep.subr.bf16.mxu1 %v5018_v41 }
 0x92f   :  { %2190 = vmatpush1.bf16.msra.mxu1 %v5021_v14 }
 0x930   :  { %2191 = vmatprep.subr.bf16.mxu1 %v5024_v58 }
 0x933   :  { %2192 = vmatpush1.bf16.msra.mxu1 %v5027_v20 }
 0x934   :  { %2286 = vmatprep.subr.bf16.mxu1 %v4920_v34 }
 0x9c5   :  { %v5052_v53 = vpop.f32.mrb[62].mxu0  ;;  %v5054_v10 = vpop.f32.mrb[46].mxu1 }
 0x9c6   :  { %5507 = vst [vmem:[#allocation34_spill] sm:$0xff] %v5052_v53  ;;  %5508 = vst [vmem:[#allocation35_spill] sm:$0xff] %v5054_v10  ;;  %v5056_v12 = vpop.f32.mrb[63].mxu0  ;;  %v5058_v18 = vpop.f32.mrb[47].mxu1  ;;  %v5511_v10 = vld [vmem:[#allocation26_spill] sm:$0xff] }
 0x9c7   :  { %5509 = vst [vmem:[#allocation36_spill] sm:$0xff] %v5056_v12  ;;  %5510 = vst [vmem:[#allocation37_spill] sm:$0xff] %v5058_v18  ;;  %v5513_v12 = vsub.s32 1, %v5511_v10 }
 0x9c9   :  { %v1842_v17 = vpop.f32.mrb[48].mxu1 }
 0x9ca   :  { %v1843_v24 = vadd.f32 %v2995_v30, %v1842_v17  ;;  %v3450_v48 = vpop.f32.mrb[49].mxu1  ;;  %v2045_v30 = vld [vmem:[#allocation18 + $0x38] sm:$0xff] }
 0x9cb   :  { %v5079_v17 = vpack.c.bf16 %v2045_v30, %v2044_v36  ;;  %v5093_v36 = vld [vmem:[%s5475_s13] sm:$0x7]  ;;  %v5096_v30 = vpack.c.bf16 %v2051_v44, %v2050_v21  ;;  %s4188_s13 = smov [#allocation19]  }
 0x9cc   :  { %3484 = vmatmul.mubr.f32.vlgmr.msra.gmra.mrb[64].mxu0 %v1843_v24  ;;  %v1939_v5 = vmul.f32 %v2997_v26, %v1843_v24  ;;  %v2046_v26 = vld [vmem:[#allocation18 + $0x40] sm:$0xff]  ;;  %v2047_v24 = vld [vmem:[#allocation18 + $0x48] sm:$0xff]  ;;  %v5107_v53 = vrot.slane %v5093_v36, %v5513_v12  ;;  %s2942_s20 = sshll.u32 %s4188_s13, 4  ;;  %s2943_s20 = int_to_ptr.vmem [resolvable:$true] %s2942_s20 }
 0x9cd   :  { %3487 = vmatpush3.bf16.msra.mxu0 %v5066_v56  ;;  %3502 = vmatprep.mubr.msk.bf16.mxu0 %vm4185_vm1, %v5494_v62  ;;  %v5083_v48 = vpack.c.bf16 %v2047_v24, %v2046_v26  ;;  %v2052_v26 = vld [vmem:[#allocation18 + $0x70] sm:$0xff]  ;;  %v2053_v24 = vld [vmem:[#allocation18 + $0x78] sm:$0xff]  ;;  %s4135_s11 = scalar_lea.vmem %s2943_s20, 128  ;;  %p4140_p3 = scmp.lt.s32.totalorder %s2943_s20, %s2943_s20 }
 0x9ce   :  { %1940 = vadd.xlane.f32.xlu0 %v1939_v5  ;;  %3488 = vmatprep.subr.bf16.mxu0 %v5494_v62  ;;  %v5087_v5 = vpack.c.bf16 %v2049_v16, %v2048_v57  ;;  %v5512_v57 = vsub.s32 0, %v5511_v10  ;;  %v5110_v18 = vpack.c.bf16 %v2053_v24, %v2052_v26  ;;  %v1588_v44 = vadd.f32 %v4939_v60, %v5107_v53  ;;  %p4136_p2 = scmp.ne.s32.totalorder %s2943_s20, %s4135_s11  ;;  %p4141_p4 = scmp.lt.s32.totalorder %s4135_s11, %s4135_s11 }
 0x9d0   :  { %v5102_v16 = vrot.slane %v5093_v36, %v5512_v57  ;;  %p4142_p5 = por %p4141_p4, %p4140_p3 }
 0x9d1   :  { %3489 = vmatpush3.bf16.msra.mxu0 %v5069_v13 }
 0x9d2   :  { %3490 = vmatprep.subr.bf16.mxu0 %v5494_v62  ;;  %v1586_v21 = vadd.f32 %v4935_v47, %v5102_v16  ;;  %p4143_p6 = pnand %p4142_p5, %p4136_p2 }
 0x9d5   :  { %3491 = vmatpush3.bf16.msra.mxu0 %v5075_v23 }
 0x9d6   :  { %3492 = vmatprep.subr.bf16.mxu0 %v5494_v62 }
 0x9d9   :  { %3493 = vmatpush3.bf16.msra.mxu0 %v5079_v17 }
 0x9da   :  { %3494 = vmatprep.subr.bf16.mxu0 %v5494_v62 }
 0x9dd   :  { %3495 = vmatpush3.bf16.msra.mxu0 %v5083_v48 }
 0x9de   :  { %3496 = vmatprep.subr.bf16.mxu0 %v5494_v62 }
 0x9e1   :  { %3497 = vmatpush3.bf16.msra.mxu0 %v5087_v5 }
 0x9e2   :  { %3498 = vmatprep.subr.bf16.mxu0 %v5494_v62 }
 0x9e5   :  { %3499 = vmatpush3.bf16.msra.mxu0 %v5096_v30 }
 0x9e6   :  { %3500 = vmatprep.subr.bf16.mxu0 %v5494_v62 }
 0x9e9   :  { %v2102_v4 = vpop.f32.mrb[52].mxu1  ;;  %3501 = vmatpush3.bf16.msra.mxu0 %v5110_v18 }
 0x9ea   :  { %v2109_v57 = vadd.f32 %v2102_v4, %v1586_v21  ;;  %v2104_v61 = vpop.f32.mrb[53].mxu1  ;;  %3506 = vmatprep.subr.bf16.mxu0 %v5494_v62 }
 0x9eb   :  { %v2116_v12 = vadd.f32 %v2104_v61, %v1588_v44  ;;  %v2106_v31 = vpop.f32.mrb[54].mxu1  ;;  %v5514_v44 = vsub.s32 2, %v5511_v10 }
 0x9ec   :  { %v2107_v43 = vpop.f32.mrb[55].mxu1 }
 0x9ed   :  { %v2999_v26 = vmul.f32 -1.442695, %v2116_v12 }
 0x9ef   :  { %3856 = vpow2.f32 %v2999_v26 }
 0x9f9   :  { %v3857_v24 = vpop.eup %3856 }
 0x9fa   :  { %v2120_v19 = vadd.f32 1.0, %v3857_v24 }
 0x9fc   :  { %3858 = vrcp.f32 %v2120_v19 }
 0xa06   :  { %v3859_v49 = vpop.eup %3858 }
 0xa07   :  { %v2123_v47 = vmul.f32 %v3859_v49, %v4625_v35 }
 0xa09   :  { %v2124_v28 = vpack.c.bf16 %v2123_v47, %v2123_v47  ;;  %v2998_v47 = vmul.f32 -1.442695, %v2109_v57 }
 0xa0b   :  { %3503 = vmatmul.mubr.bf16.vlgmr.msra.gmra.mrb[68].mxu0 %v2124_v28  ;;  %3860 = vpow2.f32 %v2998_v47 }
 0xa0c   :  { %3507 = vmatpush3.bf16.msra.mxu0 %v5066_v56  ;;  %3522 = vmatprep.mubr.msk.bf16.mxu0 %vm4185_vm1, %v5494_v62 }
 0xa0d   :  { %3508 = vmatprep.subr.bf16.mxu0 %v5494_v62 }
 0xa10   :  { %3509 = vmatpush3.bf16.msra.mxu0 %v5069_v13 }
 0xa11   :  { %3510 = vmatprep.subr.bf16.mxu0 %v5494_v62 }
 0xa14   :  { %3511 = vmatpush3.bf16.msra.mxu0 %v5075_v23 }
 0xa15   :  { %3512 = vmatprep.subr.bf16.mxu0 %v5494_v62 }
 0xa18   :  { %3513 = vmatpush3.bf16.msra.mxu0 %v5079_v17 }
 0xa19   :  { %3514 = vmatprep.subr.bf16.mxu0 %v5494_v62 }
 0xa1c   :  { %3515 = vmatpush3.bf16.msra.mxu0 %v5083_v48 }
 0xa1d   :  { %3516 = vmatprep.subr.bf16.mxu0 %v5494_v62 }
 0xa20   :  { %3517 = vmatpush3.bf16.msra.mxu0 %v5087_v5 }
 0xa21   :  { %3518 = vmatprep.subr.bf16.mxu0 %v5494_v62 }
 0xa24   :  { %3519 = vmatpush3.bf16.msra.mxu0 %v5096_v30 }
 0xa25   :  { %3520 = vmatprep.subr.bf16.mxu0 %v5494_v62 }
 0xa28   :  { %3521 = vmatpush3.bf16.msra.mxu0 %v5110_v18 }
 0xa29   :  { %3526 = vmatprep.subr.bf16.mxu0 %v5494_v62 }
 0xa9f   :  { %v1928_v60 = vpop.f32.mrb[64].mxu0 }
 0xaa0   :  { %v3485_v31 = vpop.f32.mrb[65].mxu0  ;;  %v1943_v49 = vmul.f32 %v1928_v60, %v4673_v39  ;;  %v1942_v28 = vmul.f32 %v1928_v60, %v4625_v35  ;;  %v1944_v19 = vmul.f32 %v1928_v60, %v4717_v37  ;;  %v1945_v43 = vmul.f32 %v1928_v60, %v4761_v51 }
 0xaa1   :  { %v1946_v61 = vmul.f32 %v1928_v60, %v4805_v52  ;;  %v1947_v4 = vmul.f32 %v1928_v60, %v4849_v45  ;;  %v1948_v21 = vmul.f32 %v1928_v60, %v4891_v11  ;;  %v1949_v39 = vmul.f32 %v1928_v60, %v4964_v6  ;;  %v3861_v11 = vpop.eup %3860  ;;  %v5153_v6 = vpop.xlane.xlu0 %1940 }
 0xaa2   :  { %1952 = vadd.xlane.f32.xlu1 %v1943_v49  ;;  %1950 = vadd.xlane.f32.xlu0 %v1942_v28  ;;  %v5149_v37 = vrot.slane %v5093_v36, %v5514_v44  ;;  %v2113_v31 = vadd.f32 1.0, %v3861_v11 }
 0xaa4   :  { %v1699_v51 = vadd.f32 %v4941_v27, %v5149_v37  ;;  %3862 = vrcp.f32 %v2113_v31 }
 0xaa6   :  { %1954 = vadd.xlane.f32.xlu1 %v1944_v19  ;;  %1956 = vadd.xlane.f32.xlu0 %v1945_v43 }
 0xaaa   :  { %1958 = vadd.xlane.f32.xlu1 %v1946_v61  ;;  %1960 = vadd.xlane.f32.xlu0 %v1947_v4 }
 0xaae   :  { %1962 = vadd.xlane.f32.xlu1 %v1948_v21  ;;  %1964 = vadd.xlane.f32.xlu0 %v1949_v39  ;;  %v3863_v49 = vpop.eup %3862  ;;  %v1594_v21 = vadd.f32 %v4947_v0, %v5107_v53 }
 0xade   :  { %v2159_v12 = vpop.f32.mrb[68].mxu0 }
 0xadf   :  { %v2165_v52 = vadd.f32 %v2159_v12, %v1699_v51  ;;  %v3504_v26 = vpop.f32.mrb[69].mxu0 }
 0xae0   :  { %v2162_v45 = vpop.f32.mrb[70].mxu0 }
 0xae1   :  { %v3505_v24 = vpop.f32.mrb[71].mxu0  ;;  %3864 = vtanh.f32 %v2165_v52 }
 0xaeb   :  { %v3865_v27 = vpop.eup %3864 }
 0xb2f   :  { %v1951_v10 = vpop.xlane.xlu0 %1950 }
 0xb30   :  { %v1966_v36 = vadd.f32 %v1951_v10, %v5153_v6 }
 0xb32   :  { %v1974_v60 = vmul.f32 0.17677669, %v1966_v36 }
 0xb34   :  { %v2167_v28 = vmul.f32 %v3863_v49, %v1974_v60 }
 0xb36   :  { %v2168_v19 = vsub.f32 1.0, %v2167_v28  ;;  %v2170_v43 = vmul.f32 %v3865_v27, %v2167_v28 }
 0xb38   :  { %v2169_v61 = vmul.f32 %v2168_v19, %v4625_v35  ;;  %v1592_v35 = vadd.f32 %v4943_v15, %v5102_v16  ;;  %v1953_v15 = vpop.xlane.xlu1 %1952 }
 0xb39   :  { %v1967_v36 = vadd.f32 %v1953_v15, %v5153_v6 }
 0xb3a   :  { %v5157_v4 = vadd.f32 %v2170_v43, %v2169_v61  ;;  %v1704_v43 = vadd.f32 %v4937_v46, %v5149_v37  ;;  %v1598_v46 = vadd.f32 %v4951_v22, %v5102_v16 }
 0xb3b   :  { %v1975_v0 = vmul.f32 0.17677669, %v1967_v36 }
 0xb3c   :  { %v2176_v57 = vpack.c.bf16 %v5157_v4, %v5157_v4  ;;  %v1955_v22 = vpop.xlane.xlu1 %1954 }
 0xb3e   :  { %2210 = vmatmul.mubr.bf16.vlgmr.msra.gmra.mrb[56].mxu1 %v2176_v57 }
 0xb3f   :  { %2287 = vmatpush1.bf16.msra.mxu1 %v4974_v33  ;;  %2318 = vmatprep.mubr.bf16.mxu1 %v5495_v9 }
 0xb40   :  { %2288 = vmatprep.subr.bf16.mxu1 %v4978_v38 }
 0xb43   :  { %2289 = vmatpush1.bf16.msra.mxu1 %v4986_v2 }
 0xb44   :  { %2290 = vmatprep.subr.bf16.mxu1 %v4990_v55 }
 0xb47   :  { %2291 = vmatpush1.bf16.msra.mxu1 %v4997_v7 }
 0xb48   :  { %2292 = vmatprep.subr.bf16.mxu1 %v5000_v3 }
 0xb4b   :  { %2293 = vmatpush1.bf16.msra.mxu1 %v5003_v40 }
 0xb4c   :  { %2294 = vmatprep.subr.bf16.mxu1 %v5006_v29 }
 0xb4f   :  { %2295 = vmatpush1.bf16.msra.mxu1 %v5009_v59 }
 0xb50   :  { %2296 = vmatprep.subr.bf16.mxu1 %v5012_v63 }
 0xb53   :  { %2297 = vmatpush1.bf16.msra.mxu1 %v5015_v32 }
 0xb54   :  { %2298 = vmatprep.subr.bf16.mxu1 %v5018_v41 }
 0xb57   :  { %2299 = vmatpush1.bf16.msra.mxu1 %v5021_v14 }
 0xb58   :  { %2300 = vmatprep.subr.bf16.mxu1 %v5024_v58 }
 0xb5b   :  { %2301 = vmatpush1.bf16.msra.mxu1 %v5027_v20 }
 0xb5c   :  { %2395 = vmatprep.subr.bf16.mxu1 %v4920_v34 }
 0xc11   :  { %v2211_v39 = vpop.f32.mrb[56].mxu1 }
 0xc12   :  { %v2218_v44 = vadd.f32 %v2211_v39, %v1592_v35  ;;  %v2213_v51 = vpop.f32.mrb[57].mxu1 }
 0xc13   :  { %v2225_v12 = vadd.f32 %v2213_v51, %v1594_v21  ;;  %v2215_v52 = vpop.f32.mrb[58].mxu1 }
 0xc14   :  { %v3000_v26 = vmul.f32 -1.442695, %v2218_v44  ;;  %v2216_v45 = vpop.f32.mrb[59].mxu1 }
 0xc15   :  { %v3001_v24 = vmul.f32 -1.442695, %v2225_v12 }
 0xc16   :  { %3866 = vpow2.f32 %v3000_v26 }
 0xc17   :  { %3868 = vpow2.f32 %v3001_v24 }
 0xc20   :  { %v3867_v47 = vpop.eup %3866 }
 0xc21   :  { %v3869_v11 = vpop.eup %3868  ;;  %v2222_v31 = vadd.f32 1.0, %v3867_v47 }
 0xc22   :  { %v2229_v10 = vadd.f32 1.0, %v3869_v11 }
 0xc23   :  { %3870 = vrcp.f32 %v2222_v31 }
 0xc24   :  { %3872 = vrcp.f32 %v2229_v10 }
 0xc2d   :  { %v3871_v60 = vpop.eup %3870 }
 0xc2e   :  { %v3873_v49 = vpop.eup %3872  ;;  %v2276_v28 = vmul.f32 %v3871_v60, %v1975_v0 }
 0xc2f   :  { %v2232_v27 = vmul.f32 %v3873_v49, %v5157_v4 }
 0xc30   :  { %v2277_v44 = vsub.f32 1.0, %v2276_v28 }
 0xc31   :  { %v2233_v19 = vpack.c.bf16 %v2232_v27, %v2232_v27 }
 0xc32   :  { %v2278_v52 = vmul.f32 %v2277_v44, %v5157_v4  ;;  %v1600_v4 = vadd.f32 %v4955_v42, %v5107_v53 }
 0xc33   :  { %3523 = vmatmul.mubr.bf16.vlgmr.msra.gmra.mrb[72].mxu0 %v2233_v19  ;;  %v1968_v19 = vadd.f32 %v1955_v22, %v5153_v6 }
 0xc34   :  { %3527 = vmatpush3.bf16.msra.mxu0 %v5066_v56  ;;  %3542 = vmatprep.mubr.msk.bf16.mxu0 %vm4185_vm1, %v5494_v62 }
 0xc35   :  { %3528 = vmatprep.subr.bf16.mxu0 %v5494_v62  ;;  %v1976_v42 = vmul.f32 0.17677669, %v1968_v19 }
 0xc38   :  { %3529 = vmatpush3.bf16.msra.mxu0 %v5069_v13 }
 0xc39   :  { %3530 = vmatprep.subr.bf16.mxu0 %v5494_v62 }
 0xc3c   :  { %3531 = vmatpush3.bf16.msra.mxu0 %v5075_v23 }
 0xc3d   :  { %3532 = vmatprep.subr.bf16.mxu0 %v5494_v62 }
 0xc40   :  { %3533 = vmatpush3.bf16.msra.mxu0 %v5079_v17 }
 0xc41   :  { %3534 = vmatprep.subr.bf16.mxu0 %v5494_v62 }
 0xc44   :  { %3535 = vmatpush3.bf16.msra.mxu0 %v5083_v48 }
 0xc45   :  { %3536 = vmatprep.subr.bf16.mxu0 %v5494_v62 }
 0xc48   :  { %3537 = vmatpush3.bf16.msra.mxu0 %v5087_v5 }
 0xc49   :  { %3538 = vmatprep.subr.bf16.mxu0 %v5494_v62 }
 0xc4c   :  { %3539 = vmatpush3.bf16.msra.mxu0 %v5096_v30 }
 0xc4d   :  { %3540 = vmatprep.subr.bf16.mxu0 %v5494_v62 }
 0xc50   :  { %3541 = vmatpush3.bf16.msra.mxu0 %v5110_v18 }
 0xc51   :  { %3546 = vmatprep.subr.bf16.mxu0 %v5494_v62 }
 0xd06   :  { %v2268_v61 = vpop.f32.mrb[72].mxu0 }
 0xd07   :  { %v2274_v57 = vadd.f32 %v2268_v61, %v1704_v43  ;;  %v3524_v35 = vpop.f32.mrb[73].mxu0 }
 0xd08   :  { %v2271_v21 = vpop.f32.mrb[74].mxu0 }
 0xd09   :  { %3874 = vtanh.f32 %v2274_v57  ;;  %v3525_v39 = vpop.f32.mrb[75].mxu0 }
 0xd0a   :  { %v1709_v39 = vadd.f32 %v4949_v50, %v5149_v37  ;;  %v1604_v50 = vadd.f32 %v4959_v54, %v5102_v16  ;;  %v1957_v54 = vpop.xlane.xlu0 %1956 }
 0xd13   :  { %v3875_v51 = vpop.eup %3874 }
 0xd14   :  { %v2279_v12 = vmul.f32 %v3875_v51, %v2276_v28 }
 0xd16   :  { %v5205_v26 = vadd.f32 %v2279_v12, %v2278_v52 }
 0xd18   :  { %v2285_v45 = vpack.c.bf16 %v5205_v26, %v5205_v26 }
 0xd1a   :  { %2319 = vmatmul.mubr.bf16.vlgmr.msra.gmra.mrb[60].mxu1 %v2285_v45 }
 0xd1b   :  { %2396 = vmatpush1.bf16.msra.mxu1 %v4974_v33  ;;  %2427 = vmatprep.mubr.bf16.mxu1 %v5495_v9 }
 0xd1c   :  { %2397 = vmatprep.subr.bf16.mxu1 %v4978_v38 }
 0xd1f   :  { %2398 = vmatpush1.bf16.msra.mxu1 %v4986_v2 }
 0xd20   :  { %2399 = vmatprep.subr.bf16.mxu1 %v4990_v55 }
 0xd23   :  { %2400 = vmatpush1.bf16.msra.mxu1 %v4997_v7 }
 0xd24   :  { %2401 = vmatprep.subr.bf16.mxu1 %v5000_v3 }
 0xd27   :  { %2402 = vmatpush1.bf16.msra.mxu1 %v5003_v40 }
 0xd28   :  { %2403 = vmatprep.subr.bf16.mxu1 %v5006_v29 }
 0xd2b   :  { %2404 = vmatpush1.bf16.msra.mxu1 %v5009_v59 }
 0xd2c   :  { %2405 = vmatprep.subr.bf16.mxu1 %v5012_v63 }
 0xd2f   :  { %2406 = vmatpush1.bf16.msra.mxu1 %v5015_v32 }
 0xd30   :  { %2407 = vmatprep.subr.bf16.mxu1 %v5018_v41 }
 0xd33   :  { %2408 = vmatpush1.bf16.msra.mxu1 %v5021_v14 }
 0xd34   :  { %2409 = vmatprep.subr.bf16.mxu1 %v5024_v58 }
 0xd37   :  { %2410 = vmatpush1.bf16.msra.mxu1 %v5027_v20 }
 0xd38   :  { %2504 = vmatprep.subr.bf16.mxu1 %v4920_v34 }
 0xded   :  { %v2320_v24 = vpop.f32.mrb[60].mxu1 }
 0xdee   :  { %v2327_v47 = vadd.f32 %v2320_v24, %v1598_v46  ;;  %v2322_v11 = vpop.f32.mrb[61].mxu1 }
 0xdef   :  { %v2334_v31 = vadd.f32 %v2322_v11, %v1600_v4  ;;  %v2324_v10 = vpop.f32.mrb[62].mxu1 }
 0xdf0   :  { %v3002_v15 = vmul.f32 -1.442695, %v2327_v47  ;;  %v2325_v36 = vpop.f32.mrb[63].mxu1 }
 0xdf1   :  { %v3003_v0 = vmul.f32 -1.442695, %v2334_v31 }
 0xdf2   :  { %3876 = vpow2.f32 %v3002_v15 }
 0xdf3   :  { %3878 = vpow2.f32 %v3003_v0 }
 0xdfc   :  { %v3877_v60 = vpop.eup %3876 }
 0xdfd   :  { %v3879_v49 = vpop.eup %3878  ;;  %v2331_v28 = vadd.f32 1.0, %v3877_v60 }
 0xdfe   :  { %v2338_v27 = vadd.f32 1.0, %v3879_v49 }
 0xdff   :  { %3880 = vrcp.f32 %v2331_v28 }
 0xe00   :  { %3882 = vrcp.f32 %v2338_v27 }
 0xe09   :  { %v3881_v43 = vpop.eup %3880 }
 0xe0a   :  { %v3883_v61 = vpop.eup %3882  ;;  %v2385_v57 = vmul.f32 %v3881_v43, %v1976_v42 }
 0xe0b   :  { %v2341_v35 = vmul.f32 %v3883_v61, %v5205_v26  ;;  %v1969_v61 = vadd.f32 %v1957_v54, %v5153_v6 }
 0xe0c   :  { %v2386_v46 = vsub.f32 1.0, %v2385_v57 }
 0xe0d   :  { %v2342_v21 = vpack.c.bf16 %v2341_v35, %v2341_v35 }
 0xe0e   :  { %v2387_v47 = vmul.f32 %v2386_v46, %v5205_v26  ;;  %v1606_v26 = vadd.f32 %v4962_v1, %v5107_v53  ;;  %v1977_v1 = vmul.f32 0.17677669, %v1969_v61 }
 0xe0f   :  { %3543 = vmatmul.mubr.bf16.vlgmr.msra.gmra.mrb[76].mxu0 %v2342_v21 }
 0xe10   :  { %3547 = vmatpush3.bf16.msra.mxu0 %v5066_v56  ;;  %3562 = vmatprep.mubr.msk.bf16.mxu0 %vm4185_vm1, %v5494_v62 }
 0xe11   :  { %3548 = vmatprep.subr.bf16.mxu0 %v5494_v62 }
 0xe14   :  { %3549 = vmatpush3.bf16.msra.mxu0 %v5069_v13 }
 0xe15   :  { %3550 = vmatprep.subr.bf16.mxu0 %v5494_v62 }
 0xe18   :  { %3551 = vmatpush3.bf16.msra.mxu0 %v5075_v23 }
 0xe19   :  { %3552 = vmatprep.subr.bf16.mxu0 %v5494_v62 }
 0xe1c   :  { %3553 = vmatpush3.bf16.msra.mxu0 %v5079_v17 }
 0xe1d   :  { %3554 = vmatprep.subr.bf16.mxu0 %v5494_v62 }
 0xe20   :  { %3555 = vmatpush3.bf16.msra.mxu0 %v5083_v48 }
 0xe21   :  { %3556 = vmatprep.subr.bf16.mxu0 %v5494_v62 }
 0xe24   :  { %3557 = vmatpush3.bf16.msra.mxu0 %v5087_v5 }
 0xe25   :  { %3558 = vmatprep.subr.bf16.mxu0 %v5494_v62 }
 0xe28   :  { %3559 = vmatpush3.bf16.msra.mxu0 %v5096_v30 }
 0xe29   :  { %3560 = vmatprep.subr.bf16.mxu0 %v5494_v62 }
 0xe2c   :  { %3561 = vmatpush3.bf16.msra.mxu0 %v5110_v18 }
 0xe2d   :  { %3566 = vmatprep.subr.bf16.mxu0 %v5494_v62 }
 0xee2   :  { %v2377_v44 = vpop.f32.mrb[76].mxu0 }
 0xee3   :  { %v2383_v51 = vadd.f32 %v2377_v44, %v1709_v39  ;;  %v3544_v12 = vpop.f32.mrb[77].mxu0 }
 0xee4   :  { %v2380_v52 = vpop.f32.mrb[78].mxu0 }
 0xee5   :  { %3884 = vtanh.f32 %v2383_v51  ;;  %v3545_v45 = vpop.f32.mrb[79].mxu0  ;;  %v1714_v51 = vadd.f32 %v4945_v8, %v5149_v37  ;;  %v1610_v8 = vadd.f32 %v4966_v25, %v5102_v16  ;;  %v1959_v25 = vpop.xlane.xlu1 %1958 }
 0xeef   :  { %v3885_v4 = vpop.eup %3884 }
 0xef0   :  { %v2388_v24 = vmul.f32 %v3885_v4, %v2385_v57 }
 0xef2   :  { %v5253_v11 = vadd.f32 %v2388_v24, %v2387_v47 }
 0xef4   :  { %v2394_v31 = vpack.c.bf16 %v5253_v11, %v5253_v11 }
 0xef6   :  { %2428 = vmatmul.mubr.bf16.vlgmr.msra.gmra.mrb[64].mxu1 %v2394_v31 }
 0xef7   :  { %2505 = vmatpush1.bf16.msra.mxu1 %v4974_v33  ;;  %2536 = vmatprep.mubr.bf16.mxu1 %v5495_v9 }
 0xef8   :  { %2506 = vmatprep.subr.bf16.mxu1 %v4978_v38 }
 0xefb   :  { %2507 = vmatpush1.bf16.msra.mxu1 %v4986_v2 }
 0xefc   :  { %2508 = vmatprep.subr.bf16.mxu1 %v4990_v55 }
 0xeff   :  { %2509 = vmatpush1.bf16.msra.mxu1 %v4997_v7 }
 0xf00   :  { %2510 = vmatprep.subr.bf16.mxu1 %v5000_v3 }
 0xf03   :  { %2511 = vmatpush1.bf16.msra.mxu1 %v5003_v40 }
 0xf04   :  { %2512 = vmatprep.subr.bf16.mxu1 %v5006_v29 }
 0xf07   :  { %2513 = vmatpush1.bf16.msra.mxu1 %v5009_v59 }
 0xf08   :  { %2514 = vmatprep.subr.bf16.mxu1 %v5012_v63 }
 0xf0b   :  { %2515 = vmatpush1.bf16.msra.mxu1 %v5015_v32 }
 0xf0c   :  { %2516 = vmatprep.subr.bf16.mxu1 %v5018_v41 }
 0xf0f   :  { %2517 = vmatpush1.bf16.msra.mxu1 %v5021_v14 }
 0xf10   :  { %2518 = vmatprep.subr.bf16.mxu1 %v5024_v58 }
 0xf13   :  { %2519 = vmatpush1.bf16.msra.mxu1 %v5027_v20 }
 0xf14   :  { %2613 = vmatprep.subr.bf16.mxu1 %v4920_v34 }
 0xfc9   :  { %v2429_v10 = vpop.f32.mrb[64].mxu1 }
 0xfca   :  { %v2436_v15 = vadd.f32 %v2429_v10, %v1604_v50  ;;  %v2431_v36 = vpop.f32.mrb[65].mxu1 }
 0xfcb   :  { %v2443_v0 = vadd.f32 %v2431_v36, %v1606_v26  ;;  %v2433_v60 = vpop.f32.mrb[66].mxu1 }
 0xfcc   :  { %v3004_v49 = vmul.f32 -1.442695, %v2436_v15  ;;  %v2434_v28 = vpop.f32.mrb[67].mxu1 }
 0xfcd   :  { %v3005_v27 = vmul.f32 -1.442695, %v2443_v0 }
 0xfce   :  { %3886 = vpow2.f32 %v3004_v49 }
 0xfcf   :  { %3888 = vpow2.f32 %v3005_v27 }
 0xfd8   :  { %v3887_v22 = vpop.eup %3886 }
 0xfd9   :  { %v3889_v19 = vpop.eup %3888  ;;  %v2440_v42 = vadd.f32 1.0, %v3887_v22 }
 0xfda   :  { %v2447_v43 = vadd.f32 1.0, %v3889_v19 }
 0xfdb   :  { %3890 = vrcp.f32 %v2440_v42 }
 0xfdc   :  { %3892 = vrcp.f32 %v2447_v43 }
 0xfe5   :  { %v3891_v57 = vpop.eup %3890 }
 0xfe6   :  { %v3893_v35 = vpop.eup %3892  ;;  %v2494_v21 = vmul.f32 %v3891_v57, %v1977_v1  ;;  %v1970_v1 = vadd.f32 %v1959_v25, %v5153_v6 }
 0xfe7   :  { %v2450_v39 = vmul.f32 %v3893_v35, %v5253_v11 }
 0xfe8   :  { %v2495_v24 = vsub.f32 1.0, %v2494_v21  ;;  %v1978_v57 = vmul.f32 0.17677669, %v1970_v1 }
 0xfe9   :  { %v2451_v44 = vpack.c.bf16 %v2450_v39, %v2450_v39 }
 0xfea   :  { %v2496_v50 = vmul.f32 %v2495_v24, %v5253_v11  ;;  %v5515_v11 = vld [vmem:[#allocation30_spill] sm:$0xff] }
 0xfeb   :  { %3563 = vmatmul.mubr.bf16.vlgmr.msra.gmra.mrb[80].mxu0 %v2451_v44  ;;  %v1612_v15 = vadd.f32 %v5515_v11, %v5107_v53 }
 0xfec   :  { %3567 = vmatpush3.bf16.msra.mxu0 %v5066_v56  ;;  %3582 = vmatprep.mubr.msk.bf16.mxu0 %vm4185_vm1, %v5494_v62 }
 0xfed   :  { %3568 = vmatprep.subr.bf16.mxu0 %v5494_v62 }
 0xff0   :  { %3569 = vmatpush3.bf16.msra.mxu0 %v5069_v13 }
 0xff1   :  { %3570 = vmatprep.subr.bf16.mxu0 %v5494_v62 }
 0xff4   :  { %3571 = vmatpush3.bf16.msra.mxu0 %v5075_v23 }
 0xff5   :  { %3572 = vmatprep.subr.bf16.mxu0 %v5494_v62 }
 0xff8   :  { %3573 = vmatpush3.bf16.msra.mxu0 %v5079_v17 }
 0xff9   :  { %3574 = vmatprep.subr.bf16.mxu0 %v5494_v62 }
 0xffc   :  { %3575 = vmatpush3.bf16.msra.mxu0 %v5083_v48 }
 0xffd   :  { %3576 = vmatprep.subr.bf16.mxu0 %v5494_v62 }
0x1000   :  { %3577 = vmatpush3.bf16.msra.mxu0 %v5087_v5 }
0x1001   :  { %3578 = vmatprep.subr.bf16.mxu0 %v5494_v62 }
0x1004   :  { %3579 = vmatpush3.bf16.msra.mxu0 %v5096_v30 }
0x1005   :  { %3580 = vmatprep.subr.bf16.mxu0 %v5494_v62 }
0x1008   :  { %3581 = vmatpush3.bf16.msra.mxu0 %v5110_v18 }
0x1009   :  { %3586 = vmatprep.subr.bf16.mxu0 %v5494_v62 }
0x10be   :  { %v2486_v12 = vpop.f32.mrb[80].mxu0 }
0x10bf   :  { %v2492_v52 = vadd.f32 %v2486_v12, %v1714_v51  ;;  %v3564_v45 = vpop.f32.mrb[81].mxu0  ;;  %v5516_v12 = vld [vmem:[#allocation28_spill] sm:$0xff] }
0x10c0   :  { %v2489_v46 = vpop.f32.mrb[82].mxu0 }
0x10c1   :  { %3894 = vtanh.f32 %v2492_v52  ;;  %v3565_v4 = vpop.f32.mrb[83].mxu0  ;;  %v1719_v52 = vadd.f32 %v5516_v12, %v5149_v37 }
0x10cb   :  { %v3895_v47 = vpop.eup %3894 }
0x10cc   :  { %v2497_v31 = vmul.f32 %v3895_v47, %v2494_v21 }
0x10ce   :  { %v5301_v26 = vadd.f32 %v2497_v31, %v2496_v50 }
0x10d0   :  { %v2503_v10 = vpack.c.bf16 %v5301_v26, %v5301_v26 }
0x10d2   :  { %2537 = vmatmul.mubr.bf16.vlgmr.msra.gmra.mrb[68].mxu1 %v2503_v10 }
0x10d3   :  { %2614 = vmatpush1.bf16.msra.mxu1 %v4974_v33  ;;  %2645 = vmatprep.mubr.bf16.mxu1 %v5495_v9 }
0x10d4   :  { %2615 = vmatprep.subr.bf16.mxu1 %v4978_v38 }
0x10d7   :  { %2616 = vmatpush1.bf16.msra.mxu1 %v4986_v2 }
0x10d8   :  { %2617 = vmatprep.subr.bf16.mxu1 %v4990_v55 }
0x10db   :  { %2618 = vmatpush1.bf16.msra.mxu1 %v4997_v7 }
0x10dc   :  { %2619 = vmatprep.subr.bf16.mxu1 %v5000_v3 }
0x10df   :  { %2620 = vmatpush1.bf16.msra.mxu1 %v5003_v40 }
0x10e0   :  { %2621 = vmatprep.subr.bf16.mxu1 %v5006_v29 }
0x10e3   :  { %2622 = vmatpush1.bf16.msra.mxu1 %v5009_v59 }
0x10e4   :  { %2623 = vmatprep.subr.bf16.mxu1 %v5012_v63 }
0x10e7   :  { %2624 = vmatpush1.bf16.msra.mxu1 %v5015_v32 }
0x10e8   :  { %2625 = vmatprep.subr.bf16.mxu1 %v5018_v41 }
0x10eb   :  { %2626 = vmatpush1.bf16.msra.mxu1 %v5021_v14 }
0x10ec   :  { %2627 = vmatprep.subr.bf16.mxu1 %v5024_v58 }
0x10ef   :  { %2628 = vmatpush1.bf16.msra.mxu1 %v5027_v20 }
0x10f0   :  { %2722 = vmatprep.subr.bf16.mxu1 %v4920_v34 }
0x11a5   :  { %v2538_v36 = vpop.f32.mrb[68].mxu1 }
0x11a6   :  { %v2545_v0 = vadd.f32 %v2538_v36, %v1610_v8  ;;  %v2540_v60 = vpop.f32.mrb[69].mxu1 }
0x11a7   :  { %v2552_v49 = vadd.f32 %v2540_v60, %v1612_v15  ;;  %v2542_v28 = vpop.f32.mrb[70].mxu1 }
0x11a8   :  { %v3006_v27 = vmul.f32 -1.442695, %v2545_v0  ;;  %v2543_v22 = vpop.f32.mrb[71].mxu1  ;;  %v5518_v0 = vld [vmem:[#allocation31_spill] sm:$0xff] }
0x11a9   :  { %v3007_v19 = vmul.f32 -1.442695, %v2552_v49  ;;  %v1618_v60 = vadd.f32 %v5518_v0, %v5107_v53 }
0x11aa   :  { %3896 = vpow2.f32 %v3006_v27 }
0x11ab   :  { %3898 = vpow2.f32 %v3007_v19 }
0x11b4   :  { %v3897_v42 = vpop.eup %3896 }
0x11b5   :  { %v3899_v43 = vpop.eup %3898  ;;  %v2549_v54 = vadd.f32 1.0, %v3897_v42 }
0x11b6   :  { %v2556_v61 = vadd.f32 1.0, %v3899_v43 }
0x11b7   :  { %3900 = vrcp.f32 %v2549_v54 }
0x11b8   :  { %3902 = vrcp.f32 %v2556_v61 }
0x11c1   :  { %v3901_v35 = vpop.eup %3900 }
0x11c2   :  { %v3903_v21 = vpop.eup %3902  ;;  %v2603_v39 = vmul.f32 %v3901_v35, %v1978_v57  ;;  %v1961_v57 = vpop.xlane.xlu0 %1960 }
0x11c3   :  { %v2559_v44 = vmul.f32 %v3903_v21, %v5301_v26  ;;  %v1971_v35 = vadd.f32 %v1961_v57, %v5153_v6  ;;  %v5524_v57 = vld [vmem:[#allocation36_spill] sm:$0xff] }
0x11c4   :  { %v2604_v31 = vsub.f32 1.0, %v2603_v39 }
0x11c5   :  { %v2560_v51 = vpack.c.bf16 %v2559_v44, %v2559_v44  ;;  %v1979_v21 = vmul.f32 0.17677669, %v1971_v35  ;;  %v1630_v35 = vadd.f32 %v5524_v57, %v5107_v53 }
0x11c6   :  { %v2605_v8 = vmul.f32 %v2604_v31, %v5301_v26  ;;  %v5517_v26 = vld [vmem:[#allocation27_spill] sm:$0xff] }
0x11c7   :  { %3583 = vmatmul.mubr.bf16.vlgmr.msra.gmra.mrb[84].mxu0 %v2560_v51  ;;  %v1616_v36 = vadd.f32 %v5517_v26, %v5102_v16 }
0x11c8   :  { %3587 = vmatpush3.bf16.msra.mxu0 %v5066_v56  ;;  %3602 = vmatprep.mubr.msk.bf16.mxu0 %vm4185_vm1, %v5494_v62 }
0x11c9   :  { %3588 = vmatprep.subr.bf16.mxu0 %v5494_v62 }
0x11cc   :  { %3589 = vmatpush3.bf16.msra.mxu0 %v5069_v13 }
0x11cd   :  { %3590 = vmatprep.subr.bf16.mxu0 %v5494_v62 }
0x11d0   :  { %3591 = vmatpush3.bf16.msra.mxu0 %v5075_v23 }
0x11d1   :  { %3592 = vmatprep.subr.bf16.mxu0 %v5494_v62 }
0x11d4   :  { %3593 = vmatpush3.bf16.msra.mxu0 %v5079_v17 }
0x11d5   :  { %3594 = vmatprep.subr.bf16.mxu0 %v5494_v62 }
0x11d8   :  { %3595 = vmatpush3.bf16.msra.mxu0 %v5083_v48 }
0x11d9   :  { %3596 = vmatprep.subr.bf16.mxu0 %v5494_v62 }
0x11dc   :  { %3597 = vmatpush3.bf16.msra.mxu0 %v5087_v5 }
0x11dd   :  { %3598 = vmatprep.subr.bf16.mxu0 %v5494_v62 }
0x11e0   :  { %3599 = vmatpush3.bf16.msra.mxu0 %v5096_v30 }
0x11e1   :  { %3600 = vmatprep.subr.bf16.mxu0 %v5494_v62 }
0x11e4   :  { %3601 = vmatpush3.bf16.msra.mxu0 %v5110_v18 }
0x11e5   :  { %3606 = vmatprep.subr.bf16.mxu0 %v5494_v62 }
0x129a   :  { %v2595_v45 = vpop.f32.mrb[84].mxu0 }
0x129b   :  { %v2601_v46 = vadd.f32 %v2595_v45, %v1719_v52  ;;  %v3584_v4 = vpop.f32.mrb[85].mxu0  ;;  %v5519_v45 = vld [vmem:[#allocation29_spill] sm:$0xff] }
0x129c   :  { %v2598_v24 = vpop.f32.mrb[86].mxu0 }
0x129d   :  { %3904 = vtanh.f32 %v2601_v46  ;;  %v3585_v47 = vpop.f32.mrb[87].mxu0  ;;  %v1724_v46 = vadd.f32 %v5519_v45, %v5149_v37 }
0x12a7   :  { %v3905_v50 = vpop.eup %3904 }
0x12a8   :  { %v2606_v10 = vmul.f32 %v3905_v50, %v2603_v39 }
0x12aa   :  { %v5349_v11 = vadd.f32 %v2606_v10, %v2605_v8 }
0x12ac   :  { %v2612_v15 = vpack.c.bf16 %v5349_v11, %v5349_v11 }
0x12ae   :  { %2646 = vmatmul.mubr.bf16.vlgmr.msra.gmra.mrb[72].mxu1 %v2612_v15 }
0x12af   :  { %2723 = vmatpush1.bf16.msra.mxu1 %v4974_v33  ;;  %2754 = vmatprep.mubr.bf16.mxu1 %v5495_v9 }
0x12b0   :  { %2724 = vmatprep.subr.bf16.mxu1 %v4978_v38 }
0x12b3   :  { %2725 = vmatpush1.bf16.msra.mxu1 %v4986_v2 }
0x12b4   :  { %2726 = vmatprep.subr.bf16.mxu1 %v4990_v55 }
0x12b7   :  { %2727 = vmatpush1.bf16.msra.mxu1 %v4997_v7 }
0x12b8   :  { %2728 = vmatprep.subr.bf16.mxu1 %v5000_v3 }
0x12bb   :  { %2729 = vmatpush1.bf16.msra.mxu1 %v5003_v40 }
0x12bc   :  { %2730 = vmatprep.subr.bf16.mxu1 %v5006_v29 }
0x12bf   :  { %2731 = vmatpush1.bf16.msra.mxu1 %v5009_v59 }
0x12c0   :  { %2732 = vmatprep.subr.bf16.mxu1 %v5012_v63 }
0x12c3   :  { %2733 = vmatpush1.bf16.msra.mxu1 %v5015_v32 }
0x12c4   :  { %2734 = vmatprep.subr.bf16.mxu1 %v5018_v41 }
0x12c7   :  { %2735 = vmatpush1.bf16.msra.mxu1 %v5021_v14 }
0x12c8   :  { %2736 = vmatprep.subr.bf16.mxu1 %v5024_v58 }
0x12cb   :  { %2737 = vmatpush1.bf16.msra.mxu1 %v5027_v20 }
0x12cc   :  { %2831 = vmatprep.subr.bf16.mxu1 %v4920_v34 }
0x1381   :  { %v2647_v49 = vpop.f32.mrb[72].mxu1 }
0x1382   :  { %v2654_v28 = vadd.f32 %v2647_v49, %v1616_v36  ;;  %v2649_v27 = vpop.f32.mrb[73].mxu1 }
0x1383   :  { %v2661_v22 = vadd.f32 %v2649_v27, %v1618_v60  ;;  %v2651_v19 = vpop.f32.mrb[74].mxu1 }
0x1384   :  { %v3008_v42 = vmul.f32 -1.442695, %v2654_v28  ;;  %v2652_v43 = vpop.f32.mrb[75].mxu1 }
0x1385   :  { %v3009_v54 = vmul.f32 -1.442695, %v2661_v22 }
0x1386   :  { %3906 = vpow2.f32 %v3008_v42 }
0x1387   :  { %3908 = vpow2.f32 %v3009_v54 }
0x1390   :  { %v3907_v61 = vpop.eup %3906 }
0x1391   :  { %v3909_v25 = vpop.eup %3908  ;;  %v2658_v1 = vadd.f32 1.0, %v3907_v61 }
0x1392   :  { %v2665_v34 = vadd.f32 1.0, %v3909_v25 }
0x1393   :  { %3910 = vrcp.f32 %v2658_v1 }
0x1394   :  { %3912 = vrcp.f32 %v2665_v34 }
0x139d   :  { %v3911_v39 = vpop.eup %3910 }
0x139e   :  { %v3913_v44 = vpop.eup %3912  ;;  %v2712_v51 = vmul.f32 %v3911_v39, %v1979_v21 }
0x139f   :  { %v2668_v12 = vmul.f32 %v3913_v44, %v5349_v11 }
0x13a0   :  { %v2713_v10 = vsub.f32 1.0, %v2712_v51 }
0x13a1   :  { %v2669_v52 = vpack.c.bf16 %v2668_v12, %v2668_v12 }
0x13a2   :  { %v2714_v26 = vmul.f32 %v2713_v10, %v5349_v11  ;;  %v1963_v11 = vpop.xlane.xlu1 %1962 }
0x13a3   :  { %3603 = vmatmul.mubr.bf16.vlgmr.msra.gmra.mrb[88].mxu0 %v2669_v52  ;;  %v1972_v60 = vadd.f32 %v1963_v11, %v5153_v6 }
0x13a4   :  { %3607 = vmatpush3.bf16.msra.mxu0 %v5066_v56  ;;  %3622 = vmatprep.mubr.msk.bf16.mxu0 %vm4185_vm1, %v5494_v62 }
0x13a5   :  { %3608 = vmatprep.subr.bf16.mxu0 %v5494_v62  ;;  %v1980_v49 = vmul.f32 0.17677669, %v1972_v60 }
0x13a8   :  { %3609 = vmatpush3.bf16.msra.mxu0 %v5069_v13 }
0x13a9   :  { %3610 = vmatprep.subr.bf16.mxu0 %v5494_v62 }
0x13ac   :  { %3611 = vmatpush3.bf16.msra.mxu0 %v5075_v23 }
0x13ad   :  { %3612 = vmatprep.subr.bf16.mxu0 %v5494_v62 }
0x13b0   :  { %3613 = vmatpush3.bf16.msra.mxu0 %v5079_v17 }
0x13b1   :  { %3614 = vmatprep.subr.bf16.mxu0 %v5494_v62 }
0x13b4   :  { %3615 = vmatpush3.bf16.msra.mxu0 %v5083_v48 }
0x13b5   :  { %3616 = vmatprep.subr.bf16.mxu0 %v5494_v62 }
0x13b8   :  { %3617 = vmatpush3.bf16.msra.mxu0 %v5087_v5 }
0x13b9   :  { %3618 = vmatprep.subr.bf16.mxu0 %v5494_v62 }
0x13bc   :  { %3619 = vmatpush3.bf16.msra.mxu0 %v5096_v30 }
0x13bd   :  { %3620 = vmatprep.subr.bf16.mxu0 %v5494_v62 }
0x13c0   :  { %3621 = vmatpush3.bf16.msra.mxu0 %v5110_v18 }
0x13c1   :  { %3626 = vmatprep.subr.bf16.mxu0 %v5494_v62 }
0x1476   :  { %v2704_v4 = vpop.f32.mrb[88].mxu0 }
0x1477   :  { %v2710_v24 = vadd.f32 %v2704_v4, %v1724_v46  ;;  %v3604_v47 = vpop.f32.mrb[89].mxu0 }
0x1478   :  { %v2707_v31 = vpop.f32.mrb[90].mxu0 }
0x1479   :  { %3914 = vtanh.f32 %v2710_v24  ;;  %v3605_v50 = vpop.f32.mrb[91].mxu0 }
0x1483   :  { %v3915_v8 = vpop.eup %3914 }
0x1484   :  { %v2715_v15 = vmul.f32 %v3915_v8, %v2712_v51 }
0x1486   :  { %v5397_v36 = vadd.f32 %v2715_v15, %v2714_v26 }
0x1488   :  { %v2721_v0 = vpack.c.bf16 %v5397_v36, %v5397_v36 }
0x148a   :  { %2755 = vmatmul.mubr.bf16.vlgmr.msra.gmra.mrb[76].mxu1 %v2721_v0  ;;  %v5525_v0 = vld [vmem:[#allocation35_spill] sm:$0xff] }
0x148b   :  { %2832 = vmatpush1.bf16.msra.mxu1 %v4974_v33  ;;  %2863 = vmatprep.mubr.bf16.mxu1 %v5495_v9  ;;  %v5520_v9 = vld [vmem:[#allocation32_spill] sm:$0xff] }
0x148c   :  { %2833 = vmatprep.subr.bf16.mxu1 %v4978_v38  ;;  %v1622_v33 = vadd.f32 %v5520_v9, %v5102_v16  ;;  %v5521_v38 = vld [vmem:[#allocation33_spill] sm:$0xff]  ;;  %v1734_v9 = vadd.f32 %v5525_v0, %v5149_v37 }
0x148f   :  { %2834 = vmatpush1.bf16.msra.mxu1 %v4986_v2  ;;  %v1624_v2 = vadd.f32 %v5521_v38, %v5107_v53 }
0x1490   :  { %2835 = vmatprep.subr.bf16.mxu1 %v4990_v55 }
0x1493   :  { %2836 = vmatpush1.bf16.msra.mxu1 %v4997_v7 }
0x1494   :  { %2837 = vmatprep.subr.bf16.mxu1 %v5000_v3 }
0x1497   :  { %2838 = vmatpush1.bf16.msra.mxu1 %v5003_v40 }
0x1498   :  { %2839 = vmatprep.subr.bf16.mxu1 %v5006_v29 }
0x149b   :  { %2840 = vmatpush1.bf16.msra.mxu1 %v5009_v59 }
0x149c   :  { %2841 = vmatprep.subr.bf16.mxu1 %v5012_v63 }
0x149f   :  { %2842 = vmatpush1.bf16.msra.mxu1 %v5015_v32 }
0x14a0   :  { %2843 = vmatprep.subr.bf16.mxu1 %v5018_v41 }
0x14a3   :  { %2844 = vmatpush1.bf16.msra.mxu1 %v5021_v14 }
0x14a4   :  { %2845 = vmatprep.subr.bf16.mxu1 %v5024_v58 }
0x14a7   :  { %2846 = vmatpush1.bf16.msra.mxu1 %v5027_v20 }
0x155d   :  { %v2756_v55 = vpop.f32.mrb[76].mxu1 }
0x155e   :  { %v2763_v7 = vadd.f32 %v2756_v55, %v1622_v33  ;;  %v2758_v3 = vpop.f32.mrb[77].mxu1 }
0x155f   :  { %v2770_v40 = vadd.f32 %v2758_v3, %v1624_v2  ;;  %v2760_v29 = vpop.f32.mrb[78].mxu1 }
0x1560   :  { %v3010_v59 = vmul.f32 -1.442695, %v2763_v7  ;;  %v2761_v63 = vpop.f32.mrb[79].mxu1 }
0x1561   :  { %v3011_v32 = vmul.f32 -1.442695, %v2770_v40 }
0x1562   :  { %3916 = vpow2.f32 %v3010_v59 }
0x1563   :  { %3918 = vpow2.f32 %v3011_v32 }
0x156c   :  { %v3917_v41 = vpop.eup %3916 }
0x156d   :  { %v3919_v14 = vpop.eup %3918  ;;  %v2767_v58 = vadd.f32 1.0, %v3917_v41 }
0x156e   :  { %v2774_v20 = vadd.f32 1.0, %v3919_v14 }
0x156f   :  { %3920 = vrcp.f32 %v2767_v58 }
0x1570   :  { %3922 = vrcp.f32 %v2774_v20 }
0x1579   :  { %v3921_v28 = vpop.eup %3920 }
0x157a   :  { %v3923_v27 = vpop.eup %3922  ;;  %v2821_v22 = vmul.f32 %v3921_v28, %v1980_v49 }
0x157b   :  { %v2777_v19 = vmul.f32 %v3923_v27, %v5397_v36 }
0x157c   :  { %v2822_v61 = vsub.f32 1.0, %v2821_v22 }
0x157d   :  { %v2778_v42 = vpack.c.bf16 %v2777_v19, %v2777_v19 }
0x157e   :  { %v2823_v1 = vmul.f32 %v2822_v61, %v5397_v36 }
0x157f   :  { %3623 = vmatmul.mubr.bf16.vlgmr.msra.gmra.mrb[92].mxu0 %v2778_v42 }
0x1580   :  { %3627 = vmatpush3.bf16.msra.mxu0 %v5066_v56  ;;  %3642 = vmatprep.mubr.msk.bf16.mxu0 %vm4185_vm1, %v5494_v62  ;;  %v5522_v56 = vld [vmem:[#allocation37_spill] sm:$0xff] }
0x1581   :  { %3628 = vmatprep.subr.bf16.mxu0 %v5494_v62 }
0x1584   :  { %3629 = vmatpush3.bf16.msra.mxu0 %v5069_v13  ;;  %v1729_v13 = vadd.f32 %v5522_v56, %v5149_v37 }
0x1585   :  { %3630 = vmatprep.subr.bf16.mxu0 %v5494_v62 }
0x1588   :  { %3631 = vmatpush3.bf16.msra.mxu0 %v5075_v23 }
0x1589   :  { %3632 = vmatprep.subr.bf16.mxu0 %v5494_v62 }
0x158c   :  { %3633 = vmatpush3.bf16.msra.mxu0 %v5079_v17 }
0x158d   :  { %3634 = vmatprep.subr.bf16.mxu0 %v5494_v62 }
0x1590   :  { %3635 = vmatpush3.bf16.msra.mxu0 %v5083_v48 }
0x1591   :  { %3636 = vmatprep.subr.bf16.mxu0 %v5494_v62 }
0x1594   :  { %3637 = vmatpush3.bf16.msra.mxu0 %v5087_v5 }
0x1595   :  { %3638 = vmatprep.subr.bf16.mxu0 %v5494_v62 }
0x1598   :  { %3639 = vmatpush3.bf16.msra.mxu0 %v5096_v30 }
0x1599   :  { %3640 = vmatprep.subr.bf16.mxu0 %v5494_v62  ;;  %v5523_v62 = vld [vmem:[#allocation34_spill] sm:$0xff] }
0x159c   :  { %3641 = vmatpush3.bf16.msra.mxu0 %v5110_v18  ;;  %v1628_v18 = vadd.f32 %v5523_v62, %v5102_v16  ;;  %v1965_v16 = vpop.xlane.xlu0 %1964 }
0x159d   :  { %v1973_v50 = vadd.f32 %v1965_v16, %v5153_v6 }
0x159f   :  { %v1981_v53 = vmul.f32 0.17677669, %v1973_v50 }
0x1652   :  { %v2813_v23 = vpop.f32.mrb[92].mxu0 }
0x1653   :  { %v2819_v17 = vadd.f32 %v2813_v23, %v1729_v13  ;;  %v3624_v43 = vpop.f32.mrb[93].mxu0 }
0x1654   :  { %v2816_v54 = vpop.f32.mrb[94].mxu0 }
0x1655   :  { %3924 = vtanh.f32 %v2819_v17  ;;  %v3625_v48 = vpop.f32.mrb[95].mxu0 }
0x165f   :  { %v3925_v25 = vpop.eup %3924 }
0x1660   :  { %v2824_v5 = vmul.f32 %v3925_v25, %v2821_v22 }
0x1662   :  { %v2825_v34 = vadd.f32 %v2824_v5, %v2823_v1 }
0x1664   :  { %v2830_v30 = vpack.c.bf16 %v2825_v34, %v2825_v34 }
0x1666   :  { %2864 = vmatmul.mubr.bf16.vlgmr.msra.gmra.mrb[80].mxu1 %v2830_v30 }
0x1739   :  { %v2865_v21 = vpop.f32.mrb[80].mxu1 }
0x173a   :  { %v2872_v39 = vadd.f32 %v2865_v21, %v1628_v18  ;;  %v2867_v44 = vpop.f32.mrb[81].mxu1 }
0x173b   :  { %v2879_v51 = vadd.f32 %v2867_v44, %v1630_v35  ;;  %v2869_v12 = vpop.f32.mrb[82].mxu1 }
0x173c   :  { %v3012_v52 = vmul.f32 -1.442695, %v2872_v39  ;;  %v2870_v45 = vpop.f32.mrb[83].mxu1 }
0x173d   :  { %v3013_v46 = vmul.f32 -1.442695, %v2879_v51 }
0x173e   :  { %3926 = vpow2.f32 %v3012_v52 }
0x173f   :  { %3928 = vpow2.f32 %v3013_v46 }
0x1748   :  { %v3927_v4 = vpop.eup %3926 }
0x1749   :  { %v3929_v24 = vpop.eup %3928  ;;  %v2876_v47 = vadd.f32 1.0, %v3927_v4 }
0x174a   :  { %v2883_v31 = vadd.f32 1.0, %v3929_v24 }
0x174b   :  { %3930 = vrcp.f32 %v2876_v47 }
0x174c   :  { %3932 = vrcp.f32 %v2883_v31 }
0x1755   :  { %v3931_v10 = vpop.eup %3930 }
0x1756   :  { %v3933_v8 = vpop.eup %3932  ;;  %v2930_v15 = vmul.f32 %v3931_v10, %v1981_v53 }
0x1757   :  { %v2886_v26 = vmul.f32 %v3933_v8, %v2825_v34 }
0x1758   :  { %v2931_v3 = vsub.f32 1.0, %v2930_v15 }
0x1759   :  { %v2887_v36 = vpack.c.bf16 %v2886_v26, %v2886_v26 }
0x175a   :  { %v2932_v6 = vmul.f32 %v2931_v3, %v2825_v34 }
0x175b   :  { %3643 = vmatmul.mubr.bf16.vlgmr.msra.gmra.mrb[96].mxu0 %v2887_v36 }
0x182e   :  { %v2922_v33 = vpop.f32.mrb[96].mxu0 }
0x182f   :  { %v2928_v38 = vadd.f32 %v2922_v33, %v1734_v9  ;;  %v3644_v2 = vpop.f32.mrb[97].mxu0 }
0x1830   :  { %v2925_v55 = vpop.f32.mrb[98].mxu0 }
0x1831   :  { %3934 = vtanh.f32 %v2928_v38  ;;  %v3645_v7 = vpop.f32.mrb[99].mxu0 }
0x183b   :  { %v3935_v40 = vpop.eup %3934 }
0x183c   :  { %v2933_v29 = vmul.f32 %v3935_v40, %v2930_v15 }
0x183e   :  { %v2934_v59 = vadd.f32 %v2933_v29, %v2932_v6 }
0x1840   :  { %2935 = vst [vmem:[#allocation19] sm:$0xff] %v2934_v59 }
0x1841   :  { %4146 = shalt.err (!%p4143_p6)
}
0x1842   :  { %s4147_s19 = scalar_lea.hbm %s5476_s14, 128 }
0x1843   :  { %p4148_p7 = scmp.ne.s32.totalorder %s5476_s14, %s4147_s19  ;;  %p4151_p8 = scmp.lt.u32.totalorder %s4147_s19, %s5476_s14 }
0x1845   :  { %p4153_p9 = pnand %p4151_p8, %p4148_p7 }
0x1847   :  { %4156 = shalt.err (!%p4153_p9)
}
0x1848   :  { %2945 = dma.vmem_to_hbm [thread:$0]  %s2943_s20, 128, %s5476_s14, [#allocation6]  }
0x1849   :  { %4167 = dma.done.wait [#allocation6], 128  }
0x184a   :  { %4168 = vsyncadd [#allocation6], 4294967168 }
0x184b   :  { %2949 = vsyncpa [#allocation5], 1 }
0x184c   :  { %2950 = vsyncpa [#allocation8], 1 }
0x184d   :  { %2951 = vsyncpa [#allocation11], 1 }
0x184e   :  { %2952 = vsyncpa [#allocation14], 1 }
0x184f   :  { %2953 = vsyncpa [#allocation17], 1 }
0x1850   :  { %2954 = vsyncpa [#allocation6], 1 }

</bundles_post_ra>
